<compile_context>
chip_gen: v7x
topology: tpu7x:2x2x1
jax: 0.10.0
libtpu: 0.0.40
codegen_flags: <defaults>
</compile_context>

<pallas_src>
import functools
import math

import jax
import jax.numpy as jnp
from jax import lax
from jax.experimental import pallas as pl
from jax.experimental.pallas import tpu as pltpu

_NEG_INF = -1e30


def _mha_kernel(a_ref, b_ref, wq_ref, wk_ref, wv_ref, wo_ref,
                bq_ref, bk_ref, bv_ref, bo_ref,
                out_ref, attnw_ref, acc_ref, *,
                num_heads, lk_true, head_dim):
    bt, lq, e_pad = a_ref.shape
    lk_pad = b_ref.shape[1]
    dh_pad = wq_ref.shape[-1]
    scale = 1.0 / math.sqrt(head_dim)

    # Collapse the batch tile into the row (sublane) dim so the MXU sees
    # M = Bt*Lq / Bt*Lk rows for the projections (free leading-dim reshape).
    a2 = a_ref[...].reshape(bt * lq, e_pad)
    b2 = b_ref[...].reshape(bt * lk_pad, e_pad)

    # Additive mask for lane-padded key positions (their bias-only keys/values
    # must not enter the softmax).  exp(-1e30 - m) == 0 exactly, so the softmax
    # denominator is computed over the true Lk keys only.
    if lk_pad != lk_true:
        key_ids = lax.broadcasted_iota(jnp.int32, (1, 1, lk_pad), 2)
        key_bias = jnp.where(key_ids < lk_true, 0.0, _NEG_INF).astype(jnp.float32)
    else:
        key_bias = None

    # f32 accumulator for the fused output projection (starts from the output bias);
    # the head-averaged attention weights accumulate directly in their VMEM block.
    acc_ref[...] = jnp.broadcast_to(bo_ref[...], acc_ref.shape)
    attnw_ref[...] = jnp.zeros_like(attnw_ref)

    for h in range(num_heads):   # static unroll; leading-dim head index is free
        qh = (jnp.dot(a2, wq_ref[h], preferred_element_type=jnp.float32)
              + bq_ref[h]) * scale                                     # (bt*lq, dh_pad)
        kh = jnp.dot(b2, wk_ref[h], preferred_element_type=jnp.float32) + bk_ref[h]
        vh = jnp.dot(b2, wv_ref[h], preferred_element_type=jnp.float32) + bv_ref[h]

        qhb = qh.reshape(bt, lq, dh_pad)
        khb = kh.reshape(bt, lk_pad, dh_pad)
        vhb = vh.reshape(bt, lk_pad, dh_pad)

        s = jnp.einsum('bqd,bkd->bqk', qhb, khb,
                       preferred_element_type=jnp.float32)             # (bt, lq, lk_pad)
        if key_bias is not None:
            s = s + key_bias
        m = jnp.max(s, axis=-1, keepdims=True)
        p = jnp.exp(s - m)
        denom = jnp.sum(p, axis=-1, keepdims=True)
        # approx=True moves this entirely onto the EUP (~free when VALU-bound) at the
        # cost of ~1e-4 relative error; kept exact so we match the reference to 1e-5.
        p = p * pl.reciprocal(denom, approx=False)

        attnw_ref[...] += p
        ctx = jnp.einsum('bqk,bkd->bqd', p, vhb,
                         preferred_element_type=jnp.float32)            # (bt, lq, dh_pad)
        # Fused output projection: per-head slice of wo, accumulated in f32.
        acc_ref[...] += jnp.dot(ctx.reshape(bt * lq, dh_pad), wo_ref[h],
                                preferred_element_type=jnp.float32)

    out_ref[...] = acc_ref[...].reshape(bt, lq, e_pad).astype(out_ref.dtype)
    attnw_ref[...] *= jnp.float32(1.0 / num_heads)


def _pick_block_b(batch, lq, lk_pad, target_rows=512):
    """Largest divisor of `batch` keeping <= target_rows rows per matmul, preferring
    to leave >= 2 grid steps (v7x has 2 TensorCores per chip)."""
    divisors = [d for d in range(1, batch + 1) if batch % d == 0]
    fits = [d for d in divisors if d * max(lq, lk_pad) <= target_rows] or [1]
    multi = [d for d in fits if batch // d >= 2]
    return max(multi) if multi else max(fits)


def contrastive_attention_forward(a, b, params, num_heads, block_b=None):
    """Pallas implementation of ContrastiveAttention.forward(a, b).

    a : (B, Lq, E) float32 query
    b : (B, Lk, E) float32 key/value
    params = (wq, wk, wv, wo, bq, bk, bv, bo), weights (E, E), biases (E,)
             with layout y = x @ W + b (transposed vs. PyTorch nn.Linear).
    returns (output (B, Lq, E), attn_weights (B, Lq, Lk))
    """
    wq, wk, wv, wo, bq, bk, bv, bo = params
    B, Lq, E = a.shape
    Lk = b.shape[1]
    H = num_heads
    assert E % H == 0
    dh = E // H

    # Lane-dense padded sizes.
    E_pad = int(pl.cdiv(E, 128)) * 128
    dh_pad = int(pl.cdiv(dh, 128)) * 128
    Lk_pad = int(pl.cdiv(Lk, 128)) * 128

    # Pad activations (zeros; exact).
    a_p = a if E_pad == E else jnp.pad(a, ((0, 0), (0, 0), (0, E_pad - E)))
    b_p = b
    if E_pad != E or Lk_pad != Lk:
        b_p = jnp.pad(b, ((0, 0), (0, Lk_pad - Lk), (0, E_pad - E)))

    # Per-head, lane-padded weight layout (all padding is exact zeros).
    def in_proj_heads(w):                       # (E, E) -> (H, E_pad, dh_pad)
        w = w.reshape(E, H, dh).transpose(1, 0, 2)
        return jnp.pad(w, ((0, 0), (0, E_pad - E), (0, dh_pad - dh)))

    def in_bias_heads(bias):                    # (E,) -> (H, 1, dh_pad)
        bias = bias.reshape(H, 1, dh)
        return jnp.pad(bias, ((0, 0), (0, 0), (0, dh_pad - dh)))

    wq_h, wk_h, wv_h = in_proj_heads(wq), in_proj_heads(wk), in_proj_heads(wv)
    bq_h, bk_h, bv_h = in_bias_heads(bq), in_bias_heads(bk), in_bias_heads(bv)
    wo_h = jnp.pad(wo.reshape(H, dh, E), ((0, 0), (0, dh_pad - dh), (0, E_pad - E)))
    bo_p = jnp.pad(bo.reshape(1, E), ((0, 0), (0, E_pad - E)))

    # Batch tile per grid step.
    if block_b is None:
        block_b = _pick_block_b(B, Lq, Lk_pad)
    assert B % block_b == 0
    Bt = block_b
    grid = (B // Bt,)

    kernel = functools.partial(_mha_kernel, num_heads=H, lk_true=Lk, head_dim=dh)

    a_spec = pl.BlockSpec((Bt, Lq, E_pad), lambda i: (i, 0, 0))
    b_spec = pl.BlockSpec((Bt, Lk_pad, E_pad), lambda i: (i, 0, 0))
    # Constant block index -> weights/biases stay VMEM-resident across the grid.
    # (On v7x with large E, add pipeline_mode=pl.Buffered(1) / bf16 weights here.)
    w_spec = pl.BlockSpec((H, E_pad, dh_pad), lambda i: (0, 0, 0))
    wo_spec = pl.BlockSpec((H, dh_pad, E_pad), lambda i: (0, 0, 0))
    bias_spec = pl.BlockSpec((H, 1, dh_pad), lambda i: (0, 0, 0))
    bo_spec = pl.BlockSpec((1, E_pad), lambda i: (0, 0))
    out_spec = pl.BlockSpec((Bt, Lq, E_pad), lambda i: (i, 0, 0))
    attnw_spec = pl.BlockSpec((Bt, Lq, Lk_pad), lambda i: (i, 0, 0))

    # Advisory cost estimate for XLA's scheduler.
    flops = int(2 * B * H * (Lq * E_pad * dh_pad            # q projection
                             + 2 * Lk_pad * E_pad * dh_pad  # k, v projections
                             + 2 * Lq * Lk_pad * dh_pad     # q@k^T and p@v
                             + Lq * dh_pad * E_pad))        # fused out projection
    transcendentals = int(B * H * Lq * Lk_pad)
    bytes_accessed = int(4 * (a_p.size + b_p.size
                              + wq_h.size + wk_h.size + wv_h.size + wo_h.size
                              + bq_h.size + bk_h.size + bv_h.size + bo_p.size
                              + B * Lq * E_pad + B * Lq * Lk_pad))

    out_pad, attnw_pad = pl.pallas_call(
        kernel,
        out_shape=(jax.ShapeDtypeStruct((B, Lq, E_pad), a.dtype),
                   jax.ShapeDtypeStruct((B, Lq, Lk_pad), jnp.float32)),
        grid_spec=pltpu.PrefetchScalarGridSpec(
            num_scalar_prefetch=0,
            grid=grid,
            in_specs=[a_spec, b_spec, w_spec, w_spec, w_spec, wo_spec,
                      bias_spec, bias_spec, bias_spec, bo_spec],
            out_specs=(out_spec, attnw_spec),
            scratch_shapes=[pltpu.VMEM((Bt * Lq, E_pad), jnp.float32)]),
        compiler_params=pltpu.CompilerParams(
            dimension_semantics=("parallel",),
            vmem_limit_bytes=32 * 1024 * 1024),
        cost_estimate=pl.CostEstimate(flops=flops,
                                      transcendentals=transcendentals,
                                      bytes_accessed=bytes_accessed),
    )(a_p, b_p, wq_h, wk_h, wv_h, wo_h, bq_h, bk_h, bv_h, bo_p)

    return out_pad[:, :, :E], attnw_pad[:, :, :Lk]


def init_params(key, embed_dim):
    """Random init for the four projections (layout: y = x @ W + b)."""
    ks = jax.random.split(key, 8)
    lim = 1.0 / math.sqrt(embed_dim)
    def w(k): return jax.random.uniform(k, (embed_dim, embed_dim), jnp.float32, -lim, lim)
    def bvec(k): return jax.random.uniform(k, (embed_dim,), jnp.float32, -lim, lim)
    return (w(ks[0]), w(ks[1]), w(ks[2]), w(ks[3]),
            bvec(ks[4]), bvec(ks[5]), bvec(ks[6]), bvec(ks[7]))


def reference_mha(a, b, params, num_heads):
    """Plain-JAX reference of the same math (matches PyTorch MHA semantics)."""
    wq, wk, wv, wo, bq, bk, bv, bo = params
    B, Lq, E = a.shape
    Lk = b.shape[1]
    dh = E // num_heads
    q = a @ wq + bq
    k = b @ wk + bk
    v = b @ wv + bv
    q = q.reshape(B, Lq, num_heads, dh).transpose(0, 2, 1, 3)
    k = k.reshape(B, Lk, num_heads, dh).transpose(0, 2, 1, 3)
    v = v.reshape(B, Lk, num_heads, dh).transpose(0, 2, 1, 3)
    s = jnp.einsum('bhqd,bhkd->bhqk', q, k) / jnp.sqrt(jnp.float32(dh))
    p = jax.nn.softmax(s, axis=-1)
    ctx = jnp.einsum('bhqk,bhkd->bhqd', p, v)
    ctx = ctx.transpose(0, 2, 1, 3).reshape(B, Lq, E)
    out = ctx @ wo + bo
    return out, p.mean(axis=1)


if __name__ == "__main__":
    # Small shapes consistent with the module: a/b are (batch, seq, embed_dim).
    B, Lq, Lk = 2, 8, 8
    embed_dim, num_heads = 32, 4

    key = jax.random.PRNGKey(0)
    ka, kb, kp = jax.random.split(key, 3)
    a = jax.random.normal(ka, (B, Lq, embed_dim), jnp.float32)
    b = jax.random.normal(kb, (B, Lk, embed_dim), jnp.float32)

    params = init_params(kp, embed_dim)

    out, attnw = contrastive_attention_forward(a, b, params, num_heads)
    out, attnw = jax.block_until_ready((out, attnw))

    ref_out, ref_w = reference_mha(a, b, params, num_heads)
    assert out.shape == (B, Lq, embed_dim)
    assert attnw.shape == (B, Lq, Lk)
    assert jnp.allclose(out, ref_out, atol=1e-4, rtol=1e-4)
    assert jnp.allclose(attnw, ref_w, atol=1e-5, rtol=1e-5)

    print("KERNEL_OK")
</pallas_src>

<mosaic_0001>
module attributes {stable_mosaic.version = 11 : i64} {
  func.func @_mha_kernel(%arg0: i32, %arg1: memref<1x8x128xf32, #tpu.memory_space<vmem>>, %arg2: memref<1x128x128xf32, #tpu.memory_space<vmem>>, %arg3: memref<4x128x128xf32, #tpu.memory_space<vmem>>, %arg4: memref<4x128x128xf32, #tpu.memory_space<vmem>>, %arg5: memref<4x128x128xf32, #tpu.memory_space<vmem>>, %arg6: memref<4x128x128xf32, #tpu.memory_space<vmem>>, %arg7: memref<4x1x128xf32, #tpu.memory_space<vmem>>, %arg8: memref<4x1x128xf32, #tpu.memory_space<vmem>>, %arg9: memref<4x1x128xf32, #tpu.memory_space<vmem>>, %arg10: memref<1x128xf32, #tpu.memory_space<vmem>>, %arg11: memref<1x8x128xf32, #tpu.memory_space<vmem>>, %arg12: memref<1x8x128xf32, #tpu.memory_space<vmem>>, %arg13: memref<8x128xf32, #tpu.memory_space<vmem>>) attributes {dimension_semantics = [#tpu.dimension_semantics<parallel>], iteration_bounds = array<i64: 2>, scalar_prefetch = 0 : i64, scratch_operands = 1 : i64, tpu.core_type = #tpu.core_type<tc>, window_params = [{transform_indices = @transform_0, window_bounds = array<i64: 1, 8, 128>}, {transform_indices = @transform_1, window_bounds = array<i64: 1, 128, 128>}, {pipeline_mode = #tpu.pipeline_mode<synchronous>, transform_indices = @transform_2, window_bounds = array<i64: 4, 128, 128>}, {pipeline_mode = #tpu.pipeline_mode<synchronous>, transform_indices = @transform_3, window_bounds = array<i64: 4, 128, 128>}, {pipeline_mode = #tpu.pipeline_mode<synchronous>, transform_indices = @transform_4, window_bounds = array<i64: 4, 128, 128>}, {pipeline_mode = #tpu.pipeline_mode<synchronous>, transform_indices = @transform_5, window_bounds = array<i64: 4, 128, 128>}, {pipeline_mode = #tpu.pipeline_mode<synchronous>, transform_indices = @transform_6, window_bounds = array<i64: 4, 1, 128>}, {pipeline_mode = #tpu.pipeline_mode<synchronous>, transform_indices = @transform_7, window_bounds = array<i64: 4, 1, 128>}, {pipeline_mode = #tpu.pipeline_mode<synchronous>, transform_indices = @transform_8, window_bounds = array<i64: 4, 1, 128>}, {pipeline_mode = #tpu.pipeline_mode<synchronous>, transform_indices = @transform_9, window_bounds = array<i64: 1, 128>}, {transform_indices = @transform_10, window_bounds = array<i64: 1, 8, 128>}, {transform_indices = @transform_11, window_bounds = array<i64: 1, 8, 128>}]} {
    %c0 = arith.constant 0 : index
    %c0_0 = arith.constant 0 : index
    %c0_1 = arith.constant 0 : index
    %0 = vector.load %arg1[%c0, %c0_0, %c0_1] : memref<1x8x128xf32, #tpu.memory_space<vmem>>, vector<1x8x128xf32>
    %1 = vector.shape_cast %0 : vector<1x8x128xf32> to vector<8x128xf32>
    %c0_2 = arith.constant 0 : index
    %c0_3 = arith.constant 0 : index
    %c0_4 = arith.constant 0 : index
    %2 = vector.load %arg2[%c0_2, %c0_3, %c0_4] : memref<1x128x128xf32, #tpu.memory_space<vmem>>, vector<1x128x128xf32>
    %3 = vector.shape_cast %2 : vector<1x128x128xf32> to vector<128x128xf32>
    %4 = tpu.iota {dimensions = array<i32: 2>} : vector<1x1x128xi32>
    %c8_i32 = arith.constant 8 : i32
    %5 = vector.broadcast %c8_i32 : i32 to vector<1x1x128xi32>
    %6 = arith.cmpi slt, %4, %5 : vector<1x1x128xi32>
    %cst = arith.constant 0.000000e+00 : f32
    %cst_5 = arith.constant -1.000000e+30 : f32
    %7 = vector.broadcast %cst : f32 to vector<1x1x128xf32>
    %8 = vector.broadcast %cst_5 : f32 to vector<1x1x128xf32>
    %9 = arith.select %6, %7, %8 : vector<1x1x128xi1>, vector<1x1x128xf32>
    %c0_6 = arith.constant 0 : index
    %c0_7 = arith.constant 0 : index
    %10 = vector.load %arg10[%c0_6, %c0_7] : memref<1x128xf32, #tpu.memory_space<vmem>>, vector<1x128xf32>
    %11 = vector.shape_cast %10 : vector<1x128xf32> to vector<1x128xf32>
    %12 = vector.broadcast %11 : vector<1x128xf32> to vector<8x128xf32>
    %c0_8 = arith.constant 0 : index
    %c0_9 = arith.constant 0 : index
    %13 = vector.load %arg13[%c0_8, %c0_9] : memref<8x128xf32, #tpu.memory_space<vmem>>, vector<8x128xf32>
    tpu.vector_store %arg13[%c0_8, %c0_9], %12 {strides = array<i32>} : memref<8x128xf32, #tpu.memory_space<vmem>>, vector<8x128xf32>,
    %cst_10 = arith.constant 0.000000e+00 : f32
    %14 = vector.broadcast %cst_10 : f32 to vector<1x8x128xf32>
    %c0_11 = arith.constant 0 : index
    %c0_12 = arith.constant 0 : index
    %c0_13 = arith.constant 0 : index
    %15 = vector.load %arg12[%c0_11, %c0_12, %c0_13] : memref<1x8x128xf32, #tpu.memory_space<vmem>>, vector<1x8x128xf32>
    tpu.vector_store %arg12[%c0_11, %c0_12, %c0_13], %14 {strides = array<i32>} : memref<1x8x128xf32, #tpu.memory_space<vmem>>, vector<1x8x128xf32>,
    %c0_14 = arith.constant 0 : index
    %c0_15 = arith.constant 0 : index
    %c0_16 = arith.constant 0 : index
    %16 = vector.load %arg3[%c0_14, %c0_15, %c0_16] : memref<4x128x128xf32, #tpu.memory_space<vmem>>, vector<1x128x128xf32>
    %17 = vector.shape_cast %16 : vector<1x128x128xf32> to vector<128x128xf32>
    %cst_17 = arith.constant dense<0.000000e+00> : vector<8x128xf32>
    %18 = tpu.matmul %1, %17, %cst_17 {dimension_numbers = #tpu.dot_dimension_numbers<[1], [0], [0], [1], [0, 0, 1, 1], [], []>} : vector<8x128xf32>, vector<128x128xf32>, vector<8x128xf32> -> vector<8x128xf32>
    %c0_18 = arith.constant 0 : index
    %c0_19 = arith.constant 0 : index
    %c0_20 = arith.constant 0 : index
    %19 = vector.load %arg7[%c0_18, %c0_19, %c0_20] : memref<4x1x128xf32, #tpu.memory_space<vmem>>, vector<1x1x128xf32>
    %20 = vector.shape_cast %19 : vector<1x1x128xf32> to vector<1x128xf32>
    %21 = vector.broadcast %20 : vector<1x128xf32> to vector<8x128xf32>
    %22 = arith.addf %18, %21 : vector<8x128xf32>
    %cst_21 = arith.constant 0.353553385 : f32
    %23 = vector.broadcast %cst_21 : f32 to vector<8x128xf32>
    %24 = arith.mulf %22, %23 : vector<8x128xf32>
    %c0_22 = arith.constant 0 : index
    %c0_23 = arith.constant 0 : index
    %c0_24 = arith.constant 0 : index
    %25 = vector.load %arg4[%c0_22, %c0_23, %c0_24] : memref<4x128x128xf32, #tpu.memory_space<vmem>>, vector<1x128x128xf32>
    %26 = vector.shape_cast %25 : vector<1x128x128xf32> to vector<128x128xf32>
    %cst_25 = arith.constant dense<0.000000e+00> : vector<128x128xf32>
    %27 = tpu.matmul %3, %26, %cst_25 {dimension_numbers = #tpu.dot_dimension_numbers<[1], [0], [0], [1], [0, 0, 1, 1], [], []>} : vector<128x128xf32>, vector<128x128xf32>, vector<128x128xf32> -> vector<128x128xf32>
    %c0_26 = arith.constant 0 : index
    %c0_27 = arith.constant 0 : index
    %c0_28 = arith.constant 0 : index
    %28 = vector.load %arg8[%c0_26, %c0_27, %c0_28] : memref<4x1x128xf32, #tpu.memory_space<vmem>>, vector<1x1x128xf32>
    %29 = vector.shape_cast %28 : vector<1x1x128xf32> to vector<1x128xf32>
    %30 = vector.broadcast %29 : vector<1x128xf32> to vector<128x128xf32>
    %31 = arith.addf %27, %30 : vector<128x128xf32>
    %c0_29 = arith.constant 0 : index
    %c0_30 = arith.constant 0 : index
    %c0_31 = arith.constant 0 : index
    %32 = vector.load %arg5[%c0_29, %c0_30, %c0_31] : memref<4x128x128xf32, #tpu.memory_space<vmem>>, vector<1x128x128xf32>
    %33 = vector.shape_cast %32 : vector<1x128x128xf32> to vector<128x128xf32>
    %cst_32 = arith.constant dense<0.000000e+00> : vector<128x128xf32>
    %34 = tpu.matmul %3, %33, %cst_32 {dimension_numbers = #tpu.dot_dimension_numbers<[1], [0], [0], [1], [0, 0, 1, 1], [], []>} : vector<128x128xf32>, vector<128x128xf32>, vector<128x128xf32> -> vector<128x128xf32>
    %c0_33 = arith.constant 0 : index
    %c0_34 = arith.constant 0 : index
    %c0_35 = arith.constant 0 : index
    %35 = vector.load %arg9[%c0_33, %c0_34, %c0_35] : memref<4x1x128xf32, #tpu.memory_space<vmem>>, vector<1x1x128xf32>
    %36 = vector.shape_cast %35 : vector<1x1x128xf32> to vector<1x128xf32>
    %37 = vector.broadcast %36 : vector<1x128xf32> to vector<128x128xf32>
    %38 = arith.addf %34, %37 : vector<128x128xf32>
    %39 = vector.shape_cast %24 : vector<8x128xf32> to vector<1x8x128xf32>
    %40 = vector.shape_cast %31 : vector<128x128xf32> to vector<1x128x128xf32>
    %41 = vector.shape_cast %38 : vector<128x128xf32> to vector<1x128x128xf32>
    "tpu.trace_start"() <{level = 10 : i32, message = "bqd,bkd->bqk"}> : () -> ()
    %cst_36 = arith.constant dense<0.000000e+00> : vector<1x8x128xf32>
    %42 = tpu.matmul %39, %40, %cst_36 {dimension_numbers = #tpu.dot_dimension_numbers<[2], [2], [1], [1], [0, 0, 0, 1, 1, 1], [0], [0]>} : vector<1x8x128xf32>, vector<1x128x128xf32>, vector<1x8x128xf32> -> vector<1x8x128xf32>
    "tpu.trace_stop"() : () -> ()
    %43 = vector.broadcast %9 : vector<1x1x128xf32> to vector<1x8x128xf32>
    %44 = arith.addf %42, %43 : vector<1x8x128xf32>
    %cst_37 = arith.constant dense<0xFF800000> : vector<1x8xf32>
    %45 = vector.multi_reduction <maximumf>, %44, %cst_37 [2] : vector<1x8x128xf32> to vector<1x8xf32>
    %46 = vector.shape_cast %45 : vector<1x8xf32> to vector<1x8x1xf32>
    %47 = vector.broadcast %46 : vector<1x8x1xf32> to vector<1x8x128xf32>
    %48 = arith.subf %44, %47 : vector<1x8x128xf32>
    %49 = math.exp %48 : vector<1x8x128xf32>
    %cst_38 = arith.constant dense<0.000000e+00> : vector<1x8xf32>
    %50 = vector.multi_reduction <add>, %49, %cst_38 [2] : vector<1x8x128xf32> to vector<1x8xf32>
    %51 = vector.shape_cast %50 : vector<1x8xf32> to vector<1x8x1xf32>
    %52 = tpu.reciprocal %51 : vector<1x8x1xf32> -> vector<1x8x1xf32>
    %53 = vector.broadcast %52 : vector<1x8x1xf32> to vector<1x8x128xf32>
    %54 = arith.mulf %49, %53 : vector<1x8x128xf32>
    %c0_39 = arith.constant 0 : index
    %c0_40 = arith.constant 0 : index
    %c0_41 = arith.constant 0 : index
    %55 = vector.load %arg12[%c0_39, %c0_40, %c0_41] : memref<1x8x128xf32, #tpu.memory_space<vmem>>, vector<1x8x128xf32>
    %56 = arith.addf %55, %54 : vector<1x8x128xf32>
    %c0_42 = arith.constant 0 : index
    %c0_43 = arith.constant 0 : index
    %c0_44 = arith.constant 0 : index
    %57 = vector.load %arg12[%c0_42, %c0_43, %c0_44] : memref<1x8x128xf32, #tpu.memory_space<vmem>>, vector<1x8x128xf32>
    tpu.vector_store %arg12[%c0_42, %c0_43, %c0_44], %56 {strides = array<i32>} : memref<1x8x128xf32, #tpu.memory_space<vmem>>, vector<1x8x128xf32>,
    "tpu.trace_start"() <{level = 10 : i32, message = "bqk,bkd->bqd"}> : () -> ()
    %cst_45 = arith.constant dense<0.000000e+00> : vector<1x8x128xf32>
    %58 = tpu.matmul %54, %41, %cst_45 {dimension_numbers = #tpu.dot_dimension_numbers<[2], [1], [1], [2], [0, 0, 0, 1, 1, 2], [0], [0]>} : vector<1x8x128xf32>, vector<1x128x128xf32>, vector<1x8x128xf32> -> vector<1x8x128xf32>
    "tpu.trace_stop"() : () -> ()
    %c0_46 = arith.constant 0 : index
    %c0_47 = arith.constant 0 : index
    %59 = vector.load %arg13[%c0_46, %c0_47] : memref<8x128xf32, #tpu.memory_space<vmem>>, vector<8x128xf32>
    %60 = vector.shape_cast %58 : vector<1x8x128xf32> to vector<8x128xf32>
    %c0_48 = arith.constant 0 : index
    %c0_49 = arith.constant 0 : index
    %c0_50 = arith.constant 0 : index
    %61 = vector.load %arg6[%c0_48, %c0_49, %c0_50] : memref<4x128x128xf32, #tpu.memory_space<vmem>>, vector<1x128x128xf32>
    %62 = vector.shape_cast %61 : vector<1x128x128xf32> to vector<128x128xf32>
    %cst_51 = arith.constant dense<0.000000e+00> : vector<8x128xf32>
    %63 = tpu.matmul %60, %62, %cst_51 {dimension_numbers = #tpu.dot_dimension_numbers<[1], [0], [0], [1], [0, 0, 1, 1], [], []>} : vector<8x128xf32>, vector<128x128xf32>, vector<8x128xf32> -> vector<8x128xf32>
    %64 = arith.addf %59, %63 : vector<8x128xf32>
    %c0_52 = arith.constant 0 : index
    %c0_53 = arith.constant 0 : index
    %65 = vector.load %arg13[%c0_52, %c0_53] : memref<8x128xf32, #tpu.memory_space<vmem>>, vector<8x128xf32>
    tpu.vector_store %arg13[%c0_52, %c0_53], %64 {strides = array<i32>} : memref<8x128xf32, #tpu.memory_space<vmem>>, vector<8x128xf32>,
    %c1 = arith.constant 1 : index
    %c0_54 = arith.constant 0 : index
    %c0_55 = arith.constant 0 : index
    %66 = vector.load %arg3[%c1, %c0_54, %c0_55] : memref<4x128x128xf32, #tpu.memory_space<vmem>>, vector<1x128x128xf32>
    %67 = vector.shape_cast %66 : vector<1x128x128xf32> to vector<128x128xf32>
    %cst_56 = arith.constant dense<0.000000e+00> : vector<8x128xf32>
    %68 = tpu.matmul %1, %67, %cst_56 {dimension_numbers = #tpu.dot_dimension_numbers<[1], [0], [0], [1], [0, 0, 1, 1], [], []>} : vector<8x128xf32>, vector<128x128xf32>, vector<8x128xf32> -> vector<8x128xf32>
    %c1_57 = arith.constant 1 : index
    %c0_58 = arith.constant 0 : index
    %c0_59 = arith.constant 0 : index
    %69 = vector.load %arg7[%c1_57, %c0_58, %c0_59] : memref<4x1x128xf32, #tpu.memory_space<vmem>>, vector<1x1x128xf32>
    %70 = vector.shape_cast %69 : vector<1x1x128xf32> to vector<1x128xf32>
    %71 = vector.broadcast %70 : vector<1x128xf32> to vector<8x128xf32>
    %72 = arith.addf %68, %71 : vector<8x128xf32>
    %cst_60 = arith.constant 0.353553385 : f32
    %73 = vector.broadcast %cst_60 : f32 to vector<8x128xf32>
    %74 = arith.mulf %72, %73 : vector<8x128xf32>
    %c1_61 = arith.constant 1 : index
    %c0_62 = arith.constant 0 : index
    %c0_63 = arith.constant 0 : index
    %75 = vector.load %arg4[%c1_61, %c0_62, %c0_63] : memref<4x128x128xf32, #tpu.memory_space<vmem>>, vector<1x128x128xf32>
    %76 = vector.shape_cast %75 : vector<1x128x128xf32> to vector<128x128xf32>
    %cst_64 = arith.constant dense<0.000000e+00> : vector<128x128xf32>
    %77 = tpu.matmul %3, %76, %cst_64 {dimension_numbers = #tpu.dot_dimension_numbers<[1], [0], [0], [1], [0, 0, 1, 1], [], []>} : vector<128x128xf32>, vector<128x128xf32>, vector<128x128xf32> -> vector<128x128xf32>
    %c1_65 = arith.constant 1 : index
    %c0_66 = arith.constant 0 : index
    %c0_67 = arith.constant 0 : index
    %78 = vector.load %arg8[%c1_65, %c0_66, %c0_67] : memref<4x1x128xf32, #tpu.memory_space<vmem>>, vector<1x1x128xf32>
    %79 = vector.shape_cast %78 : vector<1x1x128xf32> to vector<1x128xf32>
    %80 = vector.broadcast %79 : vector<1x128xf32> to vector<128x128xf32>
    %81 = arith.addf %77, %80 : vector<128x128xf32>
    %c1_68 = arith.constant 1 : index
    %c0_69 = arith.constant 0 : index
    %c0_70 = arith.constant 0 : index
    %82 = vector.load %arg5[%c1_68, %c0_69, %c0_70] : memref<4x128x128xf32, #tpu.memory_space<vmem>>, vector<1x128x128xf32>
    %83 = vector.shape_cast %82 : vector<1x128x128xf32> to vector<128x128xf32>
    %cst_71 = arith.constant dense<0.000000e+00> : vector<128x128xf32>
    %84 = tpu.matmul %3, %83, %cst_71 {dimension_numbers = #tpu.dot_dimension_numbers<[1], [0], [0], [1], [0, 0, 1, 1], [], []>} : vector<128x128xf32>, vector<128x128xf32>, vector<128x128xf32> -> vector<128x128xf32>
    %c1_72 = arith.constant 1 : index
    %c0_73 = arith.constant 0 : index
    %c0_74 = arith.constant 0 : index
    %85 = vector.load %arg9[%c1_72, %c0_73, %c0_74] : memref<4x1x128xf32, #tpu.memory_space<vmem>>, vector<1x1x128xf32>
    %86 = vector.shape_cast %85 : vector<1x1x128xf32> to vector<1x128xf32>
    %87 = vector.broadcast %86 : vector<1x128xf32> to vector<128x128xf32>
    %88 = arith.addf %84, %87 : vector<128x128xf32>
    %89 = vector.shape_cast %74 : vector<8x128xf32> to vector<1x8x128xf32>
    %90 = vector.shape_cast %81 : vector<128x128xf32> to vector<1x128x128xf32>
    %91 = vector.shape_cast %88 : vector<128x128xf32> to vector<1x128x128xf32>
    "tpu.trace_start"() <{level = 10 : i32, message = "bqd,bkd->bqk"}> : () -> ()
    %cst_75 = arith.constant dense<0.000000e+00> : vector<1x8x128xf32>
    %92 = tpu.matmul %89, %90, %cst_75 {dimension_numbers = #tpu.dot_dimension_numbers<[2], [2], [1], [1], [0, 0, 0, 1, 1, 1], [0], [0]>} : vector<1x8x128xf32>, vector<1x128x128xf32>, vector<1x8x128xf32> -> vector<1x8x128xf32>
    "tpu.trace_stop"() : () -> ()
    %93 = vector.broadcast %9 : vector<1x1x128xf32> to vector<1x8x128xf32>
    %94 = arith.addf %92, %93 : vector<1x8x128xf32>
    %cst_76 = arith.constant dense<0xFF800000> : vector<1x8xf32>
    %95 = vector.multi_reduction <maximumf>, %94, %cst_76 [2] : vector<1x8x128xf32> to vector<1x8xf32>
    %96 = vector.shape_cast %95 : vector<1x8xf32> to vector<1x8x1xf32>
    %97 = vector.broadcast %96 : vector<1x8x1xf32> to vector<1x8x128xf32>
    %98 = arith.subf %94, %97 : vector<1x8x128xf32>
    %99 = math.exp %98 : vector<1x8x128xf32>
    %cst_77 = arith.constant dense<0.000000e+00> : vector<1x8xf32>
    %100 = vector.multi_reduction <add>, %99, %cst_77 [2] : vector<1x8x128xf32> to vector<1x8xf32>
    %101 = vector.shape_cast %100 : vector<1x8xf32> to vector<1x8x1xf32>
    %102 = tpu.reciprocal %101 : vector<1x8x1xf32> -> vector<1x8x1xf32>
    %103 = vector.broadcast %102 : vector<1x8x1xf32> to vector<1x8x128xf32>
    %104 = arith.mulf %99, %103 : vector<1x8x128xf32>
    %c0_78 = arith.constant 0 : index
    %c0_79 = arith.constant 0 : index
    %c0_80 = arith.constant 0 : index
    %105 = vector.load %arg12[%c0_78, %c0_79, %c0_80] : memref<1x8x128xf32, #tpu.memory_space<vmem>>, vector<1x8x128xf32>
    %106 = arith.addf %105, %104 : vector<1x8x128xf32>
    %c0_81 = arith.constant 0 : index
    %c0_82 = arith.constant 0 : index
    %c0_83 = arith.constant 0 : index
    %107 = vector.load %arg12[%c0_81, %c0_82, %c0_83] : memref<1x8x128xf32, #tpu.memory_space<vmem>>, vector<1x8x128xf32>
    tpu.vector_store %arg12[%c0_81, %c0_82, %c0_83], %106 {strides = array<i32>} : memref<1x8x128xf32, #tpu.memory_space<vmem>>, vector<1x8x128xf32>,
    "tpu.trace_start"() <{level = 10 : i32, message = "bqk,bkd->bqd"}> : () -> ()
    %cst_84 = arith.constant dense<0.000000e+00> : vector<1x8x128xf32>
    %108 = tpu.matmul %104, %91, %cst_84 {dimension_numbers = #tpu.dot_dimension_numbers<[2], [1], [1], [2], [0, 0, 0, 1, 1, 2], [0], [0]>} : vector<1x8x128xf32>, vector<1x128x128xf32>, vector<1x8x128xf32> -> vector<1x8x128xf32>
    "tpu.trace_stop"() : () -> ()
    %c0_85 = arith.constant 0 : index
    %c0_86 = arith.constant 0 : index
    %109 = vector.load %arg13[%c0_85, %c0_86] : memref<8x128xf32, #tpu.memory_space<vmem>>, vector<8x128xf32>
    %110 = vector.shape_cast %108 : vector<1x8x128xf32> to vector<8x128xf32>
    %c1_87 = arith.constant 1 : index
    %c0_88 = arith.constant 0 : index
    %c0_89 = arith.constant 0 : index
    %111 = vector.load %arg6[%c1_87, %c0_88, %c0_89] : memref<4x128x128xf32, #tpu.memory_space<vmem>>, vector<1x128x128xf32>
    %112 = vector.shape_cast %111 : vector<1x128x128xf32> to vector<128x128xf32>
    %cst_90 = arith.constant dense<0.000000e+00> : vector<8x128xf32>
    %113 = tpu.matmul %110, %112, %cst_90 {dimension_numbers = #tpu.dot_dimension_numbers<[1], [0], [0], [1], [0, 0, 1, 1], [], []>} : vector<8x128xf32>, vector<128x128xf32>, vector<8x128xf32> -> vector<8x128xf32>
    %114 = arith.addf %109, %113 : vector<8x128xf32>
    %c0_91 = arith.constant 0 : index
    %c0_92 = arith.constant 0 : index
    %115 = vector.load %arg13[%c0_91, %c0_92] : memref<8x128xf32, #tpu.memory_space<vmem>>, vector<8x128xf32>
    tpu.vector_store %arg13[%c0_91, %c0_92], %114 {strides = array<i32>} : memref<8x128xf32, #tpu.memory_space<vmem>>, vector<8x128xf32>,
    %c2 = arith.constant 2 : index
    %c0_93 = arith.constant 0 : index
    %c0_94 = arith.constant 0 : index
    %116 = vector.load %arg3[%c2, %c0_93, %c0_94] : memref<4x128x128xf32, #tpu.memory_space<vmem>>, vector<1x128x128xf32>
    %117 = vector.shape_cast %116 : vector<1x128x128xf32> to vector<128x128xf32>
    %cst_95 = arith.constant dense<0.000000e+00> : vector<8x128xf32>
    %118 = tpu.matmul %1, %117, %cst_95 {dimension_numbers = #tpu.dot_dimension_numbers<[1], [0], [0], [1], [0, 0, 1, 1], [], []>} : vector<8x128xf32>, vector<128x128xf32>, vector<8x128xf32> -> vector<8x128xf32>
    %c2_96 = arith.constant 2 : index
    %c0_97 = arith.constant 0 : index
    %c0_98 = arith.constant 0 : index
    %119 = vector.load %arg7[%c2_96, %c0_97, %c0_98] : memref<4x1x128xf32, #tpu.memory_space<vmem>>, vector<1x1x128xf32>
    %120 = vector.shape_cast %119 : vector<1x1x128xf32> to vector<1x128xf32>
    %121 = vector.broadcast %120 : vector<1x128xf32> to vector<8x128xf32>
    %122 = arith.addf %118, %121 : vector<8x128xf32>
    %cst_99 = arith.constant 0.353553385 : f32
    %123 = vector.broadcast %cst_99 : f32 to vector<8x128xf32>
    %124 = arith.mulf %122, %123 : vector<8x128xf32>
    %c2_100 = arith.constant 2 : index
    %c0_101 = arith.constant 0 : index
    %c0_102 = arith.constant 0 : index
    %125 = vector.load %arg4[%c2_100, %c0_101, %c0_102] : memref<4x128x128xf32, #tpu.memory_space<vmem>>, vector<1x128x128xf32>
    %126 = vector.shape_cast %125 : vector<1x128x128xf32> to vector<128x128xf32>
    %cst_103 = arith.constant dense<0.000000e+00> : vector<128x128xf32>
    %127 = tpu.matmul %3, %126, %cst_103 {dimension_numbers = #tpu.dot_dimension_numbers<[1], [0], [0], [1], [0, 0, 1, 1], [], []>} : vector<128x128xf32>, vector<128x128xf32>, vector<128x128xf32> -> vector<128x128xf32>
    %c2_104 = arith.constant 2 : index
    %c0_105 = arith.constant 0 : index
    %c0_106 = arith.constant 0 : index
    %128 = vector.load %arg8[%c2_104, %c0_105, %c0_106] : memref<4x1x128xf32, #tpu.memory_space<vmem>>, vector<1x1x128xf32>
    %129 = vector.shape_cast %128 : vector<1x1x128xf32> to vector<1x128xf32>
    %130 = vector.broadcast %129 : vector<1x128xf32> to vector<128x128xf32>
    %131 = arith.addf %127, %130 : vector<128x128xf32>
    %c2_107 = arith.constant 2 : index
    %c0_108 = arith.constant 0 : index
    %c0_109 = arith.constant 0 : index
    %132 = vector.load %arg5[%c2_107, %c0_108, %c0_109] : memref<4x128x128xf32, #tpu.memory_space<vmem>>, vector<1x128x128xf32>
    %133 = vector.shape_cast %132 : vector<1x128x128xf32> to vector<128x128xf32>
    %cst_110 = arith.constant dense<0.000000e+00> : vector<128x128xf32>
    %134 = tpu.matmul %3, %133, %cst_110 {dimension_numbers = #tpu.dot_dimension_numbers<[1], [0], [0], [1], [0, 0, 1, 1], [], []>} : vector<128x128xf32>, vector<128x128xf32>, vector<128x128xf32> -> vector<128x128xf32>
    %c2_111 = arith.constant 2 : index
    %c0_112 = arith.constant 0 : index
    %c0_113 = arith.constant 0 : index
    %135 = vector.load %arg9[%c2_111, %c0_112, %c0_113] : memref<4x1x128xf32, #tpu.memory_space<vmem>>, vector<1x1x128xf32>
    %136 = vector.shape_cast %135 : vector<1x1x128xf32> to vector<1x128xf32>
    %137 = vector.broadcast %136 : vector<1x128xf32> to vector<128x128xf32>
    %138 = arith.addf %134, %137 : vector<128x128xf32>
    %139 = vector.shape_cast %124 : vector<8x128xf32> to vector<1x8x128xf32>
    %140 = vector.shape_cast %131 : vector<128x128xf32> to vector<1x128x128xf32>
    %141 = vector.shape_cast %138 : vector<128x128xf32> to vector<1x128x128xf32>
    "tpu.trace_start"() <{level = 10 : i32, message = "bqd,bkd->bqk"}> : () -> ()
    %cst_114 = arith.constant dense<0.000000e+00> : vector<1x8x128xf32>
    %142 = tpu.matmul %139, %140, %cst_114 {dimension_numbers = #tpu.dot_dimension_numbers<[2], [2], [1], [1], [0, 0, 0, 1, 1, 1], [0], [0]>} : vector<1x8x128xf32>, vector<1x128x128xf32>, vector<1x8x128xf32> -> vector<1x8x128xf32>
    "tpu.trace_stop"() : () -> ()
    %143 = vector.broadcast %9 : vector<1x1x128xf32> to vector<1x8x128xf32>
    %144 = arith.addf %142, %143 : vector<1x8x128xf32>
    %cst_115 = arith.constant dense<0xFF800000> : vector<1x8xf32>
    %145 = vector.multi_reduction <maximumf>, %144, %cst_115 [2] : vector<1x8x128xf32> to vector<1x8xf32>
    %146 = vector.shape_cast %145 : vector<1x8xf32> to vector<1x8x1xf32>
    %147 = vector.broadcast %146 : vector<1x8x1xf32> to vector<1x8x128xf32>
    %148 = arith.subf %144, %147 : vector<1x8x128xf32>
    %149 = math.exp %148 : vector<1x8x128xf32>
    %cst_116 = arith.constant dense<0.000000e+00> : vector<1x8xf32>
    %150 = vector.multi_reduction <add>, %149, %cst_116 [2] : vector<1x8x128xf32> to vector<1x8xf32>
    %151 = vector.shape_cast %150 : vector<1x8xf32> to vector<1x8x1xf32>
    %152 = tpu.reciprocal %151 : vector<1x8x1xf32> -> vector<1x8x1xf32>
    %153 = vector.broadcast %152 : vector<1x8x1xf32> to vector<1x8x128xf32>
    %154 = arith.mulf %149, %153 : vector<1x8x128xf32>
    %c0_117 = arith.constant 0 : index
    %c0_118 = arith.constant 0 : index
    %c0_119 = arith.constant 0 : index
    %155 = vector.load %arg12[%c0_117, %c0_118, %c0_119] : memref<1x8x128xf32, #tpu.memory_space<vmem>>, vector<1x8x128xf32>
    %156 = arith.addf %155, %154 : vector<1x8x128xf32>
    %c0_120 = arith.constant 0 : index
    %c0_121 = arith.constant 0 : index
    %c0_122 = arith.constant 0 : index
    %157 = vector.load %arg12[%c0_120, %c0_121, %c0_122] : memref<1x8x128xf32, #tpu.memory_space<vmem>>, vector<1x8x128xf32>
    tpu.vector_store %arg12[%c0_120, %c0_121, %c0_122], %156 {strides = array<i32>} : memref<1x8x128xf32, #tpu.memory_space<vmem>>, vector<1x8x128xf32>,
    "tpu.trace_start"() <{level = 10 : i32, message = "bqk,bkd->bqd"}> : () -> ()
    %cst_123 = arith.constant dense<0.000000e+00> : vector<1x8x128xf32>
    %158 = tpu.matmul %154, %141, %cst_123 {dimension_numbers = #tpu.dot_dimension_numbers<[2], [1], [1], [2], [0, 0, 0, 1, 1, 2], [0], [0]>} : vector<1x8x128xf32>, vector<1x128x128xf32>, vector<1x8x128xf32> -> vector<1x8x128xf32>
    "tpu.trace_stop"() : () -> ()
    %c0_124 = arith.constant 0 : index
    %c0_125 = arith.constant 0 : index
    %159 = vector.load %arg13[%c0_124, %c0_125] : memref<8x128xf32, #tpu.memory_space<vmem>>, vector<8x128xf32>
    %160 = vector.shape_cast %158 : vector<1x8x128xf32> to vector<8x128xf32>
    %c2_126 = arith.constant 2 : index
    %c0_127 = arith.constant 0 : index
    %c0_128 = arith.constant 0 : index
    %161 = vector.load %arg6[%c2_126, %c0_127, %c0_128] : memref<4x128x128xf32, #tpu.memory_space<vmem>>, vector<1x128x128xf32>
    %162 = vector.shape_cast %161 : vector<1x128x128xf32> to vector<128x128xf32>
    %cst_129 = arith.constant dense<0.000000e+00> : vector<8x128xf32>
    %163 = tpu.matmul %160, %162, %cst_129 {dimension_numbers = #tpu.dot_dimension_numbers<[1], [0], [0], [1], [0, 0, 1, 1], [], []>} : vector<8x128xf32>, vector<128x128xf32>, vector<8x128xf32> -> vector<8x128xf32>
    %164 = arith.addf %159, %163 : vector<8x128xf32>
    %c0_130 = arith.constant 0 : index
    %c0_131 = arith.constant 0 : index
    %165 = vector.load %arg13[%c0_130, %c0_131] : memref<8x128xf32, #tpu.memory_space<vmem>>, vector<8x128xf32>
    tpu.vector_store %arg13[%c0_130, %c0_131], %164 {strides = array<i32>} : memref<8x128xf32, #tpu.memory_space<vmem>>, vector<8x128xf32>,
    %c3 = arith.constant 3 : index
    %c0_132 = arith.constant 0 : index
    %c0_133 = arith.constant 0 : index
    %166 = vector.load %arg3[%c3, %c0_132, %c0_133] : memref<4x128x128xf32, #tpu.memory_space<vmem>>, vector<1x128x128xf32>
    %167 = vector.shape_cast %166 : vector<1x128x128xf32> to vector<128x128xf32>
    %cst_134 = arith.constant dense<0.000000e+00> : vector<8x128xf32>
    %168 = tpu.matmul %1, %167, %cst_134 {dimension_numbers = #tpu.dot_dimension_numbers<[1], [0], [0], [1], [0, 0, 1, 1], [], []>} : vector<8x128xf32>, vector<128x128xf32>, vector<8x128xf32> -> vector<8x128xf32>
    %c3_135 = arith.constant 3 : index
    %c0_136 = arith.constant 0 : index
    %c0_137 = arith.constant 0 : index
    %169 = vector.load %arg7[%c3_135, %c0_136, %c0_137] : memref<4x1x128xf32, #tpu.memory_space<vmem>>, vector<1x1x128xf32>
    %170 = vector.shape_cast %169 : vector<1x1x128xf32> to vector<1x128xf32>
    %171 = vector.broadcast %170 : vector<1x128xf32> to vector<8x128xf32>
    %172 = arith.addf %168, %171 : vector<8x128xf32>
    %cst_138 = arith.constant 0.353553385 : f32
    %173 = vector.broadcast %cst_138 : f32 to vector<8x128xf32>
    %174 = arith.mulf %172, %173 : vector<8x128xf32>
    %c3_139 = arith.constant 3 : index
    %c0_140 = arith.constant 0 : index
    %c0_141 = arith.constant 0 : index
    %175 = vector.load %arg4[%c3_139, %c0_140, %c0_141] : memref<4x128x128xf32, #tpu.memory_space<vmem>>, vector<1x128x128xf32>
    %176 = vector.shape_cast %175 : vector<1x128x128xf32> to vector<128x128xf32>
    %cst_142 = arith.constant dense<0.000000e+00> : vector<128x128xf32>
    %177 = tpu.matmul %3, %176, %cst_142 {dimension_numbers = #tpu.dot_dimension_numbers<[1], [0], [0], [1], [0, 0, 1, 1], [], []>} : vector<128x128xf32>, vector<128x128xf32>, vector<128x128xf32> -> vector<128x128xf32>
    %c3_143 = arith.constant 3 : index
    %c0_144 = arith.constant 0 : index
    %c0_145 = arith.constant 0 : index
    %178 = vector.load %arg8[%c3_143, %c0_144, %c0_145] : memref<4x1x128xf32, #tpu.memory_space<vmem>>, vector<1x1x128xf32>
    %179 = vector.shape_cast %178 : vector<1x1x128xf32> to vector<1x128xf32>
    %180 = vector.broadcast %179 : vector<1x128xf32> to vector<128x128xf32>
    %181 = arith.addf %177, %180 : vector<128x128xf32>
    %c3_146 = arith.constant 3 : index
    %c0_147 = arith.constant 0 : index
    %c0_148 = arith.constant 0 : index
    %182 = vector.load %arg5[%c3_146, %c0_147, %c0_148] : memref<4x128x128xf32, #tpu.memory_space<vmem>>, vector<1x128x128xf32>
    %183 = vector.shape_cast %182 : vector<1x128x128xf32> to vector<128x128xf32>
    %cst_149 = arith.constant dense<0.000000e+00> : vector<128x128xf32>
    %184 = tpu.matmul %3, %183, %cst_149 {dimension_numbers = #tpu.dot_dimension_numbers<[1], [0], [0], [1], [0, 0, 1, 1], [], []>} : vector<128x128xf32>, vector<128x128xf32>, vector<128x128xf32> -> vector<128x128xf32>
    %c3_150 = arith.constant 3 : index
    %c0_151 = arith.constant 0 : index
    %c0_152 = arith.constant 0 : index
    %185 = vector.load %arg9[%c3_150, %c0_151, %c0_152] : memref<4x1x128xf32, #tpu.memory_space<vmem>>, vector<1x1x128xf32>
    %186 = vector.shape_cast %185 : vector<1x1x128xf32> to vector<1x128xf32>
    %187 = vector.broadcast %186 : vector<1x128xf32> to vector<128x128xf32>
    %188 = arith.addf %184, %187 : vector<128x128xf32>
    %189 = vector.shape_cast %174 : vector<8x128xf32> to vector<1x8x128xf32>
    %190 = vector.shape_cast %181 : vector<128x128xf32> to vector<1x128x128xf32>
    %191 = vector.shape_cast %188 : vector<128x128xf32> to vector<1x128x128xf32>
    "tpu.trace_start"() <{level = 10 : i32, message = "bqd,bkd->bqk"}> : () -> ()
    %cst_153 = arith.constant dense<0.000000e+00> : vector<1x8x128xf32>
    %192 = tpu.matmul %189, %190, %cst_153 {dimension_numbers = #tpu.dot_dimension_numbers<[2], [2], [1], [1], [0, 0, 0, 1, 1, 1], [0], [0]>} : vector<1x8x128xf32>, vector<1x128x128xf32>, vector<1x8x128xf32> -> vector<1x8x128xf32>
    "tpu.trace_stop"() : () -> ()
    %193 = vector.broadcast %9 : vector<1x1x128xf32> to vector<1x8x128xf32>
    %194 = arith.addf %192, %193 : vector<1x8x128xf32>
    %cst_154 = arith.constant dense<0xFF800000> : vector<1x8xf32>
    %195 = vector.multi_reduction <maximumf>, %194, %cst_154 [2] : vector<1x8x128xf32> to vector<1x8xf32>
    %196 = vector.shape_cast %195 : vector<1x8xf32> to vector<1x8x1xf32>
    %197 = vector.broadcast %196 : vector<1x8x1xf32> to vector<1x8x128xf32>
    %198 = arith.subf %194, %197 : vector<1x8x128xf32>
    %199 = math.exp %198 : vector<1x8x128xf32>
    %cst_155 = arith.constant dense<0.000000e+00> : vector<1x8xf32>
    %200 = vector.multi_reduction <add>, %199, %cst_155 [2] : vector<1x8x128xf32> to vector<1x8xf32>
    %201 = vector.shape_cast %200 : vector<1x8xf32> to vector<1x8x1xf32>
    %202 = tpu.reciprocal %201 : vector<1x8x1xf32> -> vector<1x8x1xf32>
    %203 = vector.broadcast %202 : vector<1x8x1xf32> to vector<1x8x128xf32>
    %204 = arith.mulf %199, %203 : vector<1x8x128xf32>
    %c0_156 = arith.constant 0 : index
    %c0_157 = arith.constant 0 : index
    %c0_158 = arith.constant 0 : index
    %205 = vector.load %arg12[%c0_156, %c0_157, %c0_158] : memref<1x8x128xf32, #tpu.memory_space<vmem>>, vector<1x8x128xf32>
    %206 = arith.addf %205, %204 : vector<1x8x128xf32>
    %c0_159 = arith.constant 0 : index
    %c0_160 = arith.constant 0 : index
    %c0_161 = arith.constant 0 : index
    %207 = vector.load %arg12[%c0_159, %c0_160, %c0_161] : memref<1x8x128xf32, #tpu.memory_space<vmem>>, vector<1x8x128xf32>
    tpu.vector_store %arg12[%c0_159, %c0_160, %c0_161], %206 {strides = array<i32>} : memref<1x8x128xf32, #tpu.memory_space<vmem>>, vector<1x8x128xf32>,
    "tpu.trace_start"() <{level = 10 : i32, message = "bqk,bkd->bqd"}> : () -> ()
    %cst_162 = arith.constant dense<0.000000e+00> : vector<1x8x128xf32>
    %208 = tpu.matmul %204, %191, %cst_162 {dimension_numbers = #tpu.dot_dimension_numbers<[2], [1], [1], [2], [0, 0, 0, 1, 1, 2], [0], [0]>} : vector<1x8x128xf32>, vector<1x128x128xf32>, vector<1x8x128xf32> -> vector<1x8x128xf32>
    "tpu.trace_stop"() : () -> ()
    %c0_163 = arith.constant 0 : index
    %c0_164 = arith.constant 0 : index
    %209 = vector.load %arg13[%c0_163, %c0_164] : memref<8x128xf32, #tpu.memory_space<vmem>>, vector<8x128xf32>
    %210 = vector.shape_cast %208 : vector<1x8x128xf32> to vector<8x128xf32>
    %c3_165 = arith.constant 3 : index
    %c0_166 = arith.constant 0 : index
    %c0_167 = arith.constant 0 : index
    %211 = vector.load %arg6[%c3_165, %c0_166, %c0_167] : memref<4x128x128xf32, #tpu.memory_space<vmem>>, vector<1x128x128xf32>
    %212 = vector.shape_cast %211 : vector<1x128x128xf32> to vector<128x128xf32>
    %cst_168 = arith.constant dense<0.000000e+00> : vector<8x128xf32>
    %213 = tpu.matmul %210, %212, %cst_168 {dimension_numbers = #tpu.dot_dimension_numbers<[1], [0], [0], [1], [0, 0, 1, 1], [], []>} : vector<8x128xf32>, vector<128x128xf32>, vector<8x128xf32> -> vector<8x128xf32>
    %214 = arith.addf %209, %213 : vector<8x128xf32>
    %c0_169 = arith.constant 0 : index
    %c0_170 = arith.constant 0 : index
    %215 = vector.load %arg13[%c0_169, %c0_170] : memref<8x128xf32, #tpu.memory_space<vmem>>, vector<8x128xf32>
    tpu.vector_store %arg13[%c0_169, %c0_170], %214 {strides = array<i32>} : memref<8x128xf32, #tpu.memory_space<vmem>>, vector<8x128xf32>,
    %c0_171 = arith.constant 0 : index
    %c0_172 = arith.constant 0 : index
    %216 = vector.load %arg13[%c0_171, %c0_172] : memref<8x128xf32, #tpu.memory_space<vmem>>, vector<8x128xf32>
    %217 = vector.shape_cast %216 : vector<8x128xf32> to vector<1x8x128xf32>
    %c0_173 = arith.constant 0 : index
    %c0_174 = arith.constant 0 : index
    %c0_175 = arith.constant 0 : index
    %218 = vector.load %arg11[%c0_173, %c0_174, %c0_175] : memref<1x8x128xf32, #tpu.memory_space<vmem>>, vector<1x8x128xf32>
    tpu.vector_store %arg11[%c0_173, %c0_174, %c0_175], %217 {strides = array<i32>} : memref<1x8x128xf32, #tpu.memory_space<vmem>>, vector<1x8x128xf32>,
    %c0_176 = arith.constant 0 : index
    %c0_177 = arith.constant 0 : index
    %c0_178 = arith.constant 0 : index
    %219 = vector.load %arg12[%c0_176, %c0_177, %c0_178] : memref<1x8x128xf32, #tpu.memory_space<vmem>>, vector<1x8x128xf32>
    %cst_179 = arith.constant 2.500000e-01 : f32
    %220 = vector.broadcast %cst_179 : f32 to vector<1x8x128xf32>
    %221 = arith.mulf %219, %220 : vector<1x8x128xf32>
    %c0_180 = arith.constant 0 : index
    %c0_181 = arith.constant 0 : index
    %c0_182 = arith.constant 0 : index
    %222 = vector.load %arg12[%c0_180, %c0_181, %c0_182] : memref<1x8x128xf32, #tpu.memory_space<vmem>>, vector<1x8x128xf32>
    tpu.vector_store %arg12[%c0_180, %c0_181, %c0_182], %221 {strides = array<i32>} : memref<1x8x128xf32, #tpu.memory_space<vmem>>, vector<1x8x128xf32>,
    return
  }
  func.func @transform_0(%arg0: i32) -> (i32, i32, i32) {
    %c0_i32 = arith.constant 0 : i32
    %c0_i32_0 = arith.constant 0 : i32
    %c0_i32_1 = arith.constant 0 : i32
    return %arg0, %c0_i32, %c0_i32_0 : i32, i32, i32
  }
  func.func @transform_1(%arg0: i32) -> (i32, i32, i32) {
    %c0_i32 = arith.constant 0 : i32
    %c0_i32_0 = arith.constant 0 : i32
    %c0_i32_1 = arith.constant 0 : i32
    return %arg0, %c0_i32, %c0_i32_0 : i32, i32, i32
  }
  func.func @transform_2(%arg0: i32) -> (i32, i32, i32) {
    %c0_i32 = arith.constant 0 : i32
    %c0_i32_0 = arith.constant 0 : i32
    %c0_i32_1 = arith.constant 0 : i32
    %c0_i32_2 = arith.constant 0 : i32
    return %c0_i32, %c0_i32_0, %c0_i32_1 : i32, i32, i32
  }
  func.func @transform_3(%arg0: i32) -> (i32, i32, i32) {
    %c0_i32 = arith.constant 0 : i32
    %c0_i32_0 = arith.constant 0 : i32
    %c0_i32_1 = arith.constant 0 : i32
    %c0_i32_2 = arith.constant 0 : i32
    return %c0_i32, %c0_i32_0, %c0_i32_1 : i32, i32, i32
  }
  func.func @transform_4(%arg0: i32) -> (i32, i32, i32) {
    %c0_i32 = arith.constant 0 : i32
    %c0_i32_0 = arith.constant 0 : i32
    %c0_i32_1 = arith.constant 0 : i32
    %c0_i32_2 = arith.constant 0 : i32
    return %c0_i32, %c0_i32_0, %c0_i32_1 : i32, i32, i32
  }
  func.func @transform_5(%arg0: i32) -> (i32, i32, i32) {
    %c0_i32 = arith.constant 0 : i32
    %c0_i32_0 = arith.constant 0 : i32
    %c0_i32_1 = arith.constant 0 : i32
    %c0_i32_2 = arith.constant 0 : i32
    return %c0_i32, %c0_i32_0, %c0_i32_1 : i32, i32, i32
  }
  func.func @transform_6(%arg0: i32) -> (i32, i32, i32) {
    %c0_i32 = arith.constant 0 : i32
    %c0_i32_0 = arith.constant 0 : i32
    %c0_i32_1 = arith.constant 0 : i32
    %c0_i32_2 = arith.constant 0 : i32
    return %c0_i32, %c0_i32_0, %c0_i32_1 : i32, i32, i32
  }
  func.func @transform_7(%arg0: i32) -> (i32, i32, i32) {
    %c0_i32 = arith.constant 0 : i32
    %c0_i32_0 = arith.constant 0 : i32
    %c0_i32_1 = arith.constant 0 : i32
    %c0_i32_2 = arith.constant 0 : i32
    return %c0_i32, %c0_i32_0, %c0_i32_1 : i32, i32, i32
  }
  func.func @transform_8(%arg0: i32) -> (i32, i32, i32) {
    %c0_i32 = arith.constant 0 : i32
    %c0_i32_0 = arith.constant 0 : i32
    %c0_i32_1 = arith.constant 0 : i32
    %c0_i32_2 = arith.constant 0 : i32
    return %c0_i32, %c0_i32_0, %c0_i32_1 : i32, i32, i32
  }
  func.func @transform_9(%arg0: i32) -> (i32, i32) {
    %c0_i32 = arith.constant 0 : i32
    %c0_i32_0 = arith.constant 0 : i32
    %c0_i32_1 = arith.constant 0 : i32
    return %c0_i32, %c0_i32_0 : i32, i32
  }
  func.func @transform_10(%arg0: i32) -> (i32, i32, i32) {
    %c0_i32 = arith.constant 0 : i32
    %c0_i32_0 = arith.constant 0 : i32
    %c0_i32_1 = arith.constant 0 : i32
    return %arg0, %c0_i32, %c0_i32_0 : i32, i32, i32
  }
  func.func @transform_11(%arg0: i32) -> (i32, i32, i32) {
    %c0_i32 = arith.constant 0 : i32
    %c0_i32_0 = arith.constant 0 : i32
    %c0_i32_1 = arith.constant 0 : i32
    return %arg0, %c0_i32, %c0_i32_0 : i32, i32, i32
  }
}

</mosaic_0001>

<bundles_post_ra>
// kernel: tpu_custom_call.1
= control target key start
LH: loop header
LB: loop body
LE: loop exit
PB: predicated region body
PF: predicated region fallthrough
CT: control target
= control target key end

     0   :  { %s7011_s0 = inlined_call_operand.hbm [shape: f32[2,8,128], index: 0, kind: input, shape index: {}]   ;;  %s7012_s1 = inlined_call_operand.hbm [shape: f32[2,128,128], index: 1, kind: input, shape index: {}]   ;;  %s7013_s2 = inlined_call_operand.hbm [shape: f32[4,128,128], index: 2, kind: input, shape index: {}]   ;;  %s7014_s3 = inlined_call_operand.hbm [shape: f32[4,128,128], index: 3, kind: input, shape index: {}]   ;;  %s7015_s4 = inlined_call_operand.hbm [shape: f32[4,128,128], index: 4, kind: input, shape index: {}]   ;;  %s7016_s5 = inlined_call_operand.hbm [shape: f32[4,128,128], index: 5, kind: input, shape index: {}]   ;;  %s7017_s6 = inlined_call_operand.vmem [shape: f32[4,1,128], index: 6, kind: input, shape index: {}]   ;;  %s7018_s7 = inlined_call_operand.vmem [shape: f32[4,1,128], index: 7, kind: input, shape index: {}]   ;;  %s7019_s8 = inlined_call_operand.vmem [shape: f32[4,1,128], index: 8, kind: input, shape index: {}]   ;;  %s7020_s9 = inlined_call_operand.vmem [shape: f32[1,128], index: 9, kind: input, shape index: {}]   ;;  %s7021_s10 = inlined_call_operand.hbm [shape: f32[2,8,128], index: 10, kind: output, shape index: {0}]   ;;  %s7022_s11 = inlined_call_operand.hbm [shape: f32[2,8,128], index: 11, kind: output, shape index: {1}]  }
   0x1   :  { %7030 = sst [smem:[#allocation24_spill]] %s7011_s0 }
   0x2   :  { %7031 = sst [smem:[#allocation25_spill]] %s7013_s2 }
   0x3   :  { %7032 = sst [smem:[#allocation26_spill]] %s7014_s3 }
   0x4   :  { %7033 = sst [smem:[#allocation27_spill]] %s7015_s4 }
   0x5   :  { %7034 = sst [smem:[#allocation28_spill]] %s7020_s9 }
   0x6   :  { %7035 = sst [smem:[#allocation29_spill]] %s7021_s10 }
   0x7   :  { %7036 = sst [smem:[#allocation30_spill]] %s7022_s11 }
   0x8   :  { %17 = vsyncpa [#allocation4], 0 }
   0x9   :  { %19 = vsyncpa [#allocation4 + $0x1], 0 }
   0xa   :  { %20 = vsyncpa [#allocation7], 0 }
   0xb   :  { %22 = vsyncpa [#allocation7 + $0x1], 0 }
   0xc   :  { %23 = vsyncpa [#allocation10], 0 }
   0xd   :  { %24 = vsyncpa [#allocation13], 0 }
   0xe   :  { %25 = vsyncpa [#allocation5], 0 }
   0xf   :  { %27 = vsyncpa [#allocation5 + $0x1], 0 }
  0x10   :  { %28 = vsyncpa [#allocation16], 0 }
  0x11   :  { %30 = vsyncpa [#allocation16 + $0x1], 0  ;;  %s6177_s17 = smov 0   ;;  %s6179_s18 = smov 0  }
  0x12   :  { %s6181_s19 = smov 0   ;;  %s6183_s20 = smov 0  }
  0x13 LB: > { %s6103_s21 = smov [#allocation8]   ;;  %s6198_s23 = sadd.s32 4294967295, %s6101_s20   ;;  %s6101_s20 = sphi %s6183_s20, %s7069_s20   ;;  %s6097_s19 = sphi %s6181_s19, %s7068_s19   ;;  %s6093_s18 = sphi %s6179_s18, %s7067_s18   ;;  %s6089_s17 = sphi %s6177_s17, %s7066_s17  }
  0x14   : > { %s325_s22 = sshll.u32 %s6103_s21, 4  ;;  %p3447_p0 = scmp.ge.s32.totalorder %s6101_s20, 1  ;;  %s6203_s22 = int_to_ptr.vmem [resolvable:$true] %s325_s22 }
  0x15   : > { %p7025_p1 = scmp.eq.s32.totalorder %s6198_s23, 0  ;;  %p313_p2 = scmp.lt.s32.totalorder %s6101_s20, 3 }
  0x16   : > { %s6104_s25 = smov [#allocation9]   ;;  %s6105_s28 = smov [#allocation11]  }
  0x17   : > { %p6205_p3 = pnand %p3447_p0, %p313_p2  ;;  %s338_s26 = sshll.u32 %s6104_s25, 4  ;;  %s6218_s26 = int_to_ptr.vmem [resolvable:$true] %s338_s26 }
  0x18   : > { %s351_s29 = sshll.u32 %s6105_s28, 4  ;;  %s7039_s2 = sld [smem:[#allocation25_spill]]  ;;  %s6220_s29 = int_to_ptr.vmem [resolvable:$true] %s351_s29 }
  0x19   : > { %s7037_s24 = scalar_select %p6205_p3, 1, 0 }
  0x1a   : > { %p5703_p5 = pneg %p6205_p3 }
  0x1c   : > { %p6214_p6 = pnand %p5703_p5, %p7025_p1 }
  0x1e   : > { %s5815_s13 = scalar_lea.hbm %s7039_s2, 8192  ;;  %p6230_p8 = pneg %p6214_p6 }
  0x1f   : > { %p5816_p7 = scmp.ne.s32.totalorder %s7039_s2, %s5815_s13  ;;  %p5822_p11 = scmp.lt.u32.totalorder %s5815_s13, %s7039_s2 }
  0x21   : > { %p5818_p9 = pnand %p6230_p8, %p5816_p7 }
  0x23   : > { %p5819_p10 = pneg %p5818_p9 }
  0x25   : > { %p5824_p12 = pnand %p5822_p11, %p5819_p10 }
  0x27   : > { %5827 = shalt.err (!%p5824_p12)
}
  0x28   : > { %s5828_s28 = scalar_lea.vmem %s6203_s22, 8192  ;;  %p5836_p5 = scmp.lt.s32.totalorder %s6203_s22, %s6203_s22 }
  0x29   : > { %p5829_p13 = scmp.ne.s32.totalorder %s6203_s22, %s5828_s28  ;;  %p5837_p4 = scmp.lt.s32.totalorder %s5828_s28, %s5828_s28 }
  0x2b   : > { %p5831_p0 = pnand %p5829_p13, %p6230_p8  ;;  %p5838_p7 = por %p5837_p4, %p5836_p5 }
  0x2d   : > { %p5832_p2 = pneg %p5831_p0 }
  0x2f   : > { %p5839_p9 = pnand %p5838_p7, %p5832_p2 }
  0x31   : > { %5842 = shalt.err (!%p5839_p9)
}
  0x32   : > { %s7027_s30 = smov 128   ;;  %s7028_s12 = smov 8  }
  0x33   : > { %5706 = dma.hbm_to_vmem [thread:$0]  (!%p6214_p6), %s7039_s2, 8192, %s6203_s22, [#allocation7], %s7027_s30, %s7027_s30, %s7028_s12  }
  0x34   : > { %s7041_s3 = sld [smem:[#allocation26_spill]] }
  0x3a   : > { %s5843_s25 = scalar_lea.hbm %s7041_s3, 8192 }
  0x3b   : > { %p5844_p4 = scmp.ne.s32.totalorder %s7041_s3, %s5843_s25  ;;  %p5850_p12 = scmp.lt.u32.totalorder %s5843_s25, %s7041_s3 }
  0x3d   : > { %p5846_p10 = pnand %p5844_p4, %p6230_p8 }
  0x3f   : > { %p5847_p11 = pneg %p5846_p10 }
  0x41   : > { %p5852_p13 = pnand %p5850_p12, %p5847_p11 }
  0x43   : > { %5855 = shalt.err (!%p5852_p13)
}
  0x44   : > { %s5856_s22 = scalar_lea.vmem %s6218_s26, 8192  ;;  %p5864_p7 = scmp.lt.s32.totalorder %s6218_s26, %s6218_s26 }
  0x45   : > { %p5857_p0 = scmp.ne.s32.totalorder %s6218_s26, %s5856_s22  ;;  %p5865_p9 = scmp.lt.s32.totalorder %s5856_s22, %s5856_s22 }
  0x47   : > { %p5859_p2 = pnand %p5857_p0, %p6230_p8  ;;  %p5866_p4 = por %p5865_p9, %p5864_p7 }
  0x49   : > { %p5860_p5 = pneg %p5859_p2 }
  0x4b   : > { %p5867_p10 = pnand %p5866_p4, %p5860_p5 }
  0x4d   : > { %5870 = shalt.err (!%p5867_p10)
}
  0x4e   : > { %5709 = dma.hbm_to_vmem [thread:$0]  (!%p6214_p6), %s7041_s3, 8192, %s6218_s26, [#allocation10], %s7027_s30, %s7027_s30, %s7028_s12  }
  0x4f   : > { %s7042_s4 = sld [smem:[#allocation27_spill]] }
  0x55   : > { %s5871_s14 = scalar_lea.hbm %s7042_s4, 8192 }
  0x56   : > { %p5872_p11 = scmp.ne.s32.totalorder %s7042_s4, %s5871_s14  ;;  %p5878_p0 = scmp.lt.u32.totalorder %s5871_s14, %s7042_s4 }
  0x58   : > { %p5874_p12 = pnand %p5872_p11, %p6230_p8 }
  0x5a   : > { %p5875_p13 = pneg %p5874_p12 }
  0x5c   : > { %p5880_p2 = pnand %p5878_p0, %p5875_p13 }
  0x5e   : > { %5883 = shalt.err (!%p5880_p2)
}
  0x5f   : > { %s5884_s26 = scalar_lea.vmem %s6220_s29, 8192  ;;  %p5892_p4 = scmp.lt.s32.totalorder %s6220_s29, %s6220_s29 }
  0x60   : > { %p5885_p5 = scmp.ne.s32.totalorder %s6220_s29, %s5884_s26  ;;  %p5893_p10 = scmp.lt.s32.totalorder %s5884_s26, %s5884_s26 }
  0x62   : > { %p5887_p7 = pnand %p5885_p5, %p6230_p8  ;;  %p5894_p11 = por %p5893_p10, %p5892_p4 }
  0x64   : > { %p5888_p9 = pneg %p5887_p7 }
  0x66   : > { %p5895_p12 = pnand %p5894_p11, %p5888_p9 }
  0x68   : > { %5898 = shalt.err (!%p5895_p12)
}
  0x69   : > { %5712 = dma.hbm_to_vmem [thread:$0]  (!%p6214_p6), %s7042_s4, 8192, %s6220_s29, [#allocation10], %s7027_s30, %s7027_s30, %s7028_s12  }
  0x6a   : > { %s6108_s10 = smov [#allocation12]   ;;  %s5899_s15 = scalar_lea.hbm %s7016_s5, 8192 }
  0x6b   : > { %s364_s11 = sshll.u32 %s6108_s10, 4  ;;  %p5900_p13 = scmp.ne.s32.totalorder %s7016_s5, %s5899_s15  ;;  %s365_s11 = int_to_ptr.vmem [resolvable:$true] %s364_s11 }
  0x6c   : > { %p5906_p5 = scmp.lt.u32.totalorder %s5899_s15, %s7016_s5 }
  0x6d   : > { %p5902_p0 = pnand %p5900_p13, %p6230_p8 }
  0x6f   : > { %p5903_p2 = pneg %p5902_p0 }
  0x71   : > { %p5908_p7 = pnand %p5906_p5, %p5903_p2 }
  0x73   : > { %5911 = shalt.err (!%p5908_p7)
}
  0x74   : > { %s5912_s29 = scalar_lea.vmem %s365_s11, 8192  ;;  %p5920_p11 = scmp.lt.s32.totalorder %s365_s11, %s365_s11 }
  0x75   : > { %p5913_p9 = scmp.ne.s32.totalorder %s365_s11, %s5912_s29  ;;  %p5921_p12 = scmp.lt.s32.totalorder %s5912_s29, %s5912_s29 }
  0x77   : > { %p5915_p4 = pnand %p5913_p9, %p6230_p8  ;;  %p5922_p1 = por %p5921_p12, %p5920_p11 }
  0x79   : > { %p5916_p10 = pneg %p5915_p4 }
  0x7b   : > { %p5923_p3 = pnand %p5922_p1, %p5916_p10 }
  0x7d   : > { %5926 = shalt.err (!%p5923_p3)
}
  0x7e   : > { %5715 = dma.hbm_to_vmem [thread:$0]  (!%p6214_p6), %s7016_s5, 8192, %s365_s11, [#allocation13], %s7027_s30, %s7027_s30, %s7028_s12  }
  0x7f   : > { %s3446_s27 = sadd.s32 4294967294, %s6101_s20   ;;  %s6329_s16 = sadd.s32 1, %s6101_s20  }
  0x80   : > { %s40_s10 = ssub.s32 %s6101_s20, %s6329_s16  ;;  %s43_s13 = sadd.s32 1, %s6097_s19 }
  0x81   : > { %p41_p1 = scmp.eq.s32.totalorder %s40_s10, 0  ;;  %p50_p3 = scmp.ne.s32.totalorder %s6097_s19, %s6093_s18 }
  0x82   : > { %p51_p8 = scmp.eq.s32.totalorder %s6101_s20, 0  ;;  %p56_p13 = scmp.ne.s32.totalorder %s6093_s18, %s6089_s17 }
  0x83   : > { %s6340_s14 = scalar_select %p41_p1, %s6097_s19, %s43_s13  }
  0x84   : > { %p6342_p0 = por %p51_p8, %p50_p3  ;;  %p7044_p2 = scmp.eq.s32.totalorder %s6198_s23, 0 }
  0x85   : > { %p274_p5 = scmp.eq.s32.totalorder %s6198_s23, 1  ;;  %p280_p7 = scmp.eq.s32.totalorder %s3446_s27, 1 }
  0x86   : > { %p6348_p6 = por %p7044_p2, %p56_p13  ;;  %p5734_p9 = scmp.lt.s32.totalorder %s6101_s20, 2 }
  0x87   : > { %s6355_s21 = sand.u32 1, %s6097_s19   ;;  %p6357_p4 = por %p274_p5, %p50_p3 }
  0x88   : > { %p6361_p10 = por %p280_p7, %p56_p13  ;;  %s3453_s26 = sshll.u32 %s6355_s21, 3 }
  0x89   : > { %s7046_s25 = scalar_select %p6357_p4, 1, 0 }
  0x8a   : > { %s7047_s28 = scalar_select %p6361_p10, 1, 0 }
  0x8b   : > { %s3454_s29 = sshll.u32 %s6101_s20, 7  ;;  %s7048_s0 = sld [smem:[#allocation24_spill]] }
  0x8c   : > { %s394_s10 = scalar_lea.vmem [#allocation3], %s3453_s26  ;;  %p6376_p11 = pnand %p5734_p9, %p6342_p0 }
  0x8d   : > { %s401_s13 = sshll.u32 %s394_s10, 4  ;;  %s3455_s12 = sshll.u32 %s6355_s21, 7  ;;  %s6372_s13 = int_to_ptr.vmem [resolvable:$true] %s401_s13 }
  0x8e   : > { %s391_s22 = scalar_lea.sflag [#allocation4], %s6355_s21  ;;  %p5929_p1 = pneg %p6376_p11 }
  0x91   : > { %s6370_s27 = scalar_lea.hbm %s7048_s0, %s3454_s29  ;;  %s5932_s15 = scalar_lea.hbm %s7048_s0, 256 }
  0x92   : > { %s5927_s29 = scalar_lea.hbm %s6370_s27, 128  ;;  %p5933_p13 = scmp.lt.u32.totalorder %s6370_s27, %s7048_s0 }
  0x93   : > { %p5928_p12 = scmp.ne.s32.totalorder %s6370_s27, %s5927_s29  ;;  %p5934_p0 = scmp.lt.u32.totalorder %s5932_s15, %s5927_s29 }
  0x94   : > { %p5936_p5 = scmp.lt.u32.totalorder %s5927_s29, %s6370_s27 }
  0x95   : > { %p5930_p3 = pnand %p5929_p1, %p5928_p12  ;;  %p5935_p2 = por %p5934_p0, %p5933_p13 }
  0x97   : > { %p5931_p8 = pneg %p5930_p3  ;;  %p5937_p7 = por %p5936_p5, %p5935_p2 }
  0x99   : > { %p5938_p9 = pnand %p5937_p7, %p5931_p8 }
  0x9b   : > { %5941 = shalt.err (!%p5938_p9)
}
  0x9c   : > { %s5942_s2 = scalar_lea.vmem %s6372_s13, 128  ;;  %s6109_s26 = smov [#allocation3]  }
  0x9d   : > { %p5943_p12 = scmp.ne.s32.totalorder %s6372_s13, %s5942_s2  ;;  %s5947_s9 = sshll.u32 %s6109_s26, 4  ;;  %s5948_s9 = int_to_ptr.vmem [resolvable:$false] %s5947_s9 }
  0x9e   : > { %s5949_s3 = scalar_lea.vmem %s5948_s9, 256  ;;  %p5950_p4 = scmp.lt.s32.totalorder %s6372_s13, %s5948_s9 }
  0x9f   : > { %p5945_p3 = pnand %p5943_p12, %p5929_p1  ;;  %p5951_p13 = scmp.lt.s32.totalorder %s5949_s3, %s5942_s2 }
  0xa1   : > { %p5946_p10 = pneg %p5945_p3  ;;  %p5952_p0 = por %p5951_p13, %p5950_p4 }
  0xa3   : > { %p5953_p2 = pnand %p5952_p0, %p5946_p10 }
  0xa5   : > { %5956 = shalt.err (!%p5953_p2)
}
  0xa6   : > { %5719 = dma.hbm_to_vmem [thread:$0]  (!%p6376_p11), %s6370_s27, 128, %s6372_s13, %s391_s22  }
  0xa7   : > { %s412_s29 = scalar_lea.vmem [#allocation6], %s3455_s12  ;;  %s3495_s10 = sshll.u32 %s6101_s20, 11 }
  0xa8   : > { %s419_s15 = sshll.u32 %s412_s29, 4  ;;  %s6416_s9 = scalar_lea.hbm %s7012_s1, %s3495_s10  ;;  %s6410_s15 = int_to_ptr.vmem [resolvable:$true] %s419_s15 }
  0xa9   : > { %s7050_s3 = sand.u32 1, %s6101_s20   ;;  %s5957_s4 = scalar_lea.hbm %s6416_s9, 2048 }
  0xaa   : > { %s6420_s0 = scalar_lea.sflag [#allocation7], %s7050_s3  ;;  %p5958_p4 = scmp.ne.s32.totalorder %s6416_s9, %s5957_s4 }
  0xab   : > { %s5962_s27 = scalar_lea.hbm %s7012_s1, 4096  ;;  %p5963_p5 = scmp.lt.u32.totalorder %s6416_s9, %s7012_s1 }
  0xac   : > { %p5960_p10 = pnand %p5958_p4, %p5929_p1  ;;  %p5964_p7 = scmp.lt.u32.totalorder %s5962_s27, %s5957_s4 }
  0xad   : > { %p5966_p12 = scmp.lt.u32.totalorder %s5957_s4, %s6416_s9 }
  0xae   : > { %p5961_p8 = pneg %p5960_p10  ;;  %p5965_p9 = por %p5964_p7, %p5963_p5 }
  0xb0   : > { %p5967_p3 = por %p5966_p12, %p5965_p9 }
  0xb2   : > { %p5968_p13 = pnand %p5967_p3, %p5961_p8 }
  0xb4   : > { %5971 = shalt.err (!%p5968_p13)
}
  0xb5   : > { %s5972_s29 = scalar_lea.vmem %s6410_s15, 2048  ;;  %s6110_s10 = smov [#allocation6]  }
  0xb6   : > { %p5973_p0 = scmp.ne.s32.totalorder %s6410_s15, %s5972_s29  ;;  %s5977_s26 = sshll.u32 %s6110_s10, 4  ;;  %s5978_s26 = int_to_ptr.vmem [resolvable:$false] %s5977_s26 }
  0xb7   : > { %s5979_s2 = scalar_lea.vmem %s5978_s26, 4096  ;;  %p5980_p10 = scmp.lt.s32.totalorder %s6410_s15, %s5978_s26 }
  0xb8   : > { %p5975_p2 = pnand %p5973_p0, %p5929_p1  ;;  %p5981_p5 = scmp.lt.s32.totalorder %s5979_s2, %s5972_s29 }
  0xba   : > { %p5976_p4 = pneg %p5975_p2  ;;  %p5982_p7 = por %p5981_p5, %p5980_p10 }
  0xbc   : > { %p5983_p9 = pnand %p5982_p7, %p5976_p4 }
  0xbe   : > { %5986 = shalt.err (!%p5983_p9)
}
  0xbf   : > { %s7051_s4 = smov 8   ;;  %s7052_s3 = smov 128  }
  0xc0   : > { %5722 = dma.hbm_to_vmem [thread:$0]  (!%p6376_p11), %s6416_s9, 2048, %s6410_s15, %s6420_s0, %s7052_s3, %s7052_s3, %s7051_s4  }
  0xc1   : > { %p7053_p1 = scmp.ne.s32.totalorder %s7037_s24, 0 }
  0xc2   : > { %s6452_s12 = sand.u32 (!%p7053_p1), 1, %s6093_s18  }
  0xc3   : > { %431 = sbr.rel (%p7053_p1) target bundleno = 4499 (0x1193), region = 60  ;;  %s6455_s21 = sshll.u32 (!%p7053_p1), %s6452_s12, 3 }
  0xc4   : > { %s434_s30 = scalar_lea.sflag (!%p7053_p1), [#allocation4], %s6452_s12  ;;  %s437_s27 = scalar_lea.vmem (!%p7053_p1), [#allocation3], %s6455_s21 }
  0xca   : > { %6060 = dma.done.wait (%p6348_p6), %s434_s30, 128  }
  0xcb   : > { %6062 = vsyncadd (%p6348_p6), %s434_s30, 4294967168  ;;  %s442_s0 = sand.u32 1, %s6198_s23   ;;  %s3460_s24 = sshll.u32 %s6452_s12, 7 }
  0xcc   : > { %s443_s15 = scalar_lea.sflag [#allocation7], %s442_s0  ;;  %s6465_s9 = scalar_lea.vmem [#allocation6], %s3460_s24 }
  0xcd   : > { %6064 = dma.done.wait (%p6348_p6), %s443_s15, 2048  }
  0xce   : > { %6066 = vsyncadd (%p6348_p6), %s443_s15, 4294965248  ;;  %p7054_p11 = scmp.eq.s32.totalorder %s6198_s23, 0 }
  0xd0   : > { %6068 = dma.done.wait (%p7054_p11), [#allocation7], 8192   ;;  %p7055_p8 = pmov %p7054_p11 }
  0xd2   : > { %6070 = vsyncadd (%p7055_p8), [#allocation7], 4294959104  ;;  %p7056_p12 = pmov %p7055_p8 }
  0xd3   : > { %p7057_p3 = pmov %p7055_p8 }
  0xd4   : > { %6072 = dma.done.wait (%p7056_p12), [#allocation10], 16384  }
  0xd5   : > { %6074 = vsyncadd (%p7057_p3), [#allocation10], 4294950912  ;;  %p7058_p13 = pmov %p7057_p3 }
  0xd6   : > { %p7059_p0 = pmov %p7057_p3 }
  0xd7   : > { %6076 = dma.done.wait (%p7058_p13), [#allocation13], 8192  }
  0xd8   : > { %6078 = vsyncadd (%p7059_p0), [#allocation13], 4294959104  ;;  %v6111_v0 = vmov 0.0|0.0   ;;  %vm6112_vm0 = vmmov 0   ;;  %v6113_v1 = vmov 0.0   ;;  %v541_v2 = vld [vmem:[#allocation8] sm:$0xff] }
  0xd9   : > { %5032 = vmatprep.subr.bf16.mxu1 %v6111_v0  ;;  %4056 = vmatprep.mubr.msk.f32.mxu1 %vm6112_vm0, %v6113_v1  ;;  %v542_v3 = vld [vmem:[#allocation8 + $0x8] sm:$0xff]  ;;  %v543_v4 = vld [vmem:[#allocation8 + $0x10] sm:$0xff]  ;;  %v544_v6 = vld [vmem:[#allocation8 + $0x18] sm:$0xff]  ;;  %s510_s30 = scalar_lea.vmem [#allocation15], %s6455_s21  ;;  %s3491_s0 = sshll.u32 %s6198_s23, 7 }
  0xda   : > { %v5033_v5 = vpack.c.bf16 %v542_v3, %v541_v2  ;;  %v5036_v7 = vpack.c.bf16 %v544_v6, %v543_v4  ;;  %v545_v8 = vld [vmem:[#allocation8 + $0x20] sm:$0xff]  ;;  %v546_v9 = vld [vmem:[#allocation8 + $0x28] sm:$0xff]  ;;  %v547_v11 = vld [vmem:[#allocation8 + $0x30] sm:$0xff]  ;;  %s7060_s15 = sld [smem:[#allocation30_spill]]  ;;  %s3283_s11 = sshll.u32 %s510_s30, 4  ;;  %s3284_s11 = int_to_ptr.vmem [resolvable:$true] %s3283_s11 }
  0xdb   : > { %v5039_v10 = vpack.c.bf16 %v546_v9, %v545_v8  ;;  %v548_v12 = vld [vmem:[#allocation8 + $0x38] sm:$0xff]  ;;  %v6489_v14 = vld [vmem:[%s6465_s9] sm:$0xff]  ;;  %v550_v16 = vld [vmem:[#allocation8 + $0x48] sm:$0xff]  ;;  %s3257_s13 = scalar_lea.sflag [#allocation16], %s6452_s12  ;;  %s5987_s22 = scalar_lea.vmem %s3284_s11, 128 }
  0xdc   : > { %5034 = vmatpush3.bf16.msra.mxu1 %v5033_v5  ;;  %v5042_v13 = vpack.c.bf16 %v548_v12, %v547_v11  ;;  %v549_v15 = vld [vmem:[#allocation8 + $0x40] sm:$0xff]  ;;  %4147 = vmatprep.mubr.f32.mxu0 %v6489_v14  ;;  %v551_v18 = vld [vmem:[#allocation8 + $0x50] sm:$0xff]  ;;  %v552_v19 = vld [vmem:[#allocation8 + $0x58] sm:$0xff]  ;;  %p5988_p6 = scmp.ne.s32.totalorder %s3284_s11, %s5987_s22  ;;  %p7061_p2 = scmp.ne.s32.totalorder %s7046_s25, 0 }
  0xdd   : > { %5035 = vmatprep.subr.bf16.mxu1 %v6111_v0  ;;  %v5045_v17 = vpack.c.bf16 %v550_v16, %v549_v15  ;;  %v5048_v20 = vpack.c.bf16 %v552_v19, %v551_v18  ;;  %v553_v21 = vld [vmem:[#allocation8 + $0x60] sm:$0xff]  ;;  %v554_v22 = vld [vmem:[#allocation8 + $0x68] sm:$0xff]  ;;  %v555_v24 = vld [vmem:[#allocation8 + $0x70] sm:$0xff]  ;;  %s6115_s29 = smov [#allocation15]  }
  0xde   : > { %v5051_v23 = vpack.c.bf16 %v554_v22, %v553_v21  ;;  %v556_v25 = vld [vmem:[#allocation8 + $0x78] sm:$0xff]  ;;  %v635_v26 = vld [vmem:[#allocation9] sm:$0xff]  ;;  %v636_v27 = vld [vmem:[#allocation9 + $0x8] sm:$0xff]  ;;  %p5989_p4 = pnand %p5988_p6, %p7061_p2  ;;  %s5991_s10 = sshll.u32 %s6115_s29, 4  ;;  %s5992_s10 = int_to_ptr.vmem [resolvable:$false] %s5991_s10 }
  0xdf   : > { %v5054_v28 = vpack.c.bf16 %v556_v25, %v555_v24  ;;  %v5056_v29 = vpack.c.bf16 %v636_v27, %v635_v26  ;;  %v637_v30 = vld [vmem:[#allocation9 + $0x10] sm:$0xff]  ;;  %v638_v31 = vld [vmem:[#allocation9 + $0x18] sm:$0xff]  ;;  %v639_v34 = vld [vmem:[#allocation9 + $0x20] sm:$0xff]  ;;  %s5993_s26 = scalar_lea.vmem %s5992_s10, 256  ;;  %p5994_p5 = scmp.lt.s32.totalorder %s3284_s11, %s5992_s10 }
  0xe0   : > { %5037 = vmatpush3.bf16.msra.mxu1 %v5036_v7  ;;  %v6499_v32 = vld [vmem:[%s437_s27] sm:$0xff]  ;;  %v5060_v33 = vpack.c.bf16 %v638_v31, %v637_v30  ;;  %v640_v35 = vld [vmem:[#allocation9 + $0x28] sm:$0xff]  ;;  %v643_v40 = vld [vmem:[#allocation9 + $0x40] sm:$0xff]  ;;  %p5990_p10 = pneg %p5989_p4  ;;  %p5995_p7 = scmp.lt.s32.totalorder %s5993_s26, %s5987_s22 }
  0xe1   : > { %5038 = vmatprep.subr.bf16.mxu1 %v6111_v0  ;;  %v5064_v36 = vpack.c.bf16 %v640_v35, %v639_v34  ;;  %v641_v37 = vld [vmem:[#allocation9 + $0x30] sm:$0xff]  ;;  %v642_v38 = vld [vmem:[#allocation9 + $0x38] sm:$0xff]  ;;  %v644_v41 = vld [vmem:[#allocation9 + $0x48] sm:$0xff] }
  0xe2   : > { %v5068_v39 = vpack.c.bf16 %v642_v38, %v641_v37  ;;  %v5072_v42 = vpack.c.bf16 %v644_v41, %v643_v40  ;;  %v645_v43 = vld [vmem:[#allocation9 + $0x50] sm:$0xff]  ;;  %v646_v44 = vld [vmem:[#allocation9 + $0x58] sm:$0xff]  ;;  %v647_v46 = vld [vmem:[#allocation9 + $0x60] sm:$0xff]  ;;  %p5996_p9 = por %p5995_p7, %p5994_p5 }
  0xe3   : > { %v5076_v45 = vpack.c.bf16 %v646_v44, %v645_v43  ;;  %v648_v47 = vld [vmem:[#allocation9 + $0x68] sm:$0xff]  ;;  %v649_v49 = vld [vmem:[#allocation9 + $0x70] sm:$0xff]  ;;  %v650_v50 = vld [vmem:[#allocation9 + $0x78] sm:$0xff] }
  0xe4   : > { %5040 = vmatpush3.bf16.msra.mxu1 %v5039_v10  ;;  %v5080_v48 = vpack.c.bf16 %v648_v47, %v647_v46  ;;  %v5084_v51 = vpack.c.bf16 %v650_v50, %v649_v49  ;;  %v6504_v52 = vld [vmem:[%s6465_s9 + $0x8] sm:$0xff]  ;;  %v6507_v53 = vld [vmem:[%s6465_s9 + $0x10] sm:$0xff]  ;;  %v6513_v54 = vld [vmem:[%s6465_s9 + $0x18] sm:$0xff]  ;;  %p5997_p1 = pnand %p5996_p9, %p5990_p10 }
  0xe5   : > { %5041 = vmatprep.subr.bf16.mxu1 %v6111_v0  ;;  %v6516_v55 = vld [vmem:[%s6465_s9 + $0x20] sm:$0xff]  ;;  %v6521_v56 = vld [vmem:[%s6465_s9 + $0x28] sm:$0xff]  ;;  %v6524_v57 = vld [vmem:[%s6465_s9 + $0x30] sm:$0xff] }
  0xe6   : > { %v6529_v58 = vld [vmem:[%s6465_s9 + $0x38] sm:$0xff]  ;;  %v6532_v59 = vld [vmem:[%s6465_s9 + $0x40] sm:$0xff]  ;;  %v6537_v60 = vld [vmem:[%s6465_s9 + $0x48] sm:$0xff] }
  0xe7   : > { %v6540_v61 = vld [vmem:[%s6465_s9 + $0x50] sm:$0xff]  ;;  %v6545_v62 = vld [vmem:[%s6465_s9 + $0x58] sm:$0xff]  ;;  %v6548_v63 = vld [vmem:[%s6465_s9 + $0x60] sm:$0xff] }
  0xe8   : > { %5043 = vmatpush3.bf16.msra.mxu1 %v5042_v13  ;;  %v6553_v2 = vld [vmem:[%s6465_s9 + $0x68] sm:$0xff]  ;;  %v6556_v3 = vld [vmem:[%s6465_s9 + $0x70] sm:$0xff]  ;;  %v6561_v4 = vld [vmem:[%s6465_s9 + $0x78] sm:$0xff] }
  0xe9   : > { %5044 = vmatprep.subr.bf16.mxu1 %v6111_v0  ;;  %v3469_v7 = vld [vmem:[%s7018_s7] ss:$0 sm:$0xff] }
  0xea   : > { %v3468_v50 = vld [vmem:[%s7017_s6] ss:$0 sm:$0xff] }
  0xec   : > { %5046 = vmatpush3.bf16.msra.mxu1 %v5045_v17 }
  0xed   : > { %5047 = vmatprep.subr.bf16.mxu1 %v6111_v0 }
  0xf0   : > { %5049 = vmatpush3.bf16.msra.mxu1 %v5048_v20 }
  0xf1   : > { %5050 = vmatprep.subr.bf16.mxu1 %v6111_v0 }
  0xf4   : > { %5052 = vmatpush3.bf16.msra.mxu1 %v5051_v23 }
  0xf5   : > { %5053 = vmatprep.subr.bf16.mxu1 %v6111_v0 }
  0xf8   : > { %5055 = vmatpush3.bf16.msra.mxu1 %v5054_v28 }
  0xf9   : > { %5057 = vmatprep.subr.bf16.mxu1 %v5056_v29 }
  0xfb   : > { %4057 = vmatmul.mubr.f32.vlgmr.msra.gmra.mrb[0].mxu1 %v6499_v32 }
  0xfc   : > { %5059 = vmatpush3.bf16.msra.mxu1 %v5056_v29  ;;  %4091 = vmatprep.mubr.f32.mxu1 %v6489_v14 }
  0xfd   : > { %5061 = vmatprep.subr.bf16.mxu1 %v5060_v33 }
 0x100   : > { %5063 = vmatpush3.bf16.msra.mxu1 %v5060_v33 }
 0x101   : > { %5065 = vmatprep.subr.bf16.mxu1 %v5064_v36 }
 0x104   : > { %5067 = vmatpush3.bf16.msra.mxu1 %v5064_v36 }
 0x105   : > { %5069 = vmatprep.subr.bf16.mxu1 %v5068_v39 }
 0x108   : > { %5071 = vmatpush3.bf16.msra.mxu1 %v5068_v39 }
 0x109   : > { %5073 = vmatprep.subr.bf16.mxu1 %v5072_v42 }
 0x10c   : > { %5075 = vmatpush3.bf16.msra.mxu1 %v5072_v42 }
 0x10d   : > { %5077 = vmatprep.subr.bf16.mxu1 %v5076_v45 }
 0x110   : > { %5079 = vmatpush3.bf16.msra.mxu1 %v5076_v45 }
 0x111   : > { %5081 = vmatprep.subr.bf16.mxu1 %v5080_v48 }
 0x114   : > { %5083 = vmatpush3.bf16.msra.mxu1 %v5080_v48 }
 0x115   : > { %5085 = vmatprep.subr.bf16.mxu1 %v5084_v51 }
 0x118   : > { %5087 = vmatpush3.bf16.msra.mxu1 %v5084_v51 }
 0x119   : > { %5120 = vmatprep.subr.bf16.mxu1 %v6111_v0 }
 0x11b   : > { %4092 = vmatmul.mubr.f32.vlgmr.msra.gmra.mrb[2].mxu1 %v6504_v52 }
 0x11c   : > { %4094 = vmatprep.mubr.f32.mxu1 %v6507_v53 }
 0x11f   : > { %4095 = vmatmul.mubr.f32.gmra.mrb[4].mxu1 %v6513_v54 }
 0x120   : > { %4097 = vmatprep.mubr.f32.mxu1 %v6516_v55 }
 0x123   : > { %4098 = vmatmul.mubr.f32.gmra.mrb[6].mxu1 %v6521_v56 }
 0x124   : > { %4100 = vmatprep.mubr.f32.mxu1 %v6524_v57 }
 0x127   : > { %4101 = vmatmul.mubr.f32.gmra.mrb[8].mxu1 %v6529_v58 }
 0x128   : > { %4103 = vmatprep.mubr.f32.mxu1 %v6532_v59 }
 0x12b   : > { %4104 = vmatmul.mubr.f32.gmra.mrb[10].mxu1 %v6537_v60 }
 0x12c   : > { %4106 = vmatprep.mubr.f32.mxu1 %v6540_v61 }
 0x12f   : > { %4107 = vmatmul.mubr.f32.gmra.mrb[12].mxu1 %v6545_v62 }
 0x130   : > { %4109 = vmatprep.mubr.f32.mxu1 %v6548_v63 }
 0x133   : > { %4110 = vmatmul.mubr.f32.gmra.mrb[14].mxu1 %v6553_v2 }
 0x134   : > { %4112 = vmatprep.mubr.f32.mxu1 %v6556_v3 }
 0x137   : > { %4113 = vmatmul.mubr.f32.gmra.mrb[16].mxu1 %v6561_v4 }
 0x138   : > { %4203 = vmatprep.mubr.msk.f32.mxu1 %vm6112_vm0, %v6113_v1 }
 0x1ce   : > { %v630_v5 = vpop.f32.mrb[0].mxu1 }
 0x1cf   : > { %v4058_v6 = vpop.f32.mrb[1].mxu1  ;;  %v631_v51 = vadd.f32 %v3468_v50, %v630_v5  ;;  %v809_v5 = vld [vmem:[#allocation11 + $0x30] sm:$0xff] }
 0x1d1   : > { %v634_v6 = vmul.f32 0.35355338, %v631_v51 }
 0x1ee   : > { %v4093_v8 = vpop.f32.mrb[2].mxu1 }
 0x1ef   : > { %v730_v9 = vadd.f32 %v4093_v8, %v3469_v7  ;;  %v724_v10 = vpop.f32.mrb[3].mxu1  ;;  %v804_v8 = vld [vmem:[#allocation11 + $0x8] sm:$0xff] }
 0x1f0   : > { %v725_v11 = vadd.f32 %v3469_v7, %v724_v10 }
 0x1f2   : > { %v5121_v12 = vpack.c.bf16 %v730_v9, %v725_v11  ;;  %v4096_v13 = vpop.f32.mrb[4].mxu1  ;;  %v805_v9 = vld [vmem:[#allocation11 + $0x10] sm:$0xff]  ;;  %v806_v11 = vld [vmem:[#allocation11 + $0x18] sm:$0xff] }
 0x1f3   : > { %v740_v15 = vadd.f32 %v4096_v13, %v3469_v7  ;;  %v734_v16 = vpop.f32.mrb[5].mxu1  ;;  %v807_v13 = vld [vmem:[#allocation11 + $0x20] sm:$0xff] }
 0x1f4   : > { %5122 = vmatpush3.bf16.xpose.msra.mxu1 %v5121_v12  ;;  %v735_v17 = vadd.f32 %v3469_v7, %v734_v16  ;;  %v5092_v12 = vpack.c.bf16 %v806_v11, %v805_v9 }
 0x1f5   : > { %5123 = vmatprep.subr.bf16.mxu1 %v6111_v0 }
 0x1f6   : > { %v5124_v18 = vpack.c.bf16 %v740_v15, %v735_v17  ;;  %v4099_v19 = vpop.f32.mrb[6].mxu1  ;;  %v808_v15 = vld [vmem:[#allocation11 + $0x28] sm:$0xff]  ;;  %v810_v17 = vld [vmem:[#allocation11 + $0x38] sm:$0xff] }
 0x1f7   : > { %v750_v20 = vadd.f32 %v4099_v19, %v3469_v7  ;;  %v744_v21 = vpop.f32.mrb[7].mxu1  ;;  %v5096_v16 = vpack.c.bf16 %v808_v15, %v807_v13  ;;  %v811_v19 = vld [vmem:[#allocation11 + $0x40] sm:$0xff] }
 0x1f8   : > { %v745_v22 = vadd.f32 %v3469_v7, %v744_v21 }
 0x1fa   : > { %v5127_v23 = vpack.c.bf16 %v750_v20, %v745_v22  ;;  %v4102_v24 = vpop.f32.mrb[8].mxu1  ;;  %v812_v20 = vld [vmem:[#allocation11 + $0x48] sm:$0xff]  ;;  %v813_v22 = vld [vmem:[#allocation11 + $0x50] sm:$0xff] }
 0x1fb   : > { %v760_v25 = vadd.f32 %v4102_v24, %v3469_v7  ;;  %v754_v26 = vpop.f32.mrb[9].mxu1  ;;  %v5104_v21 = vpack.c.bf16 %v812_v20, %v811_v19 }
 0x1fc   : > { %5125 = vmatpush3.bf16.xpose.msra.mxu1 %v5124_v18  ;;  %v755_v27 = vadd.f32 %v3469_v7, %v754_v26  ;;  %v5100_v18 = vpack.c.bf16 %v810_v17, %v809_v5  ;;  %v816_v26 = vld [vmem:[#allocation11 + $0x68] sm:$0xff] }
 0x1fd   : > { %5126 = vmatprep.subr.bf16.mxu1 %v6111_v0 }
 0x1fe   : > { %v5130_v28 = vpack.c.bf16 %v760_v25, %v755_v27  ;;  %v4105_v29 = vpop.f32.mrb[10].mxu1  ;;  %v815_v25 = vld [vmem:[#allocation11 + $0x60] sm:$0xff] }
 0x1ff   : > { %v770_v30 = vadd.f32 %v4105_v29, %v3469_v7  ;;  %v764_v31 = vpop.f32.mrb[11].mxu1  ;;  %v5112_v27 = vpack.c.bf16 %v816_v26, %v815_v25  ;;  %v818_v29 = vld [vmem:[#allocation11 + $0x78] sm:$0xff] }
 0x200   : > { %v765_v33 = vadd.f32 %v3469_v7, %v764_v31  ;;  %v528_v31 = vlaneseq }
 0x202   : > { %v5133_v34 = vpack.c.bf16 %v770_v30, %v765_v33  ;;  %v4108_v35 = vpop.f32.mrb[12].mxu1  ;;  %v529_v33 = vand.u32 127, %v528_v31 }
 0x203   : > { %v780_v36 = vadd.f32 %v4108_v35, %v3469_v7  ;;  %v774_v37 = vpop.f32.mrb[13].mxu1 }
 0x204   : > { %5128 = vmatpush3.bf16.xpose.msra.mxu1 %v5127_v23  ;;  %v775_v38 = vadd.f32 %v3469_v7, %v774_v37  ;;  %v814_v23 = vld [vmem:[#allocation11 + $0x58] sm:$0xff]  ;;  %vm530_vm1 = vcmp.lt.s32.totalorder %v529_v33, 8 }
 0x205   : > { %5129 = vmatprep.subr.bf16.mxu1 %v6111_v0  ;;  %v5108_v24 = vpack.c.bf16 %v814_v23, %v813_v22 }
 0x206   : > { %v5136_v39 = vpack.c.bf16 %v780_v36, %v775_v38  ;;  %v4111_v40 = vpop.f32.mrb[14].mxu1 }
 0x207   : > { %v790_v41 = vadd.f32 %v4111_v40, %v3469_v7  ;;  %v784_v42 = vpop.f32.mrb[15].mxu1 }
 0x208   : > { %v785_v43 = vadd.f32 %v3469_v7, %v784_v42 }
 0x20a   : > { %v5139_v44 = vpack.c.bf16 %v790_v41, %v785_v43  ;;  %v4114_v45 = vpop.f32.mrb[16].mxu1 }
 0x20b   : > { %v800_v46 = vadd.f32 %v4114_v45, %v3469_v7  ;;  %v794_v47 = vpop.f32.mrb[17].mxu1 }
 0x20c   : > { %5131 = vmatpush3.bf16.xpose.msra.mxu1 %v5130_v28  ;;  %v795_v48 = vadd.f32 %v3469_v7, %v794_v47  ;;  %v803_v7 = vld [vmem:[#allocation11] sm:$0xff]  ;;  %v817_v28 = vld [vmem:[#allocation11 + $0x70] sm:$0xff] }
 0x20d   : > { %5132 = vmatprep.subr.bf16.mxu1 %v6111_v0  ;;  %v5088_v10 = vpack.c.bf16 %v804_v8, %v803_v7  ;;  %v5116_v30 = vpack.c.bf16 %v818_v29, %v817_v28 }
 0x20e   : > { %v5142_v49 = vpack.c.bf16 %v800_v46, %v795_v48 }
 0x20f   : > { %5089 = vmatprep.subr.bf16.mxu0 %v5088_v10 }
 0x210   : > { %5091 = vmatpush3.bf16.msra.mxu0 %v5088_v10 }
 0x211   : > { %5093 = vmatprep.subr.bf16.mxu0 %v5092_v12 }
 0x214   : > { %5134 = vmatpush3.bf16.xpose.msra.mxu1 %v5133_v34  ;;  %5095 = vmatpush3.bf16.msra.mxu0 %v5092_v12  ;;  %v6114_v34 = vmov -1e+30  }
 0x215   : > { %5135 = vmatprep.subr.bf16.mxu1 %v6111_v0  ;;  %5097 = vmatprep.subr.bf16.mxu0 %v5096_v16  ;;  %v6600_v35 = vsel %vm530_vm1, 0.0, %v6114_v34 }
 0x218   : > { %5099 = vmatpush3.bf16.msra.mxu0 %v5096_v16 }
 0x219   : > { %5101 = vmatprep.subr.bf16.mxu0 %v5100_v18 }
 0x21c   : > { %5137 = vmatpush3.bf16.xpose.msra.mxu1 %v5136_v39  ;;  %5103 = vmatpush3.bf16.msra.mxu0 %v5100_v18  ;;  %v3470_v39 = vld [vmem:[%s7019_s8] ss:$0 sm:$0xff] }
 0x21d   : > { %5138 = vmatprep.subr.bf16.mxu1 %v6111_v0  ;;  %5105 = vmatprep.subr.bf16.mxu0 %v5104_v21 }
 0x220   : > { %5107 = vmatpush3.bf16.msra.mxu0 %v5104_v21 }
 0x221   : > { %5109 = vmatprep.subr.bf16.mxu0 %v5108_v24 }
 0x224   : > { %5140 = vmatpush3.bf16.xpose.msra.mxu1 %v5139_v44  ;;  %5111 = vmatpush3.bf16.msra.mxu0 %v5108_v24 }
 0x225   : > { %5141 = vmatprep.subr.bf16.mxu1 %v6111_v0  ;;  %5113 = vmatprep.subr.bf16.mxu0 %v5112_v27 }
 0x228   : > { %5115 = vmatpush3.bf16.msra.mxu0 %v5112_v27 }
 0x229   : > { %5117 = vmatprep.subr.bf16.mxu0 %v5116_v30 }
 0x22c   : > { %5143 = vmatpush3.bf16.xpose.msra.mxu1 %v5142_v49  ;;  %5119 = vmatpush3.bf16.msra.mxu0 %v5116_v30 }
 0x22d   : > { %5192 = vmatprep.subr.bf16.mxu1 %v6111_v0  ;;  %5144 = vmatprep.subr.bf16.mxu0 %v6111_v0 }
 0x22f   : > { %4148 = vmatmul.mubr.f32.vlgmr.msra.gmra.mrb[0].mxu0 %v6504_v52 }
 0x230   : > { %4150 = vmatprep.mubr.f32.mxu0 %v6507_v53 }
 0x233   : > { %4204 = vmatmul.mubr.f32.vlgmr.msra.gmra.mrb[18].mxu1 %v634_v6  ;;  %4151 = vmatmul.mubr.f32.gmra.mrb[2].mxu0 %v6513_v54 }
 0x234   : > { %4308 = vmatprep.mubr.msk.f32.mxu1 %vm6112_vm0, %v6113_v1  ;;  %4153 = vmatprep.mubr.f32.mxu0 %v6516_v55 }
 0x237   : > { %4154 = vmatmul.mubr.f32.gmra.mrb[4].mxu0 %v6521_v56 }
 0x238   : > { %4156 = vmatprep.mubr.f32.mxu0 %v6524_v57 }
 0x23b   : > { %4157 = vmatmul.mubr.f32.gmra.mrb[6].mxu0 %v6529_v58 }
 0x23c   : > { %4159 = vmatprep.mubr.f32.mxu0 %v6532_v59 }
 0x23f   : > { %4160 = vmatmul.mubr.f32.gmra.mrb[8].mxu0 %v6537_v60 }
 0x240   : > { %4162 = vmatprep.mubr.f32.mxu0 %v6540_v61 }
 0x243   : > { %4163 = vmatmul.mubr.f32.gmra.mrb[10].mxu0 %v6545_v62 }
 0x244   : > { %4165 = vmatprep.mubr.f32.mxu0 %v6548_v63 }
 0x247   : > { %4166 = vmatmul.mubr.f32.gmra.mrb[12].mxu0 %v6553_v2 }
 0x248   : > { %4168 = vmatprep.mubr.f32.mxu0 %v6556_v3 }
 0x24b   : > { %4169 = vmatmul.mubr.f32.gmra.mrb[14].mxu0 %v6561_v4 }
 0x24c   : > { %4238 = vmatprep.mubr.msk.f32.mxu0 %vm6112_vm0, %v6113_v1 }
 0x302   : > { %v4149_v40 = vpop.f32.mrb[0].mxu0 }
 0x303   : > { %v898_v41 = vadd.f32 %v4149_v40, %v3470_v39  ;;  %v892_v42 = vpop.f32.mrb[1].mxu0 }
 0x304   : > { %v893_v43 = vadd.f32 %v3470_v39, %v892_v42  ;;  %v1124_v42 = vld [vmem:[#allocation12] sm:$0xff] }
 0x306   : > { %v1037_v36 = vpop.f32.mrb[18].mxu1  ;;  %v5145_v44 = vpack.c.bf16 %v898_v41, %v893_v43  ;;  %v4152_v45 = vpop.f32.mrb[2].mxu0  ;;  %v1125_v43 = vld [vmem:[#allocation12 + $0x8] sm:$0xff] }
 0x307   : > { %v1038_v37 = vadd.f32 %v1037_v36, %v6600_v35  ;;  %v4205_v38 = vpop.f32.mrb[19].mxu1  ;;  %v908_v46 = vadd.f32 %v4152_v45, %v3470_v39  ;;  %v902_v47 = vpop.f32.mrb[3].mxu0  ;;  %v5169_v45 = vpack.c.bf16 %v1125_v43, %v1124_v42  ;;  %v1223_v42 = vld [vmem:[#allocation8 + $0xd0] sm:$0xff]  ;;  %v1224_v43 = vld [vmem:[#allocation8 + $0xd8] sm:$0xff] }
 0x308   : > { %v903_v48 = vadd.f32 %v3470_v39, %v902_v47  ;;  %5146 = vmatpush3.bf16.msra.mxu0 %v5145_v44  ;;  %v1126_v47 = vld [vmem:[#allocation12 + $0x10] sm:$0xff] }
 0x309   : > { %1041 = vmax.xlane.f32.xlu0 %v1038_v37  ;;  %5147 = vmatprep.subr.bf16.mxu0 %v6111_v0 }
 0x30a   : > { %v5148_v49 = vpack.c.bf16 %v908_v46, %v903_v48  ;;  %v4155_v50 = vpop.f32.mrb[4].mxu0  ;;  %v1127_v48 = vld [vmem:[#allocation12 + $0x18] sm:$0xff] }
 0x30b   : > { %v918_v51 = vadd.f32 %v4155_v50, %v3470_v39  ;;  %v912_v6 = vpop.f32.mrb[5].mxu0  ;;  %v1129_v50 = vld [vmem:[#allocation12 + $0x28] sm:$0xff] }
 0x30c   : > { %v913_v7 = vadd.f32 %v3470_v39, %v912_v6  ;;  %5149 = vmatpush3.bf16.msra.mxu0 %v5148_v49  ;;  %v5172_v49 = vpack.c.bf16 %v1127_v48, %v1126_v47  ;;  %v1130_v6 = vld [vmem:[#allocation12 + $0x30] sm:$0xff]  ;;  %v1226_v47 = vld [vmem:[#allocation8 + $0xe8] sm:$0xff] }
 0x30d   : > { %5150 = vmatprep.subr.bf16.mxu0 %v6111_v0 }
 0x30e   : > { %v5151_v8 = vpack.c.bf16 %v918_v51, %v913_v7  ;;  %v4158_v9 = vpop.f32.mrb[6].mxu0  ;;  %v1131_v7 = vld [vmem:[#allocation12 + $0x38] sm:$0xff] }
 0x30f   : > { %v928_v10 = vadd.f32 %v4158_v9, %v3470_v39  ;;  %v922_v11 = vpop.f32.mrb[7].mxu0  ;;  %v1132_v9 = vld [vmem:[#allocation12 + $0x40] sm:$0xff] }
 0x310   : > { %v923_v12 = vadd.f32 %v3470_v39, %v922_v11  ;;  %5152 = vmatpush3.bf16.msra.mxu0 %v5151_v8  ;;  %v5178_v8 = vpack.c.bf16 %v1131_v7, %v1130_v6  ;;  %v1312_v6 = vld [vmem:[#allocation9 + $0x98] sm:$0xff] }
 0x311   : > { %5153 = vmatprep.subr.bf16.mxu0 %v6111_v0 }
 0x312   : > { %v5154_v13 = vpack.c.bf16 %v928_v10, %v923_v12  ;;  %v4161_v15 = vpop.f32.mrb[8].mxu0  ;;  %v1133_v10 = vld [vmem:[#allocation12 + $0x48] sm:$0xff]  ;;  %v1134_v12 = vld [vmem:[#allocation12 + $0x50] sm:$0xff] }
 0x313   : > { %v938_v16 = vadd.f32 %v4161_v15, %v3470_v39  ;;  %v932_v5 = vpop.f32.mrb[9].mxu0  ;;  %v5181_v11 = vpack.c.bf16 %v1133_v10, %v1132_v9  ;;  %v1313_v9 = vld [vmem:[#allocation9 + $0xa0] sm:$0xff]  ;;  %v1314_v10 = vld [vmem:[#allocation9 + $0xa8] sm:$0xff] }
 0x314   : > { %v933_v17 = vadd.f32 %v3470_v39, %v932_v5  ;;  %5155 = vmatpush3.bf16.msra.mxu0 %v5154_v13  ;;  %v1135_v13 = vld [vmem:[#allocation12 + $0x58] sm:$0xff]  ;;  %v1137_v5 = vld [vmem:[#allocation12 + $0x68] sm:$0xff] }
 0x315   : > { %5156 = vmatprep.subr.bf16.mxu0 %v6111_v0  ;;  %v5184_v15 = vpack.c.bf16 %v1135_v13, %v1134_v12  ;;  %v5224_v12 = vpack.c.bf16 %v1314_v10, %v1313_v9  ;;  %v1315_v13 = vld [vmem:[#allocation9 + $0xb0] sm:$0xff] }
 0x316   : > { %v5157_v18 = vpack.c.bf16 %v938_v16, %v933_v17  ;;  %v4164_v19 = vpop.f32.mrb[10].mxu0  ;;  %v1136_v16 = vld [vmem:[#allocation12 + $0x60] sm:$0xff] }
 0x317   : > { %v948_v20 = vadd.f32 %v4164_v19, %v3470_v39  ;;  %v942_v21 = vpop.f32.mrb[11].mxu0  ;;  %v5187_v17 = vpack.c.bf16 %v1137_v5, %v1136_v16  ;;  %v1139_v19 = vld [vmem:[#allocation12 + $0x78] sm:$0xff]  ;;  %v1317_v16 = vld [vmem:[#allocation9 + $0xc0] sm:$0xff]  ;;  %v1318_v5 = vld [vmem:[#allocation9 + $0xc8] sm:$0xff] }
 0x318   : > { %v943_v22 = vadd.f32 %v3470_v39, %v942_v21  ;;  %5158 = vmatpush3.bf16.msra.mxu0 %v5157_v18  ;;  %v1138_v18 = vld [vmem:[#allocation12 + $0x70] sm:$0xff]  ;;  %v1309_v21 = vld [vmem:[#allocation9 + $0x80] sm:$0xff] }
 0x319   : > { %5159 = vmatprep.subr.bf16.mxu0 %v6111_v0 }
 0x31a   : > { %v5160_v25 = vpack.c.bf16 %v948_v20, %v943_v22  ;;  %v4167_v26 = vpop.f32.mrb[12].mxu0  ;;  %v5190_v20 = vpack.c.bf16 %v1139_v19, %v1138_v18  ;;  %v1310_v22 = vld [vmem:[#allocation9 + $0x88] sm:$0xff]  ;;  %v1319_v18 = vld [vmem:[#allocation9 + $0xd0] sm:$0xff]  ;;  %v1320_v19 = vld [vmem:[#allocation9 + $0xd8] sm:$0xff] }
 0x31b   : > { %v958_v27 = vadd.f32 %v4167_v26, %v3470_v39  ;;  %v952_v28 = vpop.f32.mrb[13].mxu0  ;;  %v1215_v26 = vld [vmem:[#allocation8 + $0x90] sm:$0xff] }
 0x31c   : > { %v953_v30 = vadd.f32 %v3470_v39, %v952_v28  ;;  %5161 = vmatpush3.bf16.msra.mxu0 %v5160_v25  ;;  %v1214_v25 = vld [vmem:[#allocation8 + $0x88] sm:$0xff]  ;;  %v1216_v28 = vld [vmem:[#allocation8 + $0x98] sm:$0xff] }
 0x31d   : > { %5162 = vmatprep.subr.bf16.mxu0 %v6111_v0 }
 0x31e   : > { %v5163_v31 = vpack.c.bf16 %v958_v27, %v953_v30  ;;  %v4170_v34 = vpop.f32.mrb[14].mxu0  ;;  %v1217_v30 = vld [vmem:[#allocation8 + $0xa0] sm:$0xff] }
 0x31f   : > { %v962_v36 = vpop.f32.mrb[15].mxu0  ;;  %v968_v38 = vadd.f32 %v4170_v34, %v3470_v39  ;;  %v1219_v34 = vld [vmem:[#allocation8 + $0xb0] sm:$0xff] }
 0x320   : > { %5164 = vmatpush3.bf16.msra.mxu0 %v5163_v31  ;;  %v1218_v31 = vld [vmem:[#allocation8 + $0xa8] sm:$0xff] }
 0x321   : > { %5165 = vmatprep.subr.bf16.mxu0 %v6111_v0 }
 0x396   : > { %v1042_v23 = vpop.xlane.xlu0 %1041 }
 0x397   : > { %v1043_v24 = vsub.f32 %v1038_v37, %v1042_v23  ;;  %v963_v37 = vadd.f32 %v3470_v39, %v962_v36  ;;  %v1128_v39 = vld [vmem:[#allocation12 + $0x20] sm:$0xff]  ;;  %v5216_v23 = vpack.c.bf16 %v1310_v22, %v1309_v21  ;;  %v1220_v36 = vld [vmem:[#allocation8 + $0xb8] sm:$0xff]  ;;  %v1322_v22 = vld [vmem:[#allocation9 + $0xe8] sm:$0xff] }
 0x398   : > { %v5175_v51 = vpack.c.bf16 %v1129_v50, %v1128_v39  ;;  %v1228_v39 = vld [vmem:[#allocation8 + $0xf8] sm:$0xff]  ;;  %v1321_v21 = vld [vmem:[#allocation9 + $0xe0] sm:$0xff] }
 0x399   : > { %v1044_v29 = vmul.f32 1.442695, %v1043_v24  ;;  %v5166_v40 = vpack.c.bf16 %v968_v38, %v963_v37  ;;  %v1213_v24 = vld [vmem:[#allocation8 + $0x80] sm:$0xff]  ;;  %v5202_v38 = vpack.c.bf16 %v1220_v36, %v1219_v34 }
 0x39a   : > { %v5193_v27 = vpack.c.bf16 %v1214_v25, %v1213_v24  ;;  %v1221_v37 = vld [vmem:[#allocation8 + $0xc0] sm:$0xff]  ;;  %v1324_v24 = vld [vmem:[#allocation9 + $0xf8] sm:$0xff] }
 0x39b   : > { %5782 = vpow2.f32 %v1044_v29  ;;  %5167 = vmatpush3.bf16.msra.mxu0 %v5166_v40  ;;  %v5196_v29 = vpack.c.bf16 %v1216_v28, %v1215_v26  ;;  %v1222_v40 = vld [vmem:[#allocation8 + $0xc8] sm:$0xff]  ;;  %v3474_v28 = vld [vmem:[%s7018_s7 + $0x1] ss:$0 sm:$0xff] }
 0x39c   : > { %5168 = vmatprep.subr.bf16.mxu0 %v6111_v0  ;;  %5194 = vmatpush3.bf16.msra.mxu1 %v5193_v27 }
 0x39d   : > { %5195 = vmatprep.subr.bf16.mxu1 %v6111_v0 }
 0x3a0   : > { %5197 = vmatpush3.bf16.msra.mxu1 %v5196_v29 }
 0x3a1   : > { %5198 = vmatprep.subr.bf16.mxu1 %v6111_v0 }
 0x3a5   : > { %v5783_v33 = vpop.eup %5782 }
 0x3a6   : > { %1046 = vadd.xlane.f32.xlu0 %v5783_v33 }
 0x433   : > { %v1047_v41 = vpop.xlane.xlu0 %1046 }
 0x434   : > { %5784 = vrcp.f32 %v1047_v41  ;;  %v5205_v41 = vpack.c.bf16 %v1222_v40, %v1221_v37 }
 0x43e   : > { %v5785_v44 = vpop.eup %5784 }
 0x43f   : > { %v6614_v46 = vmul.f32 %v5785_v44, %v5783_v33  ;;  %v5199_v33 = vpack.c.bf16 %v1218_v31, %v1217_v30  ;;  %v5208_v44 = vpack.c.bf16 %v1224_v43, %v1223_v42 }
 0x441   : > { %4239 = vmatmul.mubr.f32.vlgmr.msra.gmra.mrb[16].mxu0 %v6614_v46  ;;  %5200 = vmatpush3.bf16.msra.mxu1 %v5199_v33 }
 0x442   : > { %5170 = vmatpush3.bf16.msra.mxu0 %v5169_v45  ;;  %4273 = vmatprep.mubr.msk.f32.mxu0 %vm6112_vm0, %v6113_v1  ;;  %v1225_v45 = vld [vmem:[#allocation8 + $0xe0] sm:$0xff] }
 0x443   : > { %5171 = vmatprep.subr.bf16.mxu0 %v6111_v0  ;;  %5201 = vmatprep.subr.bf16.mxu1 %v6111_v0  ;;  %v5211_v48 = vpack.c.bf16 %v1226_v47, %v1225_v45 }
 0x445   : > { %5203 = vmatpush3.bf16.msra.mxu1 %v5202_v38 }
 0x446   : > { %5173 = vmatpush3.bf16.msra.mxu0 %v5172_v49  ;;  %5204 = vmatprep.subr.bf16.mxu1 %v6111_v0  ;;  %v1227_v49 = vld [vmem:[#allocation8 + $0xf0] sm:$0xff] }
 0x447   : > { %5174 = vmatprep.subr.bf16.mxu0 %v6111_v0  ;;  %v5214_v50 = vpack.c.bf16 %v1228_v39, %v1227_v49 }
 0x449   : > { %5206 = vmatpush3.bf16.msra.mxu1 %v5205_v41 }
 0x44a   : > { %5176 = vmatpush3.bf16.msra.mxu0 %v5175_v51  ;;  %5207 = vmatprep.subr.bf16.mxu1 %v6111_v0  ;;  %v1311_v51 = vld [vmem:[#allocation9 + $0x90] sm:$0xff] }
 0x44b   : > { %5177 = vmatprep.subr.bf16.mxu0 %v6111_v0  ;;  %v5220_v7 = vpack.c.bf16 %v1312_v6, %v1311_v51 }
 0x44d   : > { %5209 = vmatpush3.bf16.msra.mxu1 %v5208_v44 }
 0x44e   : > { %5179 = vmatpush3.bf16.msra.mxu0 %v5178_v8  ;;  %5210 = vmatprep.subr.bf16.mxu1 %v6111_v0 }
 0x44f   : > { %5180 = vmatprep.subr.bf16.mxu0 %v6111_v0 }
 0x451   : > { %5212 = vmatpush3.bf16.msra.mxu1 %v5211_v48 }
 0x452   : > { %5182 = vmatpush3.bf16.msra.mxu0 %v5181_v11  ;;  %5213 = vmatprep.subr.bf16.mxu1 %v6111_v0 }
 0x453   : > { %5183 = vmatprep.subr.bf16.mxu0 %v6111_v0 }
 0x455   : > { %5215 = vmatpush3.bf16.msra.mxu1 %v5214_v50 }
 0x456   : > { %5185 = vmatpush3.bf16.msra.mxu0 %v5184_v15  ;;  %v1316_v15 = vld [vmem:[#allocation9 + $0xb8] sm:$0xff] }
 0x457   : > { %5186 = vmatprep.subr.bf16.mxu0 %v6111_v0 }
 0x458   : > { %4309 = vmatmul.mubr.f32.vlgmr.msra.gmra.mrb[20].mxu1 %v6499_v32  ;;  %v5228_v32 = vpack.c.bf16 %v1316_v15, %v1315_v13 }
 0x459   : > { %4399 = vmatprep.mubr.f32.mxu1 %v6489_v14 }
 0x45a   : > { %5188 = vmatpush3.bf16.msra.mxu0 %v5187_v17  ;;  %v5232_v17 = vpack.c.bf16 %v1318_v5, %v1317_v16 }
 0x45b   : > { %5189 = vmatprep.subr.bf16.mxu0 %v6111_v0 }
 0x45e   : > { %5191 = vmatpush3.bf16.msra.mxu0 %v5190_v20  ;;  %v5236_v20 = vpack.c.bf16 %v1320_v19, %v1319_v18 }
 0x45f   : > { %5217 = vmatprep.subr.bf16.mxu0 %v5216_v23 }
 0x514   : > { %v1119_v8 = vpop.f32.mrb[16].mxu0 }
 0x515   : > { %v4240_v11 = vpop.f32.mrb[17].mxu0  ;;  %4274 = vmatmul.mubr.f32.vlgmr.msra.gmra.mrb[18].mxu0 %v1119_v8 }
 0x516   : > { %5219 = vmatpush3.bf16.msra.mxu0 %v5216_v23  ;;  %4343 = vmatprep.mubr.f32.mxu0 %v6489_v14  ;;  %v5240_v14 = vpack.c.bf16 %v1322_v22, %v1321_v21  ;;  %v1323_v23 = vld [vmem:[#allocation9 + $0xf0] sm:$0xff] }
 0x517   : > { %5221 = vmatprep.subr.bf16.mxu0 %v5220_v7  ;;  %v5244_v25 = vpack.c.bf16 %v1324_v24, %v1323_v23  ;;  %v3472_v24 = vld [vmem:[%s7017_s6 + $0x1] ss:$0 sm:$0xff] }
 0x51a   : > { %5223 = vmatpush3.bf16.msra.mxu0 %v5220_v7 }
 0x51b   : > { %5225 = vmatprep.subr.bf16.mxu0 %v5224_v12 }
 0x51e   : > { %5227 = vmatpush3.bf16.msra.mxu0 %v5224_v12 }
 0x51f   : > { %5229 = vmatprep.subr.bf16.mxu0 %v5228_v32 }
 0x522   : > { %5231 = vmatpush3.bf16.msra.mxu0 %v5228_v32 }
 0x523   : > { %5233 = vmatprep.subr.bf16.mxu0 %v5232_v17 }
 0x526   : > { %5235 = vmatpush3.bf16.msra.mxu0 %v5232_v17 }
 0x527   : > { %5237 = vmatprep.subr.bf16.mxu0 %v5236_v20 }
 0x52a   : > { %5239 = vmatpush3.bf16.msra.mxu0 %v5236_v20 }
 0x52b   : > { %5241 = vmatprep.subr.bf16.mxu0 %v5240_v14  ;;  %v1303_v26 = vpop.f32.mrb[20].mxu1 }
 0x52c   : > { %v4310_v27 = vpop.f32.mrb[21].mxu1 }
 0x52e   : > { %5243 = vmatpush3.bf16.msra.mxu0 %v5240_v14 }
 0x52f   : > { %5245 = vmatprep.subr.bf16.mxu0 %v5244_v25 }
 0x532   : > { %5247 = vmatpush3.bf16.msra.mxu0 %v5244_v25  ;;  %v1304_v25 = vadd.f32 %v3472_v24, %v1303_v26 }
 0x533   : > { %5280 = vmatprep.subr.bf16.mxu0 %v6111_v0 }
 0x534   : > { %v1307_v27 = vmul.f32 0.35355338, %v1304_v25 }
 0x535   : > { %4344 = vmatmul.mubr.f32.vlgmr.msra.gmra.mrb[20].mxu0 %v6504_v52 }
 0x536   : > { %4346 = vmatprep.mubr.f32.mxu0 %v6507_v53 }
 0x539   : > { %4347 = vmatmul.mubr.f32.gmra.mrb[22].mxu0 %v6513_v54 }
 0x53a   : > { %4349 = vmatprep.mubr.f32.mxu0 %v6516_v55 }
 0x53d   : > { %4350 = vmatmul.mubr.f32.gmra.mrb[24].mxu0 %v6521_v56 }
 0x53e   : > { %4352 = vmatprep.mubr.f32.mxu0 %v6524_v57 }
 0x541   : > { %4353 = vmatmul.mubr.f32.gmra.mrb[26].mxu0 %v6529_v58 }
 0x542   : > { %4355 = vmatprep.mubr.f32.mxu0 %v6532_v59 }
 0x545   : > { %4356 = vmatmul.mubr.f32.gmra.mrb[28].mxu0 %v6537_v60 }
 0x546   : > { %4358 = vmatprep.mubr.f32.mxu0 %v6540_v61 }
 0x549   : > { %4359 = vmatmul.mubr.f32.gmra.mrb[30].mxu0 %v6545_v62 }
 0x54a   : > { %4361 = vmatprep.mubr.f32.mxu0 %v6548_v63 }
 0x54d   : > { %4362 = vmatmul.mubr.f32.gmra.mrb[32].mxu0 %v6553_v2 }
 0x54e   : > { %4364 = vmatprep.mubr.f32.mxu0 %v6556_v3 }
 0x551   : > { %4365 = vmatmul.mubr.f32.gmra.mrb[34].mxu0 %v6561_v4 }
 0x552   : > { %4455 = vmatprep.mubr.msk.f32.mxu0 %vm6112_vm0, %v6113_v1 }
 0x608   : > { %v4345_v29 = vpop.f32.mrb[20].mxu0 }
 0x609   : > { %v1405_v30 = vadd.f32 %v4345_v29, %v3474_v28  ;;  %v1399_v31 = vpop.f32.mrb[21].mxu0  ;;  %v1480_v29 = vld [vmem:[#allocation11 + $0x88] sm:$0xff] }
 0x60a   : > { %v1400_v33 = vadd.f32 %v3474_v28, %v1399_v31 }
 0x60c   : > { %v5281_v34 = vpack.c.bf16 %v1405_v30, %v1400_v33  ;;  %v4348_v36 = vpop.f32.mrb[22].mxu0  ;;  %v1481_v30 = vld [vmem:[#allocation11 + $0x90] sm:$0xff]  ;;  %v1482_v33 = vld [vmem:[#allocation11 + $0x98] sm:$0xff] }
 0x60d   : > { %v1415_v38 = vadd.f32 %v4348_v36, %v3474_v28  ;;  %v1409_v37 = vpop.f32.mrb[23].mxu0  ;;  %v1483_v36 = vld [vmem:[#allocation11 + $0xa0] sm:$0xff] }
 0x60e   : > { %5282 = vmatpush3.bf16.xpose.msra.mxu0 %v5281_v34  ;;  %v1410_v40 = vadd.f32 %v3474_v28, %v1409_v37  ;;  %v5252_v34 = vpack.c.bf16 %v1482_v33, %v1481_v30  ;;  %v1485_v37 = vld [vmem:[#allocation11 + $0xb0] sm:$0xff] }
 0x60f   : > { %5283 = vmatprep.subr.bf16.mxu0 %v6111_v0 }
 0x610   : > { %v5284_v41 = vpack.c.bf16 %v1415_v38, %v1410_v40  ;;  %v4351_v42 = vpop.f32.mrb[24].mxu0  ;;  %v1484_v38 = vld [vmem:[#allocation11 + $0xa8] sm:$0xff]  ;;  %v1486_v40 = vld [vmem:[#allocation11 + $0xb8] sm:$0xff] }
 0x611   : > { %v1425_v43 = vadd.f32 %v4351_v42, %v3474_v28  ;;  %v1419_v44 = vpop.f32.mrb[25].mxu0  ;;  %v5256_v26 = vpack.c.bf16 %v1484_v38, %v1483_v36  ;;  %v1487_v42 = vld [vmem:[#allocation11 + $0xc0] sm:$0xff] }
 0x612   : > { %v1420_v45 = vadd.f32 %v3474_v28, %v1419_v44 }
 0x614   : > { %v5287_v47 = vpack.c.bf16 %v1425_v43, %v1420_v45  ;;  %v4354_v48 = vpop.f32.mrb[26].mxu0  ;;  %v1488_v43 = vld [vmem:[#allocation11 + $0xc8] sm:$0xff]  ;;  %v1489_v45 = vld [vmem:[#allocation11 + $0xd0] sm:$0xff] }
 0x615   : > { %v1435_v49 = vadd.f32 %v4354_v48, %v3474_v28  ;;  %v1429_v39 = vpop.f32.mrb[27].mxu0  ;;  %v5264_v44 = vpack.c.bf16 %v1488_v43, %v1487_v42  ;;  %v1802_v42 = vld [vmem:[#allocation12 + $0x80] sm:$0xff]  ;;  %v1803_v43 = vld [vmem:[#allocation12 + $0x88] sm:$0xff] }
 0x616   : > { %5285 = vmatpush3.bf16.xpose.msra.mxu0 %v5284_v41  ;;  %v1430_v50 = vadd.f32 %v3474_v28, %v1429_v39  ;;  %v5260_v41 = vpack.c.bf16 %v1486_v40, %v1485_v37  ;;  %v1492_v39 = vld [vmem:[#allocation11 + $0xe8] sm:$0xff] }
 0x617   : > { %5286 = vmatprep.subr.bf16.mxu0 %v6111_v0 }
 0x618   : > { %v5290_v51 = vpack.c.bf16 %v1435_v49, %v1430_v50  ;;  %v4357_v6 = vpop.f32.mrb[28].mxu0  ;;  %v1491_v49 = vld [vmem:[#allocation11 + $0xe0] sm:$0xff] }
 0x619   : > { %v1445_v7 = vadd.f32 %v4357_v6, %v3474_v28  ;;  %v1439_v8 = vpop.f32.mrb[29].mxu0  ;;  %v5272_v50 = vpack.c.bf16 %v1492_v39, %v1491_v49  ;;  %v1494_v6 = vld [vmem:[#allocation11 + $0xf8] sm:$0xff]  ;;  %v1806_v49 = vld [vmem:[#allocation12 + $0xa0] sm:$0xff]  ;;  %v1807_v39 = vld [vmem:[#allocation12 + $0xa8] sm:$0xff] }
 0x61a   : > { %v1440_v9 = vadd.f32 %v3474_v28, %v1439_v8 }
 0x61c   : > { %v5293_v10 = vpack.c.bf16 %v1445_v7, %v1440_v9  ;;  %v4360_v11 = vpop.f32.mrb[30].mxu0 }
 0x61d   : > { %v1455_v12 = vadd.f32 %v4360_v11, %v3474_v28  ;;  %v1449_v13 = vpop.f32.mrb[31].mxu0 }
 0x61e   : > { %5288 = vmatpush3.bf16.xpose.msra.mxu0 %v5287_v47  ;;  %v1450_v15 = vadd.f32 %v3474_v28, %v1449_v13  ;;  %v1490_v47 = vld [vmem:[#allocation11 + $0xd8] sm:$0xff] }
 0x61f   : > { %5289 = vmatprep.subr.bf16.mxu0 %v6111_v0  ;;  %v5268_v48 = vpack.c.bf16 %v1490_v47, %v1489_v45  ;;  %v5329_v45 = vpack.c.bf16 %v1803_v43, %v1802_v42  ;;  %v1805_v47 = vld [vmem:[#allocation12 + $0x98] sm:$0xff]  ;;  %v6725_v42 = vld [vmem:[%s6465_s9] sm:$0xff] }
 0x620   : > { %v5296_v32 = vpack.c.bf16 %v1455_v12, %v1450_v15  ;;  %v4363_v16 = vpop.f32.mrb[32].mxu0 }
 0x621   : > { %v1465_v5 = vadd.f32 %v4363_v16, %v3474_v28  ;;  %v1459_v17 = vpop.f32.mrb[33].mxu0 }
 0x622   : > { %v1460_v18 = vadd.f32 %v3474_v28, %v1459_v17 }
 0x624   : > { %v5299_v19 = vpack.c.bf16 %v1465_v5, %v1460_v18  ;;  %v4366_v20 = vpop.f32.mrb[34].mxu0 }
 0x625   : > { %v1475_v21 = vadd.f32 %v4366_v20, %v3474_v28  ;;  %v1469_v22 = vpop.f32.mrb[35].mxu0 }
 0x626   : > { %5291 = vmatpush3.bf16.xpose.msra.mxu0 %v5290_v51  ;;  %v1470_v14 = vadd.f32 %v3474_v28, %v1469_v22  ;;  %v1479_v28 = vld [vmem:[#allocation11 + $0x80] sm:$0xff]  ;;  %v1493_v51 = vld [vmem:[#allocation11 + $0xf0] sm:$0xff] }
 0x627   : > { %5292 = vmatprep.subr.bf16.mxu0 %v6111_v0  ;;  %v5248_v31 = vpack.c.bf16 %v1480_v29, %v1479_v28  ;;  %v5276_v7 = vpack.c.bf16 %v1494_v6, %v1493_v51  ;;  %v1808_v51 = vld [vmem:[#allocation12 + $0xb0] sm:$0xff]  ;;  %v1809_v6 = vld [vmem:[#allocation12 + $0xb8] sm:$0xff] }
 0x628   : > { %v5302_v23 = vpack.c.bf16 %v1475_v21, %v1470_v14 }
 0x629   : > { %5249 = vmatprep.subr.bf16.mxu1 %v5248_v31 }
 0x62a   : > { %5251 = vmatpush3.bf16.msra.mxu1 %v5248_v31 }
 0x62b   : > { %5253 = vmatprep.subr.bf16.mxu1 %v5252_v34 }
 0x62e   : > { %5294 = vmatpush3.bf16.xpose.msra.mxu0 %v5293_v10  ;;  %5255 = vmatpush3.bf16.msra.mxu1 %v5252_v34 }
 0x62f   : > { %5295 = vmatprep.subr.bf16.mxu0 %v6111_v0  ;;  %5257 = vmatprep.subr.bf16.mxu1 %v5256_v26 }
 0x632   : > { %5259 = vmatpush3.bf16.msra.mxu1 %v5256_v26 }
 0x633   : > { %5261 = vmatprep.subr.bf16.mxu1 %v5260_v41 }
 0x636   : > { %5297 = vmatpush3.bf16.xpose.msra.mxu0 %v5296_v32  ;;  %5263 = vmatpush3.bf16.msra.mxu1 %v5260_v41 }
 0x637   : > { %5298 = vmatprep.subr.bf16.mxu0 %v6111_v0  ;;  %5265 = vmatprep.subr.bf16.mxu1 %v5264_v44 }
 0x63a   : > { %5267 = vmatpush3.bf16.msra.mxu1 %v5264_v44  ;;  %v1804_v44 = vld [vmem:[#allocation12 + $0x90] sm:$0xff] }
 0x63b   : > { %5269 = vmatprep.subr.bf16.mxu1 %v5268_v48 }
 0x63e   : > { %5300 = vmatpush3.bf16.xpose.msra.mxu0 %v5299_v19  ;;  %5271 = vmatpush3.bf16.msra.mxu1 %v5268_v48  ;;  %v5332_v48 = vpack.c.bf16 %v1805_v47, %v1804_v44  ;;  %v1993_v44 = vld [vmem:[#allocation9 + $0x130] sm:$0xff] }
 0x63f   : > { %5301 = vmatprep.subr.bf16.mxu0 %v6111_v0  ;;  %5273 = vmatprep.subr.bf16.mxu1 %v5272_v50 }
 0x642   : > { %5275 = vmatpush3.bf16.msra.mxu1 %v5272_v50  ;;  %v5335_v50 = vpack.c.bf16 %v1807_v39, %v1806_v49  ;;  %v1996_v49 = vld [vmem:[#allocation9 + $0x148] sm:$0xff] }
 0x643   : > { %5277 = vmatprep.subr.bf16.mxu1 %v5276_v7 }
 0x646   : > { %5303 = vmatpush3.bf16.xpose.msra.mxu0 %v5302_v23  ;;  %5279 = vmatpush3.bf16.msra.mxu1 %v5276_v7  ;;  %v5338_v7 = vpack.c.bf16 %v1809_v6, %v1808_v51  ;;  %v1998_v51 = vld [vmem:[#allocation9 + $0x158] sm:$0xff] }
 0x647   : > { %5328 = vmatprep.subr.bf16.mxu0 %v6111_v0  ;;  %5304 = vmatprep.subr.bf16.mxu1 %v6111_v0 }
 0x649   : > { %4400 = vmatmul.mubr.f32.vlgmr.msra.gmra.mrb[22].mxu1 %v6504_v52 }
 0x64a   : > { %4402 = vmatprep.mubr.f32.mxu1 %v6507_v53 }
 0x64d   : > { %4456 = vmatmul.mubr.f32.vlgmr.msra.gmra.mrb[36].mxu0 %v1307_v27  ;;  %4403 = vmatmul.mubr.f32.gmra.mrb[24].mxu1 %v6513_v54 }
 0x64e   : > { %4525 = vmatprep.mubr.msk.f32.mxu0 %vm6112_vm0, %v6113_v1  ;;  %4405 = vmatprep.mubr.f32.mxu1 %v6516_v55  ;;  %v3476_v55 = vld [vmem:[%s7019_s8 + $0x1] ss:$0 sm:$0xff] }
 0x64f   : > { %5330 = vmatpush3.bf16.msra.mxu0 %v5329_v45  ;;  %v1994_v45 = vld [vmem:[#allocation9 + $0x138] sm:$0xff] }
 0x650   : > { %5331 = vmatprep.subr.bf16.mxu0 %v6111_v0  ;;  %v5388_v47 = vpack.c.bf16 %v1994_v45, %v1993_v44 }
 0x651   : > { %4406 = vmatmul.mubr.f32.gmra.mrb[26].mxu1 %v6521_v56 }
 0x652   : > { %4408 = vmatprep.mubr.f32.mxu1 %v6524_v57 }
 0x653   : > { %5333 = vmatpush3.bf16.msra.mxu0 %v5332_v48  ;;  %v1995_v48 = vld [vmem:[#allocation9 + $0x140] sm:$0xff] }
 0x654   : > { %5334 = vmatprep.subr.bf16.mxu0 %v6111_v0  ;;  %v5392_v39 = vpack.c.bf16 %v1996_v49, %v1995_v48 }
 0x655   : > { %4409 = vmatmul.mubr.f32.gmra.mrb[28].mxu1 %v6529_v58 }
 0x656   : > { %4411 = vmatprep.mubr.f32.mxu1 %v6532_v59 }
 0x657   : > { %5336 = vmatpush3.bf16.msra.mxu0 %v5335_v50  ;;  %v1997_v50 = vld [vmem:[#allocation9 + $0x150] sm:$0xff] }
 0x658   : > { %5337 = vmatprep.subr.bf16.mxu0 %v6111_v0  ;;  %v5396_v6 = vpack.c.bf16 %v1998_v51, %v1997_v50 }
 0x659   : > { %4412 = vmatmul.mubr.f32.gmra.mrb[30].mxu1 %v6537_v60 }
 0x65a   : > { %4414 = vmatprep.mubr.f32.mxu1 %v6540_v61 }
 0x65b   : > { %5339 = vmatpush3.bf16.msra.mxu0 %v5338_v7  ;;  %v1999_v7 = vld [vmem:[#allocation9 + $0x160] sm:$0xff] }
 0x65c   : > { %5340 = vmatprep.subr.bf16.mxu0 %v6111_v0 }
 0x65d   : > { %4415 = vmatmul.mubr.f32.gmra.mrb[32].mxu1 %v6545_v62 }
 0x65e   : > { %4417 = vmatprep.mubr.f32.mxu1 %v6548_v63 }
 0x661   : > { %4418 = vmatmul.mubr.f32.gmra.mrb[34].mxu1 %v6553_v2 }
 0x662   : > { %4420 = vmatprep.mubr.f32.mxu1 %v6556_v3 }
 0x665   : > { %4421 = vmatmul.mubr.f32.gmra.mrb[36].mxu1 %v6561_v4 }
 0x666   : > { %4490 = vmatprep.mubr.msk.f32.mxu1 %vm6112_vm0, %v6113_v1 }
 0x71c   : > { %v4401_v56 = vpop.f32.mrb[22].mxu1 }
 0x71d   : > { %v1575_v57 = vadd.f32 %v4401_v56, %v3476_v55  ;;  %v1569_v58 = vpop.f32.mrb[23].mxu1  ;;  %v1813_v56 = vld [vmem:[#allocation12 + $0xd8] sm:$0xff] }
 0x71e   : > { %v1570_v59 = vadd.f32 %v3476_v55, %v1569_v58  ;;  %v1814_v58 = vld [vmem:[#allocation12 + $0xe0] sm:$0xff] }
 0x720   : > { %v1714_v52 = vpop.f32.mrb[36].mxu0  ;;  %v5305_v60 = vpack.c.bf16 %v1575_v57, %v1570_v59  ;;  %v4404_v61 = vpop.f32.mrb[24].mxu1  ;;  %v1815_v59 = vld [vmem:[#allocation12 + $0xe8] sm:$0xff] }
 0x721   : > { %v1715_v53 = vadd.f32 %v1714_v52, %v6600_v35  ;;  %v4457_v54 = vpop.f32.mrb[37].mxu0  ;;  %v1585_v62 = vadd.f32 %v4404_v61, %v3476_v55  ;;  %v1579_v63 = vpop.f32.mrb[25].mxu1  ;;  %v1810_v52 = vld [vmem:[#allocation12 + $0xc0] sm:$0xff]  ;;  %v5347_v61 = vpack.c.bf16 %v1815_v59, %v1814_v58  ;;  %v6734_v58 = vld [vmem:[%s6465_s9 + $0x10] sm:$0xff]  ;;  %v6738_v59 = vld [vmem:[%s6465_s9 + $0x18] sm:$0xff] }
 0x722   : > { %v1580_v2 = vadd.f32 %v3476_v55, %v1579_v63  ;;  %5306 = vmatpush3.bf16.msra.mxu1 %v5305_v60  ;;  %v1817_v63 = vld [vmem:[#allocation12 + $0xf8] sm:$0xff] }
 0x723   : > { %1718 = vmax.xlane.f32.xlu1 %v1715_v53  ;;  %5307 = vmatprep.subr.bf16.mxu1 %v6111_v0 }
 0x724   : > { %v5308_v3 = vpack.c.bf16 %v1585_v62, %v1580_v2  ;;  %v4407_v4 = vpop.f32.mrb[26].mxu1  ;;  %v1816_v62 = vld [vmem:[#allocation12 + $0xf0] sm:$0xff] }
 0x725   : > { %v1595_v8 = vadd.f32 %v4407_v4, %v3476_v55  ;;  %v1589_v9 = vpop.f32.mrb[27].mxu1  ;;  %v5350_v2 = vpack.c.bf16 %v1817_v63, %v1816_v62  ;;  %v1892_v4 = vld [vmem:[#allocation8 + $0x108] sm:$0xff]  ;;  %v6750_v62 = vld [vmem:[%s6465_s9 + $0x30] sm:$0xff]  ;;  %v6754_v63 = vld [vmem:[%s6465_s9 + $0x38] sm:$0xff] }
 0x726   : > { %v1590_v10 = vadd.f32 %v3476_v55, %v1589_v9  ;;  %5309 = vmatpush3.bf16.msra.mxu1 %v5308_v3  ;;  %v1891_v3 = vld [vmem:[#allocation8 + $0x100] sm:$0xff] }
 0x727   : > { %5310 = vmatprep.subr.bf16.mxu1 %v6111_v0  ;;  %v5353_v9 = vpack.c.bf16 %v1892_v4, %v1891_v3  ;;  %v6762_v3 = vld [vmem:[%s6465_s9 + $0x48] sm:$0xff]  ;;  %v6766_v4 = vld [vmem:[%s6465_s9 + $0x50] sm:$0xff] }
 0x728   : > { %v5311_v11 = vpack.c.bf16 %v1595_v8, %v1590_v10  ;;  %v4410_v12 = vpop.f32.mrb[28].mxu1 }
 0x729   : > { %v1605_v13 = vadd.f32 %v4410_v12, %v3476_v55  ;;  %v1599_v15 = vpop.f32.mrb[29].mxu1  ;;  %v1894_v12 = vld [vmem:[#allocation8 + $0x118] sm:$0xff] }
 0x72a   : > { %v1600_v32 = vadd.f32 %v3476_v55, %v1599_v15  ;;  %5312 = vmatpush3.bf16.msra.mxu1 %v5311_v11  ;;  %v1893_v11 = vld [vmem:[#allocation8 + $0x110] sm:$0xff] }
 0x72b   : > { %5313 = vmatprep.subr.bf16.mxu1 %v6111_v0  ;;  %v5356_v15 = vpack.c.bf16 %v1894_v12, %v1893_v11  ;;  %v6782_v11 = vld [vmem:[%s6465_s9 + $0x70] sm:$0xff]  ;;  %v6786_v12 = vld [vmem:[%s6465_s9 + $0x78] sm:$0xff] }
 0x72c   : > { %v5314_v16 = vpack.c.bf16 %v1605_v13, %v1600_v32  ;;  %v4413_v5 = vpop.f32.mrb[30].mxu1  ;;  %v1895_v32 = vld [vmem:[#allocation8 + $0x120] sm:$0xff] }
 0x72d   : > { %v1615_v17 = vadd.f32 %v4413_v5, %v3476_v55  ;;  %v1609_v18 = vpop.f32.mrb[31].mxu1 }
 0x72e   : > { %v1610_v19 = vadd.f32 %v3476_v55, %v1609_v18  ;;  %5315 = vmatpush3.bf16.msra.mxu1 %v5314_v16  ;;  %v1896_v16 = vld [vmem:[#allocation8 + $0x128] sm:$0xff]  ;;  %v1898_v18 = vld [vmem:[#allocation8 + $0x138] sm:$0xff] }
 0x72f   : > { %5316 = vmatprep.subr.bf16.mxu1 %v6111_v0  ;;  %v5359_v5 = vpack.c.bf16 %v1896_v16, %v1895_v32 }
 0x730   : > { %v5317_v20 = vpack.c.bf16 %v1615_v17, %v1610_v19  ;;  %v4416_v21 = vpop.f32.mrb[32].mxu1  ;;  %v1897_v17 = vld [vmem:[#allocation8 + $0x130] sm:$0xff] }
 0x731   : > { %v1625_v22 = vadd.f32 %v4416_v21, %v3476_v55  ;;  %v1619_v14 = vpop.f32.mrb[33].mxu1  ;;  %v5362_v19 = vpack.c.bf16 %v1898_v18, %v1897_v17  ;;  %v3480_v17 = vld [vmem:[%s7018_s7 + $0x2] ss:$0 sm:$0xff] }
 0x732   : > { %v1620_v23 = vadd.f32 %v3476_v55, %v1619_v14  ;;  %5318 = vmatpush3.bf16.msra.mxu1 %v5317_v20  ;;  %v1900_v20 = vld [vmem:[#allocation8 + $0x148] sm:$0xff]  ;;  %v1902_v14 = vld [vmem:[#allocation8 + $0x158] sm:$0xff] }
 0x733   : > { %5319 = vmatprep.subr.bf16.mxu1 %v6111_v0 }
 0x734   : > { %v5320_v27 = vpack.c.bf16 %v1625_v22, %v1620_v23  ;;  %v4419_v28 = vpop.f32.mrb[34].mxu1  ;;  %v1901_v22 = vld [vmem:[#allocation8 + $0x150] sm:$0xff] }
 0x735   : > { %v1635_v31 = vadd.f32 %v4419_v28, %v3476_v55  ;;  %v1629_v33 = vpop.f32.mrb[35].mxu1  ;;  %v5368_v23 = vpack.c.bf16 %v1902_v14, %v1901_v22  ;;  %v1905_v28 = vld [vmem:[#allocation8 + $0x170] sm:$0xff] }
 0x736   : > { %5321 = vmatpush3.bf16.msra.mxu1 %v5320_v27  ;;  %v1630_v34 = vadd.f32 %v3476_v55, %v1629_v33 }
 0x737   : > { %5322 = vmatprep.subr.bf16.mxu1 %v6111_v0 }
 0x738   : > { %v5323_v36 = vpack.c.bf16 %v1635_v31, %v1630_v34  ;;  %v4422_v38 = vpop.f32.mrb[36].mxu1  ;;  %v1988_v31 = vld [vmem:[#allocation9 + $0x108] sm:$0xff] }
 0x739   : > { %v1639_v26 = vpop.f32.mrb[37].mxu1  ;;  %v1645_v37 = vadd.f32 %v4422_v38, %v3476_v55  ;;  %v1990_v38 = vld [vmem:[#allocation9 + $0x118] sm:$0xff] }
 0x73a   : > { %v1640_v40 = vadd.f32 %v3476_v55, %v1639_v26  ;;  %5324 = vmatpush3.bf16.msra.mxu1 %v5323_v36  ;;  %v1812_v55 = vld [vmem:[#allocation12 + $0xd0] sm:$0xff] }
 0x73b   : > { %5325 = vmatprep.subr.bf16.mxu1 %v6111_v0  ;;  %v5344_v57 = vpack.c.bf16 %v1813_v56, %v1812_v55  ;;  %v1989_v36 = vld [vmem:[#allocation9 + $0x110] sm:$0xff]  ;;  %v2002_v55 = vld [vmem:[#allocation9 + $0x178] sm:$0xff] }
 0x73c   : > { %v5326_v41 = vpack.c.bf16 %v1645_v37, %v1640_v40  ;;  %v5380_v26 = vpack.c.bf16 %v1990_v38, %v1989_v36  ;;  %v1991_v37 = vld [vmem:[#allocation9 + $0x120] sm:$0xff]  ;;  %v1992_v40 = vld [vmem:[#allocation9 + $0x128] sm:$0xff] }
 0x73d   : > { %v5384_v43 = vpack.c.bf16 %v1992_v40, %v1991_v37 }
 0x73e   : > { %5327 = vmatpush3.bf16.msra.mxu1 %v5326_v41  ;;  %v6721_v41 = vld [vmem:[%s437_s27] sm:$0xff] }
 0x73f   : > { %5352 = vmatprep.subr.bf16.mxu1 %v6111_v0 }
 0x7b0   : > { %v1719_v24 = vpop.xlane.xlu1 %1718 }
 0x7b1   : > { %v1720_v25 = vsub.f32 %v1715_v53, %v1719_v24  ;;  %v1811_v53 = vld [vmem:[#allocation12 + $0xc8] sm:$0xff]  ;;  %v1903_v24 = vld [vmem:[#allocation8 + $0x160] sm:$0xff] }
 0x7b2   : > { %v5341_v54 = vpack.c.bf16 %v1811_v53, %v1810_v52  ;;  %v2000_v52 = vld [vmem:[#allocation9 + $0x168] sm:$0xff] }
 0x7b3   : > { %v1721_v29 = vmul.f32 1.442695, %v1720_v25  ;;  %v1904_v25 = vld [vmem:[#allocation8 + $0x168] sm:$0xff]  ;;  %v5400_v53 = vpack.c.bf16 %v2000_v52, %v1999_v7 }
 0x7b4   : > { %5342 = vmatpush3.bf16.msra.mxu0 %v5341_v54  ;;  %v5371_v27 = vpack.c.bf16 %v1904_v25, %v1903_v24  ;;  %v2001_v54 = vld [vmem:[#allocation9 + $0x170] sm:$0xff] }
 0x7b5   : > { %5786 = vpow2.f32 %v1721_v29  ;;  %5343 = vmatprep.subr.bf16.mxu0 %v6111_v0  ;;  %v1906_v29 = vld [vmem:[#allocation8 + $0x178] sm:$0xff]  ;;  %v5404_v56 = vpack.c.bf16 %v2002_v55, %v2001_v54 }
 0x7b6   : > { %v5374_v33 = vpack.c.bf16 %v1906_v29, %v1905_v28 }
 0x7b8   : > { %5345 = vmatpush3.bf16.msra.mxu0 %v5344_v57  ;;  %v6730_v57 = vld [vmem:[%s6465_s9 + $0x8] sm:$0xff] }
 0x7b9   : > { %5346 = vmatprep.subr.bf16.mxu0 %v6111_v0 }
 0x7bc   : > { %5348 = vmatpush3.bf16.msra.mxu0 %v5347_v61  ;;  %v6746_v61 = vld [vmem:[%s6465_s9 + $0x28] sm:$0xff] }
 0x7bd   : > { %5349 = vmatprep.subr.bf16.mxu0 %v6111_v0 }
 0x7bf   : > { %v5787_v30 = vpop.eup %5786 }
 0x7c0   : > { %1723 = vadd.xlane.f32.xlu1 %v5787_v30  ;;  %5351 = vmatpush3.bf16.msra.mxu0 %v5350_v2  ;;  %v6758_v2 = vld [vmem:[%s6465_s9 + $0x40] sm:$0xff] }
 0x84d   : > { %v1724_v60 = vpop.xlane.xlu1 %1723 }
 0x84e   : > { %5788 = vrcp.f32 %v1724_v60  ;;  %v6742_v60 = vld [vmem:[%s6465_s9 + $0x20] sm:$0xff] }
 0x858   : > { %v5789_v8 = vpop.eup %5788 }
 0x859   : > { %v1726_v10 = vmul.f32 %v5789_v8, %v5787_v30  ;;  %v1987_v30 = vld [vmem:[#allocation9 + $0x100] sm:$0xff]  ;;  %v6770_v8 = vld [vmem:[%s6465_s9 + $0x58] sm:$0xff] }
 0x85a   : > { %v5376_v34 = vpack.c.bf16 %v1988_v31, %v1987_v30 }
 0x85b   : > { %v6708_v13 = vadd.f32 %v1726_v10, %v6614_v46  ;;  %4491 = vmatmul.mubr.f32.vlgmr.msra.gmra.mrb[38].mxu1 %v1726_v10  ;;  %v1899_v46 = vld [vmem:[#allocation8 + $0x140] sm:$0xff]  ;;  %v6778_v10 = vld [vmem:[%s6465_s9 + $0x68] sm:$0xff] }
 0x85c   : > { %5354 = vmatpush3.bf16.msra.mxu1 %v5353_v9  ;;  %4560 = vmatprep.mubr.msk.f32.mxu1 %vm6112_vm0, %v6113_v1  ;;  %v5365_v21 = vpack.c.bf16 %v1900_v20, %v1899_v46  ;;  %v6774_v9 = vld [vmem:[%s6465_s9 + $0x60] sm:$0xff]  ;;  %s6938_s9 = scalar_lea.hbm %s7060_s15, %s3491_s0 }
 0x85d   : > { %5355 = vmatprep.subr.bf16.mxu1 %v6111_v0 }
 0x860   : > { %5357 = vmatpush3.bf16.msra.mxu1 %v5356_v15 }
 0x861   : > { %5358 = vmatprep.subr.bf16.mxu1 %v6111_v0 }
 0x864   : > { %5360 = vmatpush3.bf16.msra.mxu1 %v5359_v5 }
 0x865   : > { %5361 = vmatprep.subr.bf16.mxu1 %v6111_v0 }
 0x868   : > { %5363 = vmatpush3.bf16.msra.mxu1 %v5362_v19 }
 0x869   : > { %5364 = vmatprep.subr.bf16.mxu1 %v6111_v0 }
 0x86c   : > { %5366 = vmatpush3.bf16.msra.mxu1 %v5365_v21 }
 0x86d   : > { %5367 = vmatprep.subr.bf16.mxu1 %v6111_v0 }
 0x870   : > { %5369 = vmatpush3.bf16.msra.mxu1 %v5368_v23 }
 0x871   : > { %5370 = vmatprep.subr.bf16.mxu1 %v6111_v0 }
 0x874   : > { %5372 = vmatpush3.bf16.msra.mxu1 %v5371_v27 }
 0x875   : > { %5373 = vmatprep.subr.bf16.mxu1 %v6111_v0 }
 0x878   : > { %5375 = vmatpush3.bf16.msra.mxu1 %v5374_v33 }
 0x879   : > { %5377 = vmatprep.subr.bf16.mxu1 %v5376_v34 }
 0x87b   : > { %4561 = vmatmul.mubr.f32.vlgmr.msra.gmra.mrb[40].mxu1 %v6721_v41 }
 0x87c   : > { %5379 = vmatpush3.bf16.msra.mxu1 %v5376_v34  ;;  %4595 = vmatprep.mubr.f32.mxu1 %v6725_v42 }
 0x87d   : > { %5381 = vmatprep.subr.bf16.mxu1 %v5380_v26 }
 0x880   : > { %5383 = vmatpush3.bf16.msra.mxu1 %v5380_v26 }
 0x881   : > { %5385 = vmatprep.subr.bf16.mxu1 %v5384_v43 }
 0x884   : > { %5387 = vmatpush3.bf16.msra.mxu1 %v5384_v43 }
 0x885   : > { %5389 = vmatprep.subr.bf16.mxu1 %v5388_v47 }
 0x888   : > { %5391 = vmatpush3.bf16.msra.mxu1 %v5388_v47 }
 0x889   : > { %5393 = vmatprep.subr.bf16.mxu1 %v5392_v39 }
 0x88c   : > { %5395 = vmatpush3.bf16.msra.mxu1 %v5392_v39 }
 0x88d   : > { %5397 = vmatprep.subr.bf16.mxu1 %v5396_v6 }
 0x890   : > { %5399 = vmatpush3.bf16.msra.mxu1 %v5396_v6 }
 0x891   : > { %5401 = vmatprep.subr.bf16.mxu1 %v5400_v53 }
 0x894   : > { %5403 = vmatpush3.bf16.msra.mxu1 %v5400_v53 }
 0x895   : > { %5405 = vmatprep.subr.bf16.mxu1 %v5404_v56 }
 0x898   : > { %5407 = vmatpush3.bf16.msra.mxu1 %v5404_v56 }
 0x899   : > { %5440 = vmatprep.subr.bf16.mxu1 %v6111_v0 }
 0x89b   : > { %4596 = vmatmul.mubr.f32.vlgmr.msra.gmra.mrb[42].mxu1 %v6730_v57 }
 0x89c   : > { %4598 = vmatprep.mubr.f32.mxu1 %v6734_v58 }
 0x89f   : > { %4599 = vmatmul.mubr.f32.gmra.mrb[44].mxu1 %v6738_v59 }
 0x8a0   : > { %4601 = vmatprep.mubr.f32.mxu1 %v6742_v60 }
 0x8a3   : > { %4602 = vmatmul.mubr.f32.gmra.mrb[46].mxu1 %v6746_v61 }
 0x8a4   : > { %4604 = vmatprep.mubr.f32.mxu1 %v6750_v62 }
 0x8a7   : > { %4605 = vmatmul.mubr.f32.gmra.mrb[48].mxu1 %v6754_v63 }
 0x8a8   : > { %4607 = vmatprep.mubr.f32.mxu1 %v6758_v2 }
 0x8ab   : > { %4608 = vmatmul.mubr.f32.gmra.mrb[50].mxu1 %v6762_v3 }
 0x8ac   : > { %4610 = vmatprep.mubr.f32.mxu1 %v6766_v4 }
 0x8af   : > { %4611 = vmatmul.mubr.f32.gmra.mrb[52].mxu1 %v6770_v8 }
 0x8b0   : > { %4613 = vmatprep.mubr.f32.mxu1 %v6774_v9 }
 0x8b3   : > { %4614 = vmatmul.mubr.f32.gmra.mrb[54].mxu1 %v6778_v10 }
 0x8b4   : > { %4616 = vmatprep.mubr.f32.mxu1 %v6782_v11 }
 0x8b7   : > { %4617 = vmatmul.mubr.f32.gmra.mrb[56].mxu1 %v6786_v12 }
 0x8b8   : > { %4707 = vmatprep.mubr.msk.f32.mxu1 %vm6112_vm0, %v6113_v1 }
 0x92e   : > { %v1796_v15 = vpop.f32.mrb[38].mxu1 }
 0x92f   : > { %v4492_v32 = vpop.f32.mrb[39].mxu1  ;;  %4526 = vmatmul.mubr.f32.vlgmr.msra.gmra.mrb[18].mxu0 %v1796_v15 }
 0x930   : > { %4651 = vmatprep.mubr.f32.mxu0 %v6725_v42 }
 0x94e   : > { %v1981_v16 = vpop.f32.mrb[40].mxu1 }
 0x94f   : > { %v4562_v5 = vpop.f32.mrb[41].mxu1 }
 0x950   : > { %v3478_v5 = vld [vmem:[%s7017_s6 + $0x2] ss:$0 sm:$0xff] }
 0x96e   : > { %v4597_v18 = vpop.f32.mrb[42].mxu1 }
 0x96f   : > { %v2083_v19 = vadd.f32 %v4597_v18, %v3480_v17  ;;  %v2077_v46 = vpop.f32.mrb[43].mxu1  ;;  %v1982_v18 = vadd.f32 %v3478_v5, %v1981_v16  ;;  %v2163_v16 = vld [vmem:[#allocation11 + $0x130] sm:$0xff] }
 0x970   : > { %v2078_v20 = vadd.f32 %v3480_v17, %v2077_v46  ;;  %v2158_v46 = vld [vmem:[#allocation11 + $0x108] sm:$0xff] }
 0x972   : > { %v5441_v21 = vpack.c.bf16 %v2083_v19, %v2078_v20  ;;  %v4600_v22 = vpop.f32.mrb[44].mxu1  ;;  %v2157_v19 = vld [vmem:[#allocation11 + $0x100] sm:$0xff]  ;;  %v2159_v20 = vld [vmem:[#allocation11 + $0x110] sm:$0xff] }
 0x973   : > { %v2093_v14 = vadd.f32 %v4600_v22, %v3480_v17  ;;  %v2087_v23 = vpop.f32.mrb[45].mxu1  ;;  %v2160_v22 = vld [vmem:[#allocation11 + $0x118] sm:$0xff] }
 0x974   : > { %5442 = vmatpush3.bf16.xpose.msra.mxu1 %v5441_v21  ;;  %v2088_v24 = vadd.f32 %v3480_v17, %v2087_v23  ;;  %v5408_v21 = vpack.c.bf16 %v2158_v46, %v2157_v19  ;;  %v2161_v23 = vld [vmem:[#allocation11 + $0x120] sm:$0xff] }
 0x975   : > { %5443 = vmatprep.subr.bf16.mxu1 %v6111_v0 }
 0x976   : > { %v5444_v25 = vpack.c.bf16 %v2093_v14, %v2088_v24  ;;  %v4603_v27 = vpop.f32.mrb[46].mxu1  ;;  %v5412_v14 = vpack.c.bf16 %v2160_v22, %v2159_v20  ;;  %v2162_v24 = vld [vmem:[#allocation11 + $0x128] sm:$0xff]  ;;  %5409 = vmatprep.subr.bf16.mxu0 %v5408_v21 }
 0x977   : > { %v2103_v28 = vadd.f32 %v4603_v27, %v3480_v17  ;;  %v2097_v29 = vpop.f32.mrb[47].mxu1  ;;  %5411 = vmatpush3.bf16.msra.mxu0 %v5408_v21  ;;  %v2164_v27 = vld [vmem:[#allocation11 + $0x138] sm:$0xff] }
 0x978   : > { %v2098_v30 = vadd.f32 %v3480_v17, %v2097_v29  ;;  %5413 = vmatprep.subr.bf16.mxu0 %v5412_v14  ;;  %v2165_v29 = vld [vmem:[#allocation11 + $0x140] sm:$0xff] }
 0x97a   : > { %v5447_v31 = vpack.c.bf16 %v2103_v28, %v2098_v30  ;;  %v4606_v33 = vpop.f32.mrb[48].mxu1  ;;  %v5420_v28 = vpack.c.bf16 %v2164_v27, %v2163_v16  ;;  %v2166_v30 = vld [vmem:[#allocation11 + $0x148] sm:$0xff] }
 0x97b   : > { %v2113_v34 = vadd.f32 %v4606_v33, %v3480_v17  ;;  %v2107_v36 = vpop.f32.mrb[49].mxu1  ;;  %5415 = vmatpush3.bf16.msra.mxu0 %v5412_v14  ;;  %v2167_v33 = vld [vmem:[#allocation11 + $0x150] sm:$0xff] }
 0x97c   : > { %5445 = vmatpush3.bf16.xpose.msra.mxu1 %v5444_v25  ;;  %v2108_v38 = vadd.f32 %v3480_v17, %v2107_v36  ;;  %v5416_v25 = vpack.c.bf16 %v2162_v24, %v2161_v23 }
 0x97d   : > { %5446 = vmatprep.subr.bf16.mxu1 %v6111_v0 }
 0x97e   : > { %v5450_v26 = vpack.c.bf16 %v2113_v34, %v2108_v38  ;;  %v4609_v37 = vpop.f32.mrb[50].mxu1  ;;  %5417 = vmatprep.subr.bf16.mxu0 %v5416_v25  ;;  %v2168_v34 = vld [vmem:[#allocation11 + $0x158] sm:$0xff]  ;;  %v2169_v38 = vld [vmem:[#allocation11 + $0x160] sm:$0xff] }
 0x97f   : > { %v2123_v40 = vadd.f32 %v4609_v37, %v3480_v17  ;;  %v2117_v43 = vpop.f32.mrb[51].mxu1  ;;  %5419 = vmatpush3.bf16.msra.mxu0 %v5416_v25  ;;  %v5428_v36 = vpack.c.bf16 %v2168_v34, %v2167_v33 }
 0x980   : > { %v2118_v44 = vadd.f32 %v3480_v17, %v2117_v43  ;;  %5421 = vmatprep.subr.bf16.mxu0 %v5420_v28  ;;  %v2172_v43 = vld [vmem:[#allocation11 + $0x178] sm:$0xff] }
 0x982   : > { %v5453_v45 = vpack.c.bf16 %v2123_v40, %v2118_v44  ;;  %v4612_v47 = vpop.f32.mrb[52].mxu1  ;;  %v2171_v40 = vld [vmem:[#allocation11 + $0x170] sm:$0xff] }
 0x983   : > { %v2133_v48 = vadd.f32 %v4612_v47, %v3480_v17  ;;  %v2127_v49 = vpop.f32.mrb[53].mxu1  ;;  %5423 = vmatpush3.bf16.msra.mxu0 %v5420_v28  ;;  %v5436_v44 = vpack.c.bf16 %v2172_v43, %v2171_v40 }
 0x984   : > { %5448 = vmatpush3.bf16.xpose.msra.mxu1 %v5447_v31  ;;  %v2128_v39 = vadd.f32 %v3480_v17, %v2127_v49  ;;  %v5424_v31 = vpack.c.bf16 %v2166_v30, %v2165_v29  ;;  %v3482_v49 = vld [vmem:[%s7019_s8 + $0x2] ss:$0 sm:$0xff] }
 0x985   : > { %5449 = vmatprep.subr.bf16.mxu1 %v6111_v0 }
 0x986   : > { %v5456_v50 = vpack.c.bf16 %v2133_v48, %v2128_v39  ;;  %v4615_v51 = vpop.f32.mrb[54].mxu1  ;;  %5425 = vmatprep.subr.bf16.mxu0 %v5424_v31 }
 0x987   : > { %v2143_v6 = vadd.f32 %v4615_v51, %v3480_v17  ;;  %v2137_v7 = vpop.f32.mrb[55].mxu1  ;;  %5427 = vmatpush3.bf16.msra.mxu0 %v5424_v31 }
 0x988   : > { %v2138_v52 = vadd.f32 %v3480_v17, %v2137_v7  ;;  %5429 = vmatprep.subr.bf16.mxu0 %v5428_v36 }
 0x98a   : > { %v5459_v53 = vpack.c.bf16 %v2143_v6, %v2138_v52  ;;  %v4618_v54 = vpop.f32.mrb[56].mxu1 }
 0x98b   : > { %v2153_v55 = vadd.f32 %v4618_v54, %v3480_v17  ;;  %v2147_v56 = vpop.f32.mrb[57].mxu1  ;;  %5431 = vmatpush3.bf16.msra.mxu0 %v5428_v36 }
 0x98c   : > { %5451 = vmatpush3.bf16.xpose.msra.mxu1 %v5450_v26  ;;  %v2148_v15 = vadd.f32 %v3480_v17, %v2147_v56  ;;  %v1985_v17 = vmul.f32 0.35355338, %v1982_v18  ;;  %v2170_v26 = vld [vmem:[#allocation11 + $0x168] sm:$0xff] }
 0x98d   : > { %5452 = vmatprep.subr.bf16.mxu1 %v6111_v0  ;;  %v5432_v37 = vpack.c.bf16 %v2170_v26, %v2169_v38 }
 0x98e   : > { %v5462_v32 = vpack.c.bf16 %v2153_v55, %v2148_v15 }
 0x98f   : > { %5433 = vmatprep.subr.bf16.mxu0 %v5432_v37 }
 0x990   : > { %5435 = vmatpush3.bf16.msra.mxu0 %v5432_v37 }
 0x991   : > { %5437 = vmatprep.subr.bf16.mxu0 %v5436_v44 }
 0x994   : > { %5454 = vmatpush3.bf16.xpose.msra.mxu1 %v5453_v45  ;;  %5439 = vmatpush3.bf16.msra.mxu0 %v5436_v44 }
 0x995   : > { %5455 = vmatprep.subr.bf16.mxu1 %v6111_v0  ;;  %5464 = vmatprep.subr.bf16.mxu0 %v6111_v0 }
 0x997   : > { %4652 = vmatmul.mubr.f32.vlgmr.msra.gmra.mrb[38].mxu0 %v6730_v57 }
 0x998   : > { %4654 = vmatprep.mubr.f32.mxu0 %v6734_v58 }
 0x99b   : > { %4655 = vmatmul.mubr.f32.gmra.mrb[40].mxu0 %v6738_v59 }
 0x99c   : > { %5457 = vmatpush3.bf16.xpose.msra.mxu1 %v5456_v50  ;;  %4657 = vmatprep.mubr.f32.mxu0 %v6742_v60 }
 0x99d   : > { %5458 = vmatprep.subr.bf16.mxu1 %v6111_v0 }
 0x99f   : > { %4658 = vmatmul.mubr.f32.gmra.mrb[42].mxu0 %v6746_v61 }
 0x9a0   : > { %4660 = vmatprep.mubr.f32.mxu0 %v6750_v62 }
 0x9a3   : > { %4661 = vmatmul.mubr.f32.gmra.mrb[44].mxu0 %v6754_v63 }
 0x9a4   : > { %5460 = vmatpush3.bf16.xpose.msra.mxu1 %v5459_v53  ;;  %4663 = vmatprep.mubr.f32.mxu0 %v6758_v2 }
 0x9a5   : > { %5461 = vmatprep.subr.bf16.mxu1 %v6111_v0 }
 0x9a7   : > { %4664 = vmatmul.mubr.f32.gmra.mrb[46].mxu0 %v6762_v3 }
 0x9a8   : > { %4666 = vmatprep.mubr.f32.mxu0 %v6766_v4 }
 0x9ab   : > { %4667 = vmatmul.mubr.f32.gmra.mrb[48].mxu0 %v6770_v8 }
 0x9ac   : > { %5463 = vmatpush3.bf16.xpose.msra.mxu1 %v5462_v32  ;;  %4669 = vmatprep.mubr.f32.mxu0 %v6774_v9 }
 0x9ad   : > { %5512 = vmatprep.subr.bf16.mxu1 %v6111_v0 }
 0x9af   : > { %4670 = vmatmul.mubr.f32.gmra.mrb[50].mxu0 %v6778_v10 }
 0x9b0   : > { %4672 = vmatprep.mubr.f32.mxu0 %v6782_v11 }
 0x9b3   : > { %4708 = vmatmul.mubr.f32.vlgmr.msra.gmra.mrb[58].mxu1 %v1985_v17  ;;  %4673 = vmatmul.mubr.f32.gmra.mrb[52].mxu0 %v6786_v12 }
 0x9b4   : > { %4812 = vmatprep.mubr.msk.f32.mxu1 %vm6112_vm0, %v6113_v1  ;;  %4742 = vmatprep.mubr.msk.f32.mxu0 %vm6112_vm0, %v6113_v1 }
 0xa6a   : > { %v4653_v39 = vpop.f32.mrb[38].mxu0 }
 0xa6b   : > { %v2253_v50 = vadd.f32 %v4653_v39, %v3482_v49  ;;  %v2247_v51 = vpop.f32.mrb[39].mxu0 }
 0xa6c   : > { %v2248_v6 = vadd.f32 %v3482_v49, %v2247_v51 }
 0xa6e   : > { %v5465_v7 = vpack.c.bf16 %v2253_v50, %v2248_v6  ;;  %v4656_v52 = vpop.f32.mrb[40].mxu0  ;;  %v2480_v6 = vld [vmem:[#allocation12 + $0x100] sm:$0xff] }
 0xa6f   : > { %v2263_v53 = vadd.f32 %v4656_v52, %v3482_v49  ;;  %v2257_v54 = vpop.f32.mrb[41].mxu0 }
 0xa70   : > { %v2258_v55 = vadd.f32 %v3482_v49, %v2257_v54  ;;  %5466 = vmatpush3.bf16.msra.mxu0 %v5465_v7  ;;  %v2481_v7 = vld [vmem:[#allocation12 + $0x108] sm:$0xff] }
 0xa71   : > { %5467 = vmatprep.subr.bf16.mxu0 %v6111_v0 }
 0xa72   : > { %v5468_v56 = vpack.c.bf16 %v2263_v53, %v2258_v55  ;;  %v4659_v15 = vpop.f32.mrb[42].mxu0  ;;  %v5489_v53 = vpack.c.bf16 %v2481_v7, %v2480_v6  ;;  %v2482_v55 = vld [vmem:[#allocation12 + $0x110] sm:$0xff] }
 0xa73   : > { %v2273_v32 = vadd.f32 %v4659_v15, %v3482_v49  ;;  %v2267_v5 = vpop.f32.mrb[43].mxu0  ;;  %v2579_v7 = vld [vmem:[#allocation8 + $0x1d0] sm:$0xff] }
 0xa74   : > { %v2268_v18 = vadd.f32 %v3482_v49, %v2267_v5  ;;  %5469 = vmatpush3.bf16.msra.mxu0 %v5468_v56  ;;  %v2483_v56 = vld [vmem:[#allocation12 + $0x118] sm:$0xff]  ;;  %v2485_v5 = vld [vmem:[#allocation12 + $0x128] sm:$0xff] }
 0xa75   : > { %5470 = vmatprep.subr.bf16.mxu0 %v6111_v0 }
 0xa76   : > { %v5471_v17 = vpack.c.bf16 %v2273_v32, %v2268_v18  ;;  %v4662_v19 = vpop.f32.mrb[44].mxu0  ;;  %v5492_v32 = vpack.c.bf16 %v2483_v56, %v2482_v55  ;;  %v2582_v55 = vld [vmem:[#allocation8 + $0x1e8] sm:$0xff] }
 0xa77   : > { %v2283_v46 = vadd.f32 %v4662_v19, %v3482_v49  ;;  %v2277_v20 = vpop.f32.mrb[45].mxu0  ;;  %v2487_v19 = vld [vmem:[#allocation12 + $0x138] sm:$0xff] }
 0xa78   : > { %v2278_v21 = vadd.f32 %v3482_v49, %v2277_v20  ;;  %5472 = vmatpush3.bf16.msra.mxu0 %v5471_v17  ;;  %v2486_v17 = vld [vmem:[#allocation12 + $0x130] sm:$0xff]  ;;  %v2489_v20 = vld [vmem:[#allocation12 + $0x148] sm:$0xff] }
 0xa79   : > { %5473 = vmatprep.subr.bf16.mxu0 %v6111_v0 }
 0xa7a   : > { %v5474_v22 = vpack.c.bf16 %v2283_v46, %v2278_v21  ;;  %v4665_v14 = vpop.f32.mrb[46].mxu0  ;;  %v5498_v46 = vpack.c.bf16 %v2487_v19, %v2486_v17  ;;  %v2668_v17 = vld [vmem:[#allocation9 + $0x198] sm:$0xff] }
 0xa7b   : > { %v2293_v23 = vadd.f32 %v4665_v14, %v3482_v49  ;;  %v2287_v24 = vpop.f32.mrb[47].mxu0  ;;  %v2491_v14 = vld [vmem:[#allocation12 + $0x158] sm:$0xff] }
 0xa7c   : > { %v2288_v25 = vadd.f32 %v3482_v49, %v2287_v24  ;;  %5475 = vmatpush3.bf16.msra.mxu0 %v5474_v22  ;;  %v2490_v22 = vld [vmem:[#allocation12 + $0x150] sm:$0xff]  ;;  %v2492_v24 = vld [vmem:[#allocation12 + $0x160] sm:$0xff] }
 0xa7d   : > { %5476 = vmatprep.subr.bf16.mxu0 %v6111_v0 }
 0xa7e   : > { %v5477_v16 = vpack.c.bf16 %v2293_v23, %v2288_v25  ;;  %v4668_v27 = vpop.f32.mrb[48].mxu0  ;;  %v5504_v23 = vpack.c.bf16 %v2491_v14, %v2490_v22  ;;  %v2493_v25 = vld [vmem:[#allocation12 + $0x168] sm:$0xff]  ;;  %v2671_v14 = vld [vmem:[#allocation9 + $0x1b0] sm:$0xff] }
 0xa7f   : > { %v2303_v28 = vadd.f32 %v4668_v27, %v3482_v49  ;;  %v2297_v29 = vpop.f32.mrb[49].mxu0  ;;  %v2494_v27 = vld [vmem:[#allocation12 + $0x170] sm:$0xff] }
 0xa80   : > { %v2298_v30 = vadd.f32 %v3482_v49, %v2297_v29  ;;  %5478 = vmatpush3.bf16.msra.mxu0 %v5477_v16  ;;  %v5507_v16 = vpack.c.bf16 %v2493_v25, %v2492_v24  ;;  %v2673_v24 = vld [vmem:[#allocation9 + $0x1c0] sm:$0xff]  ;;  %v2674_v25 = vld [vmem:[#allocation9 + $0x1c8] sm:$0xff] }
 0xa81   : > { %5479 = vmatprep.subr.bf16.mxu0 %v6111_v0 }
 0xa82   : > { %v5480_v34 = vpack.c.bf16 %v2303_v28, %v2298_v30  ;;  %v4671_v36 = vpop.f32.mrb[50].mxu0  ;;  %v2495_v28 = vld [vmem:[#allocation12 + $0x178] sm:$0xff]  ;;  %v2665_v30 = vld [vmem:[#allocation9 + $0x180] sm:$0xff] }
 0xa83   : > { %v2313_v38 = vadd.f32 %v4671_v36, %v3482_v49  ;;  %v2307_v26 = vpop.f32.mrb[51].mxu0  ;;  %v5510_v29 = vpack.c.bf16 %v2495_v28, %v2494_v27  ;;  %v2570_v36 = vld [vmem:[#allocation8 + $0x188] sm:$0xff]  ;;  %v2675_v27 = vld [vmem:[#allocation9 + $0x1d0] sm:$0xff]  ;;  %v2676_v28 = vld [vmem:[#allocation9 + $0x1d8] sm:$0xff] }
 0xa84   : > { %v2308_v40 = vadd.f32 %v3482_v49, %v2307_v26  ;;  %5481 = vmatpush3.bf16.msra.mxu0 %v5480_v34  ;;  %v2569_v34 = vld [vmem:[#allocation8 + $0x180] sm:$0xff] }
 0xa85   : > { %5482 = vmatprep.subr.bf16.mxu0 %v6111_v0  ;;  %v5513_v26 = vpack.c.bf16 %v2570_v36, %v2569_v34  ;;  %v2680_v34 = vld [vmem:[#allocation9 + $0x1f8] sm:$0xff] }
 0xa86   : > { %v2392_v45 = vpop.f32.mrb[58].mxu1  ;;  %v5483_v43 = vpack.c.bf16 %v2313_v38, %v2308_v40  ;;  %v2571_v38 = vld [vmem:[#allocation8 + $0x190] sm:$0xff] }
 0xa87   : > { %v2393_v47 = vadd.f32 %v2392_v45, %v6600_v35  ;;  %v4709_v48 = vpop.f32.mrb[59].mxu1  ;;  %v4674_v45 = vpop.f32.mrb[52].mxu0  ;;  %5514 = vmatpush3.bf16.msra.mxu1 %v5513_v26 }
 0xa88   : > { %5484 = vmatpush3.bf16.msra.mxu0 %v5483_v43  ;;  %v2317_v48 = vpop.f32.mrb[53].mxu0  ;;  %v2323_v39 = vadd.f32 %v4674_v45, %v3482_v49  ;;  %5515 = vmatprep.subr.bf16.mxu1 %v6111_v0  ;;  %v2573_v43 = vld [vmem:[#allocation8 + $0x1a0] sm:$0xff] }
 0xa89   : > { %2396 = vmax.xlane.f32.xlu0 %v2393_v47  ;;  %5485 = vmatprep.subr.bf16.mxu0 %v6111_v0 }
 0xb16   : > { %v2397_v31 = vpop.xlane.xlu0 %2396 }
 0xb17   : > { %v2398_v33 = vsub.f32 %v2393_v47, %v2397_v31  ;;  %v2318_v47 = vadd.f32 %v3482_v49, %v2317_v48  ;;  %v2484_v49 = vld [vmem:[#allocation12 + $0x120] sm:$0xff]  ;;  %v2666_v31 = vld [vmem:[#allocation9 + $0x188] sm:$0xff]  ;;  %v2575_v48 = vld [vmem:[#allocation8 + $0x1b0] sm:$0xff] }
 0xb18   : > { %v5495_v18 = vpack.c.bf16 %v2485_v5, %v2484_v49  ;;  %v2584_v49 = vld [vmem:[#allocation8 + $0x1f8] sm:$0xff] }
 0xb19   : > { %v2399_v37 = vmul.f32 1.442695, %v2398_v33  ;;  %v5486_v50 = vpack.c.bf16 %v2323_v39, %v2318_v47  ;;  %v5536_v33 = vpack.c.bf16 %v2666_v31, %v2665_v30  ;;  %v2576_v39 = vld [vmem:[#allocation8 + $0x1b8] sm:$0xff]  ;;  %v2677_v30 = vld [vmem:[#allocation9 + $0x1e0] sm:$0xff]  ;;  %v2678_v31 = vld [vmem:[#allocation9 + $0x1e8] sm:$0xff] }
 0xb1a   : > { %v5522_v47 = vpack.c.bf16 %v2576_v39, %v2575_v48 }
 0xb1b   : > { %5790 = vpow2.f32 %v2399_v37  ;;  %5487 = vmatpush3.bf16.msra.mxu0 %v5486_v50  ;;  %v2572_v37 = vld [vmem:[#allocation8 + $0x198] sm:$0xff]  ;;  %v2577_v50 = vld [vmem:[#allocation8 + $0x1c0] sm:$0xff] }
 0xb1c   : > { %5488 = vmatprep.subr.bf16.mxu0 %v6111_v0  ;;  %v5516_v40 = vpack.c.bf16 %v2572_v37, %v2571_v38  ;;  %v3486_v37 = vld [vmem:[%s7018_s7 + $0x3] ss:$0 sm:$0xff] }
 0xb1e   : > { %5517 = vmatpush3.bf16.msra.mxu1 %v5516_v40 }
 0xb1f   : > { %5518 = vmatprep.subr.bf16.mxu1 %v6111_v0 }
 0xb25   : > { %v5791_v44 = vpop.eup %5790 }
 0xb26   : > { %2401 = vadd.xlane.f32.xlu1 %v5791_v44 }
 0xbb3   : > { %v2402_v51 = vpop.xlane.xlu1 %2401 }
 0xbb4   : > { %5792 = vrcp.f32 %v2402_v51  ;;  %v2578_v51 = vld [vmem:[#allocation8 + $0x1c8] sm:$0xff] }
 0xbb5   : > { %v5525_v6 = vpack.c.bf16 %v2578_v51, %v2577_v50 }
 0xbbe   : > { %v5793_v52 = vpop.eup %5792 }
 0xbbf   : > { %v2404_v54 = vmul.f32 %v5793_v52, %v5791_v44  ;;  %v2574_v44 = vld [vmem:[#allocation8 + $0x1a8] sm:$0xff]  ;;  %v2580_v52 = vld [vmem:[#allocation8 + $0x1d8] sm:$0xff] }
 0xbc0   : > { %v5519_v45 = vpack.c.bf16 %v2574_v44, %v2573_v43 }
 0xbc1   : > { %v6839_v15 = vadd.f32 %v2404_v54, %v6708_v13  ;;  %4743 = vmatmul.mubr.f32.vlgmr.msra.gmra.mrb[54].mxu0 %v2404_v54  ;;  %v2488_v13 = vld [vmem:[#allocation12 + $0x140] sm:$0xff] }
 0xbc2   : > { %5490 = vmatpush3.bf16.msra.mxu0 %v5489_v53  ;;  %4777 = vmatprep.mubr.msk.f32.mxu0 %vm6112_vm0, %v6113_v1  ;;  %v5501_v21 = vpack.c.bf16 %v2489_v20, %v2488_v13  ;;  %v5528_v53 = vpack.c.bf16 %v2580_v52, %v2579_v7  ;;  %v2581_v54 = vld [vmem:[#allocation8 + $0x1e0] sm:$0xff]  ;;  %v2670_v20 = vld [vmem:[#allocation9 + $0x1a8] sm:$0xff] }
 0xbc3   : > { %5491 = vmatprep.subr.bf16.mxu0 %v6111_v0  ;;  %5520 = vmatpush3.bf16.msra.mxu1 %v5519_v45  ;;  %v5531_v56 = vpack.c.bf16 %v2582_v55, %v2581_v54  ;;  %v2669_v13 = vld [vmem:[#allocation9 + $0x1a0] sm:$0xff] }
 0xbc4   : > { %5521 = vmatprep.subr.bf16.mxu1 %v6111_v0  ;;  %v5544_v22 = vpack.c.bf16 %v2670_v20, %v2669_v13 }
 0xbc6   : > { %5493 = vmatpush3.bf16.msra.mxu0 %v5492_v32  ;;  %v2583_v32 = vld [vmem:[#allocation8 + $0x1f0] sm:$0xff] }
 0xbc7   : > { %5494 = vmatprep.subr.bf16.mxu0 %v6111_v0  ;;  %5523 = vmatpush3.bf16.msra.mxu1 %v5522_v47  ;;  %v5534_v5 = vpack.c.bf16 %v2584_v49, %v2583_v32 }
 0xbc8   : > { %5524 = vmatprep.subr.bf16.mxu1 %v6111_v0 }
 0xbca   : > { %5496 = vmatpush3.bf16.msra.mxu0 %v5495_v18  ;;  %v2667_v18 = vld [vmem:[#allocation9 + $0x190] sm:$0xff] }
 0xbcb   : > { %5497 = vmatprep.subr.bf16.mxu0 %v6111_v0  ;;  %5526 = vmatpush3.bf16.msra.mxu1 %v5525_v6  ;;  %v5540_v19 = vpack.c.bf16 %v2668_v17, %v2667_v18 }
 0xbcc   : > { %5527 = vmatprep.subr.bf16.mxu1 %v6111_v0 }
 0xbce   : > { %5499 = vmatpush3.bf16.msra.mxu0 %v5498_v46 }
 0xbcf   : > { %5500 = vmatprep.subr.bf16.mxu0 %v6111_v0  ;;  %5529 = vmatpush3.bf16.msra.mxu1 %v5528_v53 }
 0xbd0   : > { %5530 = vmatprep.subr.bf16.mxu1 %v6111_v0 }
 0xbd2   : > { %5502 = vmatpush3.bf16.msra.mxu0 %v5501_v21 }
 0xbd3   : > { %5503 = vmatprep.subr.bf16.mxu0 %v6111_v0  ;;  %5532 = vmatpush3.bf16.msra.mxu1 %v5531_v56 }
 0xbd4   : > { %5533 = vmatprep.subr.bf16.mxu1 %v6111_v0 }
 0xbd6   : > { %5505 = vmatpush3.bf16.msra.mxu0 %v5504_v23  ;;  %v2672_v23 = vld [vmem:[#allocation9 + $0x1b8] sm:$0xff] }
 0xbd7   : > { %5506 = vmatprep.subr.bf16.mxu0 %v6111_v0  ;;  %5535 = vmatpush3.bf16.msra.mxu1 %v5534_v5 }
 0xbda   : > { %5508 = vmatpush3.bf16.msra.mxu0 %v5507_v16  ;;  %4813 = vmatmul.mubr.f32.vlgmr.msra.gmra.mrb[60].mxu1 %v6721_v41  ;;  %v5548_v41 = vpack.c.bf16 %v2672_v23, %v2671_v14  ;;  %v5552_v16 = vpack.c.bf16 %v2674_v25, %v2673_v24 }
 0xbdb   : > { %5509 = vmatprep.subr.bf16.mxu0 %v6111_v0  ;;  %4903 = vmatprep.mubr.f32.mxu1 %v6725_v42 }
 0xbde   : > { %5511 = vmatpush3.bf16.msra.mxu0 %v5510_v29  ;;  %v5556_v29 = vpack.c.bf16 %v2676_v28, %v2675_v27 }
 0xbdf   : > { %5537 = vmatprep.subr.bf16.mxu0 %v5536_v33 }
 0xc94   : > { %v2474_v46 = vpop.f32.mrb[54].mxu0 }
 0xc95   : > { %v4744_v21 = vpop.f32.mrb[55].mxu0  ;;  %4778 = vmatmul.mubr.f32.vlgmr.msra.gmra.mrb[18].mxu0 %v2474_v46 }
 0xc96   : > { %5539 = vmatpush3.bf16.msra.mxu0 %v5536_v33  ;;  %4847 = vmatprep.mubr.f32.mxu0 %v6725_v42  ;;  %v5560_v42 = vpack.c.bf16 %v2678_v31, %v2677_v30  ;;  %v2679_v33 = vld [vmem:[#allocation9 + $0x1f0] sm:$0xff] }
 0xc97   : > { %5541 = vmatprep.subr.bf16.mxu0 %v5540_v19  ;;  %v5564_v36 = vpack.c.bf16 %v2680_v34, %v2679_v33  ;;  %v3484_v34 = vld [vmem:[%s7017_s6 + $0x3] ss:$0 sm:$0xff] }
 0xc9a   : > { %5543 = vmatpush3.bf16.msra.mxu0 %v5540_v19 }
 0xc9b   : > { %5545 = vmatprep.subr.bf16.mxu0 %v5544_v22 }
 0xc9e   : > { %5547 = vmatpush3.bf16.msra.mxu0 %v5544_v22 }
 0xc9f   : > { %5549 = vmatprep.subr.bf16.mxu0 %v5548_v41 }
 0xca2   : > { %5551 = vmatpush3.bf16.msra.mxu0 %v5548_v41 }
 0xca3   : > { %5553 = vmatprep.subr.bf16.mxu0 %v5552_v16 }
 0xca6   : > { %5555 = vmatpush3.bf16.msra.mxu0 %v5552_v16 }
 0xca7   : > { %5557 = vmatprep.subr.bf16.mxu0 %v5556_v29 }
 0xcaa   : > { %5559 = vmatpush3.bf16.msra.mxu0 %v5556_v29 }
 0xcab   : > { %5561 = vmatprep.subr.bf16.mxu0 %v5560_v42 }
 0xcad   : > { %v2659_v38 = vpop.f32.mrb[60].mxu1 }
 0xcae   : > { %5563 = vmatpush3.bf16.msra.mxu0 %v5560_v42  ;;  %v4814_v26 = vpop.f32.mrb[61].mxu1 }
 0xcaf   : > { %5565 = vmatprep.subr.bf16.mxu0 %v5564_v36 }
 0xcb2   : > { %5567 = vmatpush3.bf16.msra.mxu0 %v5564_v36  ;;  %v2660_v36 = vadd.f32 %v3484_v34, %v2659_v38 }
 0xcb3   : > { %5600 = vmatprep.subr.bf16.mxu0 %v6111_v0 }
 0xcb4   : > { %v2663_v26 = vmul.f32 0.35355338, %v2660_v36 }
 0xcb5   : > { %4848 = vmatmul.mubr.f32.vlgmr.msra.gmra.mrb[56].mxu0 %v6730_v57 }
 0xcb6   : > { %4850 = vmatprep.mubr.f32.mxu0 %v6734_v58 }
 0xcb9   : > { %4851 = vmatmul.mubr.f32.gmra.mrb[58].mxu0 %v6738_v59 }
 0xcba   : > { %4853 = vmatprep.mubr.f32.mxu0 %v6742_v60 }
 0xcbd   : > { %4854 = vmatmul.mubr.f32.gmra.mrb[60].mxu0 %v6746_v61 }
 0xcbe   : > { %4856 = vmatprep.mubr.f32.mxu0 %v6750_v62 }
 0xcc1   : > { %4857 = vmatmul.mubr.f32.gmra.mrb[62].mxu0 %v6754_v63 }
 0xcc2   : > { %4859 = vmatprep.mubr.f32.mxu0 %v6758_v2 }
 0xcc5   : > { %4860 = vmatmul.mubr.f32.gmra.mrb[64].mxu0 %v6762_v3 }
 0xcc6   : > { %4862 = vmatprep.mubr.f32.mxu0 %v6766_v4 }
 0xcc9   : > { %4863 = vmatmul.mubr.f32.gmra.mrb[66].mxu0 %v6770_v8 }
 0xcca   : > { %4865 = vmatprep.mubr.f32.mxu0 %v6774_v9 }
 0xccd   : > { %4866 = vmatmul.mubr.f32.gmra.mrb[68].mxu0 %v6778_v10 }
 0xcce   : > { %4868 = vmatprep.mubr.f32.mxu0 %v6782_v11 }
 0xcd1   : > { %4869 = vmatmul.mubr.f32.gmra.mrb[70].mxu0 %v6786_v12 }
 0xcd2   : > { %4959 = vmatprep.mubr.msk.f32.mxu0 %vm6112_vm0, %v6113_v1 }
 0xd88   : > { %v4849_v40 = vpop.f32.mrb[56].mxu0 }
 0xd89   : > { %v2761_v43 = vadd.f32 %v4849_v40, %v3486_v37  ;;  %v2755_v44 = vpop.f32.mrb[57].mxu0  ;;  %v2836_v40 = vld [vmem:[#allocation11 + $0x188] sm:$0xff] }
 0xd8a   : > { %v2756_v45 = vadd.f32 %v3486_v37, %v2755_v44 }
 0xd8c   : > { %v5601_v48 = vpack.c.bf16 %v2761_v43, %v2756_v45  ;;  %v4852_v39 = vpop.f32.mrb[58].mxu0  ;;  %v2837_v43 = vld [vmem:[#allocation11 + $0x190] sm:$0xff]  ;;  %v2838_v45 = vld [vmem:[#allocation11 + $0x198] sm:$0xff] }
 0xd8d   : > { %v2771_v47 = vadd.f32 %v4852_v39, %v3486_v37  ;;  %v2765_v50 = vpop.f32.mrb[59].mxu0  ;;  %v2839_v39 = vld [vmem:[#allocation11 + $0x1a0] sm:$0xff] }
 0xd8e   : > { %5602 = vmatpush3.bf16.xpose.msra.mxu0 %v5601_v48  ;;  %v2766_v51 = vadd.f32 %v3486_v37, %v2765_v50  ;;  %v5572_v48 = vpack.c.bf16 %v2838_v45, %v2837_v43  ;;  %v2841_v50 = vld [vmem:[#allocation11 + $0x1b0] sm:$0xff] }
 0xd8f   : > { %5603 = vmatprep.subr.bf16.mxu0 %v6111_v0 }
 0xd90   : > { %v5604_v6 = vpack.c.bf16 %v2771_v47, %v2766_v51  ;;  %v4855_v7 = vpop.f32.mrb[60].mxu0  ;;  %v2840_v47 = vld [vmem:[#allocation11 + $0x1a8] sm:$0xff]  ;;  %v2842_v51 = vld [vmem:[#allocation11 + $0x1b8] sm:$0xff] }
 0xd91   : > { %v2781_v52 = vadd.f32 %v4855_v7, %v3486_v37  ;;  %v2775_v53 = vpop.f32.mrb[61].mxu0  ;;  %v5576_v38 = vpack.c.bf16 %v2840_v47, %v2839_v39  ;;  %v2843_v7 = vld [vmem:[#allocation11 + $0x1c0] sm:$0xff] }
 0xd92   : > { %v2776_v54 = vadd.f32 %v3486_v37, %v2775_v53 }
 0xd94   : > { %v5607_v55 = vpack.c.bf16 %v2781_v52, %v2776_v54  ;;  %v4858_v56 = vpop.f32.mrb[62].mxu0  ;;  %v2844_v52 = vld [vmem:[#allocation11 + $0x1c8] sm:$0xff]  ;;  %v2845_v54 = vld [vmem:[#allocation11 + $0x1d0] sm:$0xff] }
 0xd95   : > { %v2791_v32 = vadd.f32 %v4858_v56, %v3486_v37  ;;  %v2785_v49 = vpop.f32.mrb[63].mxu0  ;;  %v5584_v53 = vpack.c.bf16 %v2844_v52, %v2843_v7  ;;  %v3160_v7 = vld [vmem:[#allocation12 + $0x190] sm:$0xff] }
 0xd96   : > { %5605 = vmatpush3.bf16.xpose.msra.mxu0 %v5604_v6  ;;  %v2786_v5 = vadd.f32 %v3486_v37, %v2785_v49  ;;  %v5580_v6 = vpack.c.bf16 %v2842_v51, %v2841_v50  ;;  %v2848_v49 = vld [vmem:[#allocation11 + $0x1e8] sm:$0xff]  ;;  %v3158_v51 = vld [vmem:[#allocation12 + $0x180] sm:$0xff] }
 0xd97   : > { %5606 = vmatprep.subr.bf16.mxu0 %v6111_v0 }
 0xd98   : > { %v5610_v18 = vpack.c.bf16 %v2791_v32, %v2786_v5  ;;  %v4861_v17 = vpop.f32.mrb[64].mxu0  ;;  %v2847_v32 = vld [vmem:[#allocation11 + $0x1e0] sm:$0xff] }
 0xd99   : > { %v2801_v19 = vadd.f32 %v4861_v17, %v3486_v37  ;;  %v2795_v46 = vpop.f32.mrb[65].mxu0  ;;  %v5592_v5 = vpack.c.bf16 %v2848_v49, %v2847_v32  ;;  %v2850_v17 = vld [vmem:[#allocation11 + $0x1f8] sm:$0xff]  ;;  %v3164_v49 = vld [vmem:[#allocation12 + $0x1b0] sm:$0xff] }
 0xd9a   : > { %v2796_v13 = vadd.f32 %v3486_v37, %v2795_v46 }
 0xd9c   : > { %v5613_v20 = vpack.c.bf16 %v2801_v19, %v2796_v13  ;;  %v4864_v21 = vpop.f32.mrb[66].mxu0 }
 0xd9d   : > { %v2811_v22 = vadd.f32 %v4864_v21, %v3486_v37  ;;  %v2805_v14 = vpop.f32.mrb[67].mxu0 }
 0xd9e   : > { %5608 = vmatpush3.bf16.xpose.msra.mxu0 %v5607_v55  ;;  %v2806_v23 = vadd.f32 %v3486_v37, %v2805_v14  ;;  %v2846_v55 = vld [vmem:[#allocation11 + $0x1d8] sm:$0xff] }
 0xd9f   : > { %5609 = vmatprep.subr.bf16.mxu0 %v6111_v0  ;;  %v5588_v56 = vpack.c.bf16 %v2846_v55, %v2845_v54  ;;  %v3162_v55 = vld [vmem:[#allocation12 + $0x1a0] sm:$0xff] }
 0xda0   : > { %v5616_v41 = vpack.c.bf16 %v2811_v22, %v2806_v23  ;;  %v4867_v24 = vpop.f32.mrb[68].mxu0 }
 0xda1   : > { %v2821_v25 = vadd.f32 %v4867_v24, %v3486_v37  ;;  %v2815_v16 = vpop.f32.mrb[69].mxu0 }
 0xda2   : > { %v2816_v27 = vadd.f32 %v3486_v37, %v2815_v16 }
 0xda4   : > { %v5619_v28 = vpack.c.bf16 %v2821_v25, %v2816_v27  ;;  %v4870_v29 = vpop.f32.mrb[70].mxu0 }
 0xda5   : > { %v2831_v30 = vadd.f32 %v4870_v29, %v3486_v37  ;;  %v2825_v31 = vpop.f32.mrb[71].mxu0 }
 0xda6   : > { %5611 = vmatpush3.bf16.xpose.msra.mxu0 %v5610_v18  ;;  %v2826_v42 = vadd.f32 %v3486_v37, %v2825_v31  ;;  %v2835_v37 = vld [vmem:[#allocation11 + $0x180] sm:$0xff]  ;;  %v2849_v18 = vld [vmem:[#allocation11 + $0x1f0] sm:$0xff] }
 0xda7   : > { %5612 = vmatprep.subr.bf16.mxu0 %v6111_v0  ;;  %v5568_v44 = vpack.c.bf16 %v2836_v40, %v2835_v37  ;;  %v5596_v19 = vpack.c.bf16 %v2850_v17, %v2849_v18  ;;  %v3166_v17 = vld [vmem:[#allocation12 + $0x1c0] sm:$0xff] }
 0xda8   : > { %v5622_v33 = vpack.c.bf16 %v2831_v30, %v2826_v42 }
 0xda9   : > { %5569 = vmatprep.subr.bf16.mxu1 %v5568_v44 }
 0xdaa   : > { %5571 = vmatpush3.bf16.msra.mxu1 %v5568_v44 }
 0xdab   : > { %5573 = vmatprep.subr.bf16.mxu1 %v5572_v48 }
 0xdae   : > { %5614 = vmatpush3.bf16.xpose.msra.mxu0 %v5613_v20  ;;  %5575 = vmatpush3.bf16.msra.mxu1 %v5572_v48 }
 0xdaf   : > { %5615 = vmatprep.subr.bf16.mxu0 %v6111_v0  ;;  %5577 = vmatprep.subr.bf16.mxu1 %v5576_v38 }
 0xdb2   : > { %5579 = vmatpush3.bf16.msra.mxu1 %v5576_v38 }
 0xdb3   : > { %5581 = vmatprep.subr.bf16.mxu1 %v5580_v6 }
 0xdb6   : > { %5617 = vmatpush3.bf16.xpose.msra.mxu0 %v5616_v41  ;;  %5583 = vmatpush3.bf16.msra.mxu1 %v5580_v6  ;;  %v3159_v6 = vld [vmem:[#allocation12 + $0x188] sm:$0xff] }
 0xdb7   : > { %5618 = vmatprep.subr.bf16.mxu0 %v6111_v0  ;;  %5585 = vmatprep.subr.bf16.mxu1 %v5584_v53  ;;  %v5649_v52 = vpack.c.bf16 %v3159_v6, %v3158_v51 }
 0xdba   : > { %5587 = vmatpush3.bf16.msra.mxu1 %v5584_v53  ;;  %v3161_v53 = vld [vmem:[#allocation12 + $0x198] sm:$0xff] }
 0xdbb   : > { %5589 = vmatprep.subr.bf16.mxu1 %v5588_v56  ;;  %v5652_v54 = vpack.c.bf16 %v3161_v53, %v3160_v7 }
 0xdbe   : > { %5620 = vmatpush3.bf16.xpose.msra.mxu0 %v5619_v28  ;;  %5591 = vmatpush3.bf16.msra.mxu1 %v5588_v56  ;;  %v3163_v56 = vld [vmem:[#allocation12 + $0x1a8] sm:$0xff] }
 0xdbf   : > { %5621 = vmatprep.subr.bf16.mxu0 %v6111_v0  ;;  %5593 = vmatprep.subr.bf16.mxu1 %v5592_v5  ;;  %v5655_v32 = vpack.c.bf16 %v3163_v56, %v3162_v55 }
 0xdc2   : > { %5595 = vmatpush3.bf16.msra.mxu1 %v5592_v5  ;;  %v3165_v5 = vld [vmem:[#allocation12 + $0x1b8] sm:$0xff] }
 0xdc3   : > { %5597 = vmatprep.subr.bf16.mxu1 %v5596_v19  ;;  %v5658_v18 = vpack.c.bf16 %v3165_v5, %v3164_v49 }
 0xdc6   : > { %5623 = vmatpush3.bf16.xpose.msra.mxu0 %v5622_v33  ;;  %5599 = vmatpush3.bf16.msra.mxu1 %v5596_v19  ;;  %v3167_v19 = vld [vmem:[#allocation12 + $0x1c8] sm:$0xff] }
 0xdc7   : > { %5648 = vmatprep.subr.bf16.mxu0 %v6111_v0  ;;  %5624 = vmatprep.subr.bf16.mxu1 %v6111_v0 }
 0xdc9   : > { %4904 = vmatmul.mubr.f32.vlgmr.msra.gmra.mrb[62].mxu1 %v6730_v57 }
 0xdca   : > { %4906 = vmatprep.mubr.f32.mxu1 %v6734_v58 }
 0xdcd   : > { %4960 = vmatmul.mubr.f32.vlgmr.msra.gmra.mrb[72].mxu0 %v2663_v26  ;;  %4907 = vmatmul.mubr.f32.gmra.mrb[64].mxu1 %v6738_v59 }
 0xdce   : > { %5029 = vmatprep.mubr.msk.f32.mxu0 %vm6112_vm0, %v6113_v1  ;;  %4909 = vmatprep.mubr.f32.mxu1 %v6742_v60  ;;  %v3488_v60 = vld [vmem:[%s7019_s8 + $0x3] ss:$0 sm:$0xff] }
 0xdcf   : > { %5650 = vmatpush3.bf16.msra.mxu0 %v5649_v52 }
 0xdd0   : > { %5651 = vmatprep.subr.bf16.mxu0 %v6111_v0 }
 0xdd1   : > { %4910 = vmatmul.mubr.f32.gmra.mrb[66].mxu1 %v6746_v61 }
 0xdd2   : > { %4912 = vmatprep.mubr.f32.mxu1 %v6750_v62 }
 0xdd3   : > { %5653 = vmatpush3.bf16.msra.mxu0 %v5652_v54 }
 0xdd4   : > { %5654 = vmatprep.subr.bf16.mxu0 %v6111_v0 }
 0xdd5   : > { %4913 = vmatmul.mubr.f32.gmra.mrb[68].mxu1 %v6754_v63 }
 0xdd6   : > { %4915 = vmatprep.mubr.f32.mxu1 %v6758_v2 }
 0xdd7   : > { %5656 = vmatpush3.bf16.msra.mxu0 %v5655_v32 }
 0xdd8   : > { %5657 = vmatprep.subr.bf16.mxu0 %v6111_v0 }
 0xdd9   : > { %4916 = vmatmul.mubr.f32.gmra.mrb[70].mxu1 %v6762_v3 }
 0xdda   : > { %4918 = vmatprep.mubr.f32.mxu1 %v6766_v4 }
 0xddb   : > { %5659 = vmatpush3.bf16.msra.mxu0 %v5658_v18 }
 0xddc   : > { %5660 = vmatprep.subr.bf16.mxu0 %v6111_v0 }
 0xddd   : > { %4919 = vmatmul.mubr.f32.gmra.mrb[72].mxu1 %v6770_v8 }
 0xdde   : > { %4921 = vmatprep.mubr.f32.mxu1 %v6774_v9 }
 0xde1   : > { %4922 = vmatmul.mubr.f32.gmra.mrb[74].mxu1 %v6778_v10 }
 0xde2   : > { %4924 = vmatprep.mubr.f32.mxu1 %v6782_v11 }
 0xde5   : > { %4925 = vmatmul.mubr.f32.gmra.mrb[76].mxu1 %v6786_v12 }
 0xde6   : > { %4994 = vmatprep.mubr.msk.f32.mxu1 %vm6112_vm0, %v6113_v1 }
 0xe9c   : > { %v4905_v61 = vpop.f32.mrb[62].mxu1 }
 0xe9d   : > { %v2931_v62 = vadd.f32 %v4905_v61, %v3488_v60  ;;  %v2925_v63 = vpop.f32.mrb[63].mxu1  ;;  %v3170_v61 = vld [vmem:[#allocation12 + $0x1e0] sm:$0xff] }
 0xe9e   : > { %v2926_v2 = vadd.f32 %v3488_v60, %v2925_v63 }
 0xea0   : > { %v3070_v57 = vpop.f32.mrb[72].mxu0  ;;  %v5625_v3 = vpack.c.bf16 %v2931_v62, %v2926_v2  ;;  %v4908_v4 = vpop.f32.mrb[64].mxu1  ;;  %v3171_v62 = vld [vmem:[#allocation12 + $0x1e8] sm:$0xff]  ;;  %v3172_v2 = vld [vmem:[#allocation12 + $0x1f0] sm:$0xff] }
 0xea1   : > { %v3071_v58 = vadd.f32 %v3070_v57, %v6600_v35  ;;  %v4961_v59 = vpop.f32.mrb[73].mxu0  ;;  %v2941_v8 = vadd.f32 %v4908_v4, %v3488_v60  ;;  %v2935_v9 = vpop.f32.mrb[65].mxu1  ;;  %v5661_v57 = vpack.c.bf16 %v3167_v19, %v3166_v17  ;;  %v5667_v63 = vpack.c.bf16 %v3171_v62, %v3170_v61 }
 0xea2   : > { %v2936_v10 = vadd.f32 %v3488_v60, %v2935_v9  ;;  %5626 = vmatpush3.bf16.msra.mxu1 %v5625_v3  ;;  %v3169_v59 = vld [vmem:[#allocation12 + $0x1d8] sm:$0xff] }
 0xea3   : > { %3074 = vmax.xlane.f32.xlu0 %v3071_v58  ;;  %5627 = vmatprep.subr.bf16.mxu1 %v6111_v0  ;;  %v3173_v3 = vld [vmem:[#allocation12 + $0x1f8] sm:$0xff] }
 0xea4   : > { %v5628_v1 = vpack.c.bf16 %v2941_v8, %v2936_v10  ;;  %v4911_v35 = vpop.f32.mrb[66].mxu1  ;;  %5662 = vmatpush3.bf16.msra.mxu0 %v5661_v57  ;;  %v5670_v4 = vpack.c.bf16 %v3173_v3, %v3172_v2 }
 0xea5   : > { %v2951_v11 = vadd.f32 %v4911_v35, %v3488_v60  ;;  %v2945_v12 = vpop.f32.mrb[67].mxu1  ;;  %5663 = vmatprep.subr.bf16.mxu0 %v6111_v0 }
 0xea6   : > { %v2946_v46 = vadd.f32 %v3488_v60, %v2945_v12  ;;  %5629 = vmatpush3.bf16.msra.mxu1 %v5628_v1 }
 0xea7   : > { %5630 = vmatprep.subr.bf16.mxu1 %v6111_v0 }
 0xea8   : > { %v5631_v13 = vpack.c.bf16 %v2951_v11, %v2946_v46  ;;  %v4914_v20 = vpop.f32.mrb[68].mxu1 }
 0xea9   : > { %v2961_v21 = vadd.f32 %v4914_v20, %v3488_v60  ;;  %v2955_v22 = vpop.f32.mrb[69].mxu1 }
 0xeaa   : > { %v2956_v14 = vadd.f32 %v3488_v60, %v2955_v22  ;;  %5632 = vmatpush3.bf16.msra.mxu1 %v5631_v13 }
 0xeab   : > { %5633 = vmatprep.subr.bf16.mxu1 %v6111_v0 }
 0xeac   : > { %v5634_v23 = vpack.c.bf16 %v2961_v21, %v2956_v14  ;;  %v4917_v41 = vpop.f32.mrb[70].mxu1 }
 0xead   : > { %v2971_v24 = vadd.f32 %v4917_v41, %v3488_v60  ;;  %v2965_v25 = vpop.f32.mrb[71].mxu1 }
 0xeae   : > { %v2966_v16 = vadd.f32 %v3488_v60, %v2965_v25  ;;  %5635 = vmatpush3.bf16.msra.mxu1 %v5634_v23 }
 0xeaf   : > { %5636 = vmatprep.subr.bf16.mxu1 %v6111_v0 }
 0xeb0   : > { %v5637_v27 = vpack.c.bf16 %v2971_v24, %v2966_v16  ;;  %v4920_v28 = vpop.f32.mrb[72].mxu1 }
 0xeb1   : > { %v2981_v29 = vadd.f32 %v4920_v28, %v3488_v60  ;;  %v2975_v30 = vpop.f32.mrb[73].mxu1 }
 0xeb2   : > { %v2976_v31 = vadd.f32 %v3488_v60, %v2975_v30  ;;  %5638 = vmatpush3.bf16.msra.mxu1 %v5637_v27 }
 0xeb3   : > { %5639 = vmatprep.subr.bf16.mxu1 %v6111_v0 }
 0xeb4   : > { %v5640_v34 = vpack.c.bf16 %v2981_v29, %v2976_v31  ;;  %v4923_v36 = vpop.f32.mrb[74].mxu1 }
 0xeb5   : > { %v2991_v40 = vadd.f32 %v4923_v36, %v3488_v60  ;;  %v2985_v43 = vpop.f32.mrb[75].mxu1 }
 0xeb6   : > { %5641 = vmatpush3.bf16.msra.mxu1 %v5640_v34  ;;  %v2986_v44 = vadd.f32 %v3488_v60, %v2985_v43 }
 0xeb7   : > { %5642 = vmatprep.subr.bf16.mxu1 %v6111_v0 }
 0xeb8   : > { %v5643_v45 = vpack.c.bf16 %v2991_v40, %v2986_v44  ;;  %v4926_v48 = vpop.f32.mrb[76].mxu1 }
 0xeb9   : > { %v2995_v39 = vpop.f32.mrb[77].mxu1  ;;  %v3001_v47 = vadd.f32 %v4926_v48, %v3488_v60 }
 0xeba   : > { %v2996_v38 = vadd.f32 %v3488_v60, %v2995_v39  ;;  %5644 = vmatpush3.bf16.msra.mxu1 %v5643_v45 }
 0xebb   : > { %5645 = vmatprep.subr.bf16.mxu1 %v6111_v0 }
 0xebc   : > { %v5646_v50 = vpack.c.bf16 %v3001_v47, %v2996_v38 }
 0xebe   : > { %5647 = vmatpush3.bf16.msra.mxu1 %v5646_v50 }
 0xf30   : > { %v3075_v42 = vpop.xlane.xlu0 %3074 }
 0xf31   : > { %v3076_v33 = vsub.f32 %v3071_v58, %v3075_v42  ;;  %v3168_v58 = vld [vmem:[#allocation12 + $0x1d0] sm:$0xff] }
 0xf32   : > { %v5664_v60 = vpack.c.bf16 %v3169_v59, %v3168_v58 }
 0xf33   : > { %v3077_v26 = vmul.f32 1.442695, %v3076_v33 }
 0xf34   : > { %5665 = vmatpush3.bf16.msra.mxu0 %v5664_v60 }
 0xf35   : > { %5794 = vpow2.f32 %v3077_v26  ;;  %5666 = vmatprep.subr.bf16.mxu0 %v6111_v0 }
 0xf38   : > { %5668 = vmatpush3.bf16.msra.mxu0 %v5667_v63 }
 0xf39   : > { %5669 = vmatprep.subr.bf16.mxu0 %v6111_v0 }
 0xf3c   : > { %5671 = vmatpush3.bf16.msra.mxu0 %v5670_v4 }
 0xf3f   : > { %v5795_v37 = vpop.eup %5794 }
 0xf40   : > { %3079 = vadd.xlane.f32.xlu1 %v5795_v37 }
 0xfcd   : > { %v3080_v8 = vpop.xlane.xlu1 %3079 }
 0xfce   : > { %5796 = vrcp.f32 %v3080_v8 }
 0xfd8   : > { %v5797_v9 = vpop.eup %5796 }
 0xfd9   : > { %v3082_v10 = vmul.f32 %v5797_v9, %v5795_v37 }
 0xfdb   : > { %v3084_v1 = vadd.f32 %v3082_v10, %v6839_v15  ;;  %4995 = vmatmul.mubr.f32.vlgmr.msra.gmra.mrb[78].mxu1 %v3082_v10 }
 0xfdd   : > { %v3249_v35 = vmul.f32 0.25, %v3084_v1 }
 0xfdf   : > { %3250 = vst [vmem:[%s510_s30] sm:$0xff] %v3249_v35 }
0x10ae   : > { %v3152_v11 = vpop.f32.mrb[78].mxu1 }
0x10af   : > { %v4996_v12 = vpop.f32.mrb[79].mxu1  ;;  %5030 = vmatmul.mubr.f32.vlgmr.msra.gmra.mrb[18].mxu0 %v3152_v11 }
0x10b0   : > { %6000 = shalt.err (!%p5997_p1)
}
0x10b1   : > { %s6001_s2 = scalar_lea.hbm %s6938_s9, 128  ;;  %s6005_s30 = scalar_lea.hbm %s7060_s15, 256 }
0x10b2   : > { %p6002_p11 = scmp.ne.s32.totalorder %s6938_s9, %s6001_s2  ;;  %p6006_p3 = scmp.lt.u32.totalorder %s6938_s9, %s7060_s15 }
0x10b3   : > { %p6007_p13 = scmp.lt.u32.totalorder %s6005_s30, %s6001_s2  ;;  %p6009_p6 = scmp.lt.u32.totalorder %s6001_s2, %s6938_s9 }
0x10b4   : > { %p6003_p8 = pnand %p6002_p11, %p7061_p2 }
0x10b5   : > { %p6008_p0 = por %p6007_p13, %p6006_p3 }
0x10b6   : > { %p6004_p12 = pneg %p6003_p8 }
0x10b7   : > { %p6010_p4 = por %p6009_p6, %p6008_p0 }
0x10b9   : > { %p6011_p10 = pnand %p6010_p4, %p6004_p12 }
0x10bb   : > { %6014 = shalt.err (!%p6011_p10)
}
0x10bc   : > { %5700 = dma.vmem_to_hbm [thread:$0]  (%p7061_p2), %s3284_s11, 128, %s6938_s9, %s3257_s13  }
0x10bd   : > { %s7062_s10 = sld [smem:[#allocation28_spill]]  ;;  %s503_s26 = scalar_lea.vmem [#allocation14], %s6455_s21 }
0x10be   : > { %s3270_s4 = sshll.u32 %s503_s26, 4  ;;  %s7063_s30 = sld [smem:[#allocation29_spill]]  ;;  %s6969_s4 = int_to_ptr.vmem [resolvable:$true] %s3270_s4 }
0x10bf   : > { %s3252_s9 = scalar_lea.sflag [#allocation5], %s6452_s12  ;;  %s6015_s11 = scalar_lea.vmem %s6969_s4, 128 }
0x10c0   : > { %p6016_p5 = scmp.ne.s32.totalorder %s6969_s4, %s6015_s11  ;;  %s6116_s21 = smov [#allocation14]  }
0x10c1   : > { %s6019_s13 = sshll.u32 %s6116_s21, 4  ;;  %s6020_s13 = int_to_ptr.vmem [resolvable:$false] %s6019_s13 }
0x10c2   : > { %p6017_p7 = pnand %p6016_p5, %p7061_p2  ;;  %s6021_s23 = scalar_lea.vmem %s6020_s13, 256 }
0x10c3   : > { %v3467_v0 = vld [vmem:[%s7062_s10] ss:$0 sm:$0xff]  ;;  %p6022_p1 = scmp.lt.s32.totalorder %s6969_s4, %s6020_s13  ;;  %p6023_p11 = scmp.lt.s32.totalorder %s6021_s23, %s6015_s11 }
0x10c4   : > { %s6967_s24 = scalar_lea.hbm %s7063_s30, %s3491_s0  ;;  %p6018_p9 = pneg %p6017_p7 }
0x10c5   : > { %p6024_p8 = por %p6023_p11, %p6022_p1 }
0x10c7   : > { %p6025_p12 = pnand %p6024_p8, %p6018_p9 }
0x1182   : > { %v3240_v15 = vpop.f32.mrb[18].mxu0 }
0x1183   : > { %v5672_v46 = vadd.f32 %v3467_v0, %v3240_v15  ;;  %v5031_v13 = vpop.f32.mrb[19].mxu0 }
0x1185   : > { %3247 = vst [vmem:[%s503_s26] sm:$0xff] %v5672_v46 }
0x1186   : > { %6028 = shalt.err (!%p6025_p12)
}
0x1187   : > { %s6029_s12 = scalar_lea.hbm %s6967_s24, 128  ;;  %s6033_s22 = scalar_lea.hbm %s7063_s30, 256 }
0x1188   : > { %p6030_p3 = scmp.ne.s32.totalorder %s6967_s24, %s6029_s12  ;;  %p6034_p6 = scmp.lt.u32.totalorder %s6967_s24, %s7063_s30 }
0x1189   : > { %p6035_p4 = scmp.lt.u32.totalorder %s6033_s22, %s6029_s12  ;;  %p6037_p5 = scmp.lt.u32.totalorder %s6029_s12, %s6967_s24 }
0x118a   : > { %p6031_p13 = pnand %p6030_p3, %p7061_p2 }
0x118b   : > { %p6036_p10 = por %p6035_p4, %p6034_p6 }
0x118c   : > { %p6032_p0 = pneg %p6031_p13 }
0x118d   : > { %p6038_p7 = por %p6037_p5, %p6036_p10 }
0x118f   : > { %p6039_p9 = pnand %p6038_p7, %p6032_p0 }
0x1191   : > { %6042 = shalt.err (!%p6039_p9)
}
0x1192   : > { %5699 = dma.vmem_to_hbm [thread:$0]  (%p7061_p2), %s6969_s4, 128, %s6967_s24, %s3252_s9  }
0x1193 PF: > { %s3295_s26 = sand.u32 1, %s6089_s17   ;;  %p7064_p1 = scmp.ne.s32.totalorder %s7047_s28, 0 }
0x1194   : > { %p7065_p11 = scmp.ge.s32.totalorder %s6101_s20, 2  ;;  %s3296_s2 = scalar_lea.sflag [#allocation5], %s3295_s26 }
0x1196   : > { %p5724_p8 = pnand %p7065_p11, %p7064_p1 }
0x1198   : > { %6080 = dma.done.wait (!%p5724_p8), %s3296_s2, 128  }
0x1199   : > { %6082 = vsyncadd (!%p5724_p8), %s3296_s2, 4294967168  ;;  %s3305_s3 = scalar_lea.sflag [#allocation16], %s3295_s26 }
0x119a   : > { %6084 = dma.done.wait (!%p5724_p8), %s3305_s3, 128  }
0x119b   : > { %6086 = vsyncadd (!%p5724_p8), %s3305_s3, 4294967168  ;;  %p33_p2 = scmp.ge.s32.totalorder %s6329_s16, 4   ;;  %s7066_s17 = smov %s6093_s18 }
0x119c   : > { %s7067_s18 = smov %s6097_s19  ;;  %s7068_s19 = smov %s6340_s14 }
0x119d   : > { %s7069_s20 = smov %s6329_s16  ;;  %35 = sbr.rel (!%p33_p2) target bundleno = 19 (0x13), region = 172 }
0x11a4   :  { %3310 = vsyncpa [#allocation4], 1 }
0x11a5   :  { %3312 = vsyncpa [#allocation4 + $0x1], 1 }
0x11a6   :  { %3313 = vsyncpa [#allocation7], 1 }
0x11a7   :  { %3315 = vsyncpa [#allocation7 + $0x1], 1 }
0x11a8   :  { %3316 = vsyncpa [#allocation10], 1 }
0x11a9   :  { %3317 = vsyncpa [#allocation13], 1 }
0x11aa   :  { %3318 = vsyncpa [#allocation5], 1 }
0x11ab   :  { %3320 = vsyncpa [#allocation5 + $0x1], 1 }
0x11ac   :  { %3321 = vsyncpa [#allocation16], 1 }
0x11ad   :  { %3323 = vsyncpa [#allocation16 + $0x1], 1 }

</bundles_post_ra>
